<compile_context>
chip_gen: v6e
topology: v6e:2x2x1
jax: 0.10.0
libtpu: 0.0.40
codegen_flags: <defaults>
</compile_context>

<pallas_src>
import jax
import jax.numpy as jnp
from jax.experimental import pallas as pl
from jax.experimental.pallas import tpu as pltpu

K = 3  # kernel size (3, 3, 3)


def prepare_causal_conv3d_params(weight, bias):
    """Layout / dtype prep for the kernel.

    Depends only on the layer's parameters -> in the real decoder compute once
    per layer and cache (perf review: hoist out of the per-call path).

    weight : (C_out, C_in, 3, 3, 3)  (PyTorch Conv3d layout)
    bias   : (C_out,)
    returns
      w_taps  : (K, K, K*C_in, C_out) bf16, rows ordered (kw, cin); one plain
                (K*C_in, C_out) matmul operand per (kt, kh) tap
      bias_2d : (1, C_out) f32
    """
    c_out, c_in = int(weight.shape[0]), int(weight.shape[1])
    w = jnp.transpose(weight, (2, 3, 4, 1, 0))          # (kt, kh, kw, Cin, Cout)
    w = w.reshape(K, K, K * c_in, c_out).astype(jnp.bfloat16)
    b2 = bias.reshape(1, c_out).astype(jnp.float32)
    return w, b2


def _default_t_block(t_out, h_out, w_out, c_out):
    """Largest T block whose f32 accumulator stays <= ~128 KiB, preferring
    >= 2 T blocks per batch (pipeline depth / megacore headroom)."""
    cap = max(1, (128 * 1024) // (h_out * w_out * c_out * 4))
    cap = min(cap, t_out)
    divisors = [d for d in range(1, cap + 1) if t_out % d == 0]
    pipelined = [d for d in divisors if t_out // d >= 2]
    return max(pipelined) if pipelined else max(divisors)


def causal_conv3d_channel_last(x, weight, bias, *, is_init=True, stride=1,
                               residual=None, t_block=None, prepared=None):
    """Forward of CausalConvChannelLast / CausalConvAfterNorm (3x3x3, stride 1).

    x        : (B, T, H, W, C_in) float32, channels-last (module layout)
    weight   : (C_out, C_in, 3, 3, 3)
    bias     : (C_out,)
    is_init  : True -> causal temporal pad (2 frames in front); False -> none
    residual : optional (B, T_out, H_out, W_out, C_out) added to the output
    returns  : (B, T_out, H_out, W_out, C_out) float32, channels-last
    """
    if stride != 1:
        raise NotImplementedError(
            "only the stride-1 VideoDecoder causal conv is implemented")

    B, T, H, W, Cin = map(int, x.shape)
    Cout = int(weight.shape[0])
    if tuple(weight.shape) != (Cout, Cin, K, K, K):
        raise ValueError(f"weight must be (Cout, Cin, 3, 3, 3); got {weight.shape}")

    tp = (K - 1) if is_init else 0          # causal temporal padding (front only)
    Tp, Hp, Wp = T + tp, H + 2, W + 2       # spatial pad (1,1) each side
    T_out, H_out, W_out = Tp - K + 1, Hp - K + 1, Wp - K + 1
    if T_out < 1:
        raise ValueError("temporal extent too small for the 3x3x3 causal conv")

    KCin = K * Cin
    # Layout requirements of this kernel (review: make the assumptions explicit).
    if KCin % 128 != 0 or Cout % 128 != 0:
        raise ValueError(
            f"lane-dense layout requires K*C_in and C_out to be multiples of "
            f"128; got K*C_in={KCin}, C_out={Cout}")
    if W_out % 8 != 0:
        raise ValueError(
            f"W_out (={W_out}) must be a multiple of 8 (sublane dim of the "
            f"matmul slabs; a multiple of 16 keeps the bf16 reshape a free view)")

    TB = _default_t_block(T_out, H_out, W_out, Cout) if t_block is None else int(t_block)
    if T_out % TB != 0:
        raise ValueError("t_block must divide T_out")
    nT = T_out // TB
    TBp = TB + K - 1                        # halo'd temporal window per step
    M = TB * H_out * W_out                  # matmul rows per grid step

    # ------------- wrapper layout plumbing (plain JAX, channels-last) ---------
    xp = jnp.pad(x, ((0, 0), (tp, 0), (1, 1), (1, 1), (0, 0)))
    # W-only im2col: lane dim becomes (kw, cin) = K*Cin.  kt/kh taps are taken
    # in-kernel as major-axis slices, so wrapper HBM expansion stays at 3x.
    cols = [xp[:, :, :, kw:kw + W_out, :] for kw in range(K)]
    xw = jnp.stack(cols, axis=4).reshape(B, Tp, Hp, W_out, KCin)
    xw = xw.astype(jnp.bfloat16)            # bf16 MXU operands (f32 accumulate)

    if prepared is None:
        prepared = prepare_causal_conv3d_params(weight, bias)
    w_taps, bias_2d = prepared

    # ------------------------------ Pallas kernel -----------------------------
    def kernel(x_hbm, w_hbm, b_ref, o_ref, xbuf, wbuf, acc_ref, sem):
        b = pl.program_id(0)
        t = pl.program_id(1)
        n_t = pl.num_programs(1)
        slot = t % 2

        def start_fetch(t_blk, buf_slot):
            # halo'd temporal window [t_blk*TB, t_blk*TB + TB + K - 1) of this
            # batch's W-im2col'd input: HBM -> VMEM (double-buffered)
            pltpu.make_async_copy(
                x_hbm.at[b, pl.ds(t_blk * TB, TBp)],
                xbuf.at[buf_slot],
                sem.at[buf_slot]).start()

        @pl.when(t == 0)
        def _():
            start_fetch(0, 0)
            # Weight: fetched HBM->VMEM once per batch into a single-buffered
            # scratch (constant input -> no second pipeline buffer).
            wcopy = pltpu.make_async_copy(w_hbm, wbuf, sem.at[2])
            wcopy.start()
            wcopy.wait()

        @pl.when(t + 1 < n_t)
        def _():
            start_fetch(t + 1, 1 - slot)    # prefetch next T block

        # wait for the current tile (same shape as every fetch)
        pltpu.make_async_copy(x_hbm.at[b, pl.ds(t * TB, TBp)],
                              xbuf.at[slot], sem.at[slot]).wait()

        # 9 lane-dense matmuls: (M, K*Cin) x (K*Cin, Cout), bf16 -> f32 acc.
        # kt / kh index MAJOR axes of xbuf, so the slices are free (no sublane
        # relayout) and the reshape to (M, K*Cin) is a pure view.
        first = True
        for kt in range(K):
            for kh in range(K):
                slab = xbuf[slot, kt:kt + TB, kh:kh + H_out]   # (TB,H_out,W_out,KCin)
                contrib = jnp.dot(slab.reshape(M, KCin), wbuf[kt, kh],
                                  preferred_element_type=jnp.float32)
                if first:
                    acc_ref[...] = contrib
                    first = False
                else:
                    acc_ref[...] += contrib

        out = acc_ref[...] + b_ref[...]
        o_ref[...] = out.reshape(TB, H_out, W_out, Cout).astype(o_ref.dtype)

    out_bytes = B * T_out * H_out * W_out * Cout * 4
    cost = pl.CostEstimate(
        flops=2 * B * T_out * H_out * W_out * (K ** 3) * Cin * Cout,
        transcendentals=0,
        bytes_accessed=int(xw.size) * 2 + int(w_taps.size) * 2 * B
        + int(bias_2d.size) * 4 + out_bytes)

    out = pl.pallas_call(
        kernel,
        out_shape=jax.ShapeDtypeStruct((B, T_out, H_out, W_out, Cout),
                                       jnp.float32),
        grid_spec=pltpu.PrefetchScalarGridSpec(
            num_scalar_prefetch=0,
            grid=(B, nT),
            in_specs=[
                pl.BlockSpec(memory_space=pl.ANY),        # x (HBM, manual halo DMA)
                pl.BlockSpec(memory_space=pl.ANY),        # weight (HBM, copied once/batch)
                pl.BlockSpec((1, Cout), lambda b, t: (0, 0)),   # bias
            ],
            out_specs=pl.BlockSpec((None, TB, H_out, W_out, Cout),
                                   lambda b, t: (b, t, 0, 0, 0)),
            scratch_shapes=[
                pltpu.VMEM((2, TBp, Hp, W_out, KCin), jnp.bfloat16),  # x double buffer
                pltpu.VMEM((K, K, KCin, Cout), jnp.bfloat16),         # resident weight
                pltpu.VMEM((M, Cout), jnp.float32),                   # accumulator
                pltpu.SemaphoreType.DMA((3,)),                        # 2 x-slots + weight
            ]),
        compiler_params=pltpu.CompilerParams(
            dimension_semantics=("parallel", "arbitrary")),
        cost_estimate=cost,
    )(xw, w_taps, bias_2d)

    if residual is not None:
        # TODO(synk): fuse the residual add into the kernel epilogue.
        out = out + residual
    return out


# --------------------------------- reference ----------------------------------
def ref_causal_conv3d_channel_last(x, weight, bias, is_init=True):
    """Pure-JAX reference of CausalConvChannelLast.forward.  Operands are cast
    to bf16 to mirror the kernel's MXU precision (f32 accumulation)."""
    tp = (K - 1) if is_init else 0
    xn = jnp.transpose(x, (0, 4, 1, 2, 3))                    # NCDHW
    xn = jnp.pad(xn, ((0, 0), (0, 0), (tp, 0), (1, 1), (1, 1)))
    y = jax.lax.conv_general_dilated(
        xn.astype(jnp.bfloat16), weight.astype(jnp.bfloat16),
        window_strides=(1, 1, 1), padding="VALID",
        dimension_numbers=("NCDHW", "OIDHW", "NCDHW"),
        preferred_element_type=jnp.float32)
    y = y + bias.astype(jnp.float32)[None, :, None, None, None]
    return jnp.transpose(y, (0, 2, 3, 4, 1))                  # channels-last


def _check(B, C, T, H, W, key):
    kx, kw, kb = jax.random.split(key, 3)
    x = jax.random.normal(kx, (B, T, H, W, C), dtype=jnp.float32)
    weight = jax.random.normal(kw, (C, C, K, K, K), dtype=jnp.float32) * 0.05
    bias = jax.random.normal(kb, (C,), dtype=jnp.float32) * 0.05

    prepared = prepare_causal_conv3d_params(weight, bias)     # cached per layer
    out = causal_conv3d_channel_last(x, weight, bias, is_init=True,
                                     prepared=prepared)
    out = jax.block_until_ready(out)

    ref = jax.block_until_ready(
        ref_causal_conv3d_channel_last(x, weight, bias, is_init=True))
    if out.shape != ref.shape:
        raise AssertionError(f"shape mismatch {out.shape} vs {ref.shape}")
    if not jnp.allclose(out, ref, atol=1e-2, rtol=1e-2):
        err = float(jnp.max(jnp.abs(out - ref)))
        raise AssertionError(f"numerical mismatch vs reference (max abs err {err})")


if __name__ == "__main__":
    key = jax.random.PRNGKey(0)
    k_a, k_b = jax.random.split(key)
    # (1) B=2 (one batch per v7x TensorCore), T_out=8 -> 4 T blocks of 2/batch.
    _check(B=2, C=128, T=8, H=8, W=16, key=k_a)
    # (2) B=1, larger spatial plane, T_out=5 -> 5 single-frame T blocks.
    _check(B=1, C=128, T=5, H=16, W=16, key=k_b)
    print("KERNEL_OK")
</pallas_src>

<mosaic_0001>
module attributes {stable_mosaic.version = 11 : i64} {
  func.func @kernel(%arg0: i32, %arg1: i32, %arg2: memref<2x10x10x16x384xbf16, #tpu.memory_space<any>>, %arg3: memref<3x3x384x128xbf16, #tpu.memory_space<any>>, %arg4: memref<1x128xf32, #tpu.memory_space<vmem>>, %arg5: memref<1x2x8x16x128xf32, #tpu.memory_space<vmem>>, %arg6: memref<2x4x10x16x384xbf16, #tpu.memory_space<vmem>>, %arg7: memref<3x3x384x128xbf16, #tpu.memory_space<vmem>>, %arg8: memref<256x128xf32, #tpu.memory_space<vmem>>, %arg9: memref<3x!tpu.dma_semaphore, #tpu.memory_space<semaphore_mem>>) attributes {dimension_semantics = [#tpu.dimension_semantics<parallel>, #tpu.dimension_semantics<arbitrary>], iteration_bounds = array<i64: 2, 4>, scalar_prefetch = 0 : i64, scratch_operands = 4 : i64, tpu.core_type = #tpu.core_type<tc>, window_params = [{}, {}, {pipeline_mode = #tpu.pipeline_mode<synchronous>, transform_indices = @transform_2, window_bounds = array<i64: 1, 128>}, {transform_indices = @transform_3, window_bounds = array<i64: 1, 2, 8, 16, 128>}]} {
    %c2_i32 = arith.constant 2 : i32
    %c0_i32 = arith.constant 0 : i32
    %0 = arith.cmpi eq, %c2_i32, %c0_i32 : i32
    %c1_i32 = arith.constant 1 : i32
    %1 = arith.select %0, %c1_i32, %c2_i32 : i32
    %2 = arith.remsi %arg1, %1 : i32
    %c0_i32_0 = arith.constant 0 : i32
    %3 = arith.cmpi ne, %2, %c0_i32_0 : i32
    %c0_i32_1 = arith.constant 0 : i32
    %4 = arith.cmpi slt, %2, %c0_i32_1 : i32
    %c0_i32_2 = arith.constant 0 : i32
    %5 = arith.cmpi slt, %1, %c0_i32_2 : i32
    %6 = arith.xori %4, %5 : i1
    %7 = arith.andi %6, %3 : i1
    %8 = arith.addi %2, %1 : i32
    %9 = arith.select %7, %8, %2 : i32
    %c0_i32_3 = arith.constant 0 : i32
    %10 = arith.cmpi eq, %arg1, %c0_i32_3 : i32
    %11 = arith.extui %10 : i1 to i32
    %c0_i32_4 = arith.constant 0 : i32
    %12 = arith.cmpi ne, %11, %c0_i32_4 : i32
    scf.if %12 {
      %c0_i32_135 = arith.constant 0 : i32
      %c0_i32_136 = arith.constant 0 : i32
      %c0_i32_137 = arith.constant 0 : i32
      %c0_i32_138 = arith.constant 0 : i32
      %c0_i32_139 = arith.constant 0 : i32
      %c0_i32_140 = arith.constant 0 : i32
      %120 = tpu.memref_slice %arg2[%arg0, %c0_i32_137, %c0_i32_138, %c0_i32_139, %c0_i32_140] : memref<2x10x10x16x384xbf16, #tpu.memory_space<any>> -> memref<1x4x10x16x384xbf16, #tpu.memory_space<any>>
      %121 = tpu.memref_squeeze %120 : memref<1x4x10x16x384xbf16, #tpu.memory_space<any>> -> memref<4x10x16x384xbf16, #tpu.memory_space<any>>
      %c0_i32_141 = arith.constant 0 : i32
      %c0_i32_142 = arith.constant 0 : i32
      %c0_i32_143 = arith.constant 0 : i32
      %c0_i32_144 = arith.constant 0 : i32
      %122 = tpu.memref_slice %arg6[%c0_i32_135, %c0_i32_141, %c0_i32_142, %c0_i32_143, %c0_i32_144] : memref<2x4x10x16x384xbf16, #tpu.memory_space<vmem>> -> memref<1x4x10x16x384xbf16, #tpu.memory_space<vmem>>
      %123 = tpu.memref_squeeze %122 : memref<1x4x10x16x384xbf16, #tpu.memory_space<vmem>> -> memref<4x10x16x384xbf16, #tpu.memory_space<vmem>>
      %124 = tpu.memref_slice %arg9[%c0_i32_136] : memref<3x!tpu.dma_semaphore, #tpu.memory_space<semaphore_mem>> -> memref<1x!tpu.dma_semaphore, #tpu.memory_space<semaphore_mem>>
      %125 = tpu.memref_squeeze %124 : memref<1x!tpu.dma_semaphore, #tpu.memory_space<semaphore_mem>> -> memref<!tpu.dma_semaphore, #tpu.memory_space<semaphore_mem>>
      tpu.enqueue_dma source(%121 : memref<4x10x16x384xbf16, #tpu.memory_space<any>>) target(%123 : memref<4x10x16x384xbf16, #tpu.memory_space<vmem>>) target_semaphore(%125 : memref<!tpu.dma_semaphore, #tpu.memory_space<semaphore_mem>>)
      %c2_i32_145 = arith.constant 2 : i32
      %126 = tpu.memref_slice %arg9[%c2_i32_145] : memref<3x!tpu.dma_semaphore, #tpu.memory_space<semaphore_mem>> -> memref<1x!tpu.dma_semaphore, #tpu.memory_space<semaphore_mem>>
      %127 = tpu.memref_squeeze %126 : memref<1x!tpu.dma_semaphore, #tpu.memory_space<semaphore_mem>> -> memref<!tpu.dma_semaphore, #tpu.memory_space<semaphore_mem>>
      tpu.enqueue_dma source(%arg3 : memref<3x3x384x128xbf16, #tpu.memory_space<any>>) target(%arg7 : memref<3x3x384x128xbf16, #tpu.memory_space<vmem>>) target_semaphore(%127 : memref<!tpu.dma_semaphore, #tpu.memory_space<semaphore_mem>>)
      %c2_i32_146 = arith.constant 2 : i32
      %128 = tpu.memref_slice %arg9[%c2_i32_146] : memref<3x!tpu.dma_semaphore, #tpu.memory_space<semaphore_mem>> -> memref<1x!tpu.dma_semaphore, #tpu.memory_space<semaphore_mem>>
      %129 = tpu.memref_squeeze %128 : memref<1x!tpu.dma_semaphore, #tpu.memory_space<semaphore_mem>> -> memref<!tpu.dma_semaphore, #tpu.memory_space<semaphore_mem>>
      tpu.wait_dma2 semaphore(%129 : memref<!tpu.dma_semaphore, #tpu.memory_space<semaphore_mem>>) src(%arg3 : memref<3x3x384x128xbf16, #tpu.memory_space<any>>) dst(%arg7 : memref<3x3x384x128xbf16, #tpu.memory_space<vmem>>)
    } else {
    }
    %c1_i32_5 = arith.constant 1 : i32
    %13 = arith.addi %arg1, %c1_i32_5 : i32
    %c4_i32 = arith.constant 4 : i32
    %14 = arith.cmpi slt, %13, %c4_i32 : i32
    %15 = arith.extui %14 : i1 to i32
    %c0_i32_6 = arith.constant 0 : i32
    %16 = arith.cmpi ne, %15, %c0_i32_6 : i32
    scf.if %16 {
      %c1_i32_135 = arith.constant 1 : i32
      %120 = arith.addi %arg1, %c1_i32_135 : i32
      %c1_i32_136 = arith.constant 1 : i32
      %121 = arith.subi %c1_i32_136, %9 : i32
      %c2_i32_137 = arith.constant 2 : i32
      %122 = arith.muli %120, %c2_i32_137 : i32
      %c0_i32_138 = arith.constant 0 : i32
      %c0_i32_139 = arith.constant 0 : i32
      %c0_i32_140 = arith.constant 0 : i32
      %123 = tpu.memref_slice %arg2[%arg0, %122, %c0_i32_138, %c0_i32_139, %c0_i32_140] : memref<2x10x10x16x384xbf16, #tpu.memory_space<any>> -> memref<1x4x10x16x384xbf16, #tpu.memory_space<any>>
      %124 = tpu.memref_squeeze %123 : memref<1x4x10x16x384xbf16, #tpu.memory_space<any>> -> memref<4x10x16x384xbf16, #tpu.memory_space<any>>
      %c0_i32_141 = arith.constant 0 : i32
      %c0_i32_142 = arith.constant 0 : i32
      %c0_i32_143 = arith.constant 0 : i32
      %c0_i32_144 = arith.constant 0 : i32
      %125 = tpu.memref_slice %arg6[%121, %c0_i32_141, %c0_i32_142, %c0_i32_143, %c0_i32_144] : memref<2x4x10x16x384xbf16, #tpu.memory_space<vmem>> -> memref<1x4x10x16x384xbf16, #tpu.memory_space<vmem>>
      %126 = tpu.memref_squeeze %125 : memref<1x4x10x16x384xbf16, #tpu.memory_space<vmem>> -> memref<4x10x16x384xbf16, #tpu.memory_space<vmem>>
      %127 = tpu.memref_slice %arg9[%121] : memref<3x!tpu.dma_semaphore, #tpu.memory_space<semaphore_mem>> -> memref<1x!tpu.dma_semaphore, #tpu.memory_space<semaphore_mem>>
      %128 = tpu.memref_squeeze %127 : memref<1x!tpu.dma_semaphore, #tpu.memory_space<semaphore_mem>> -> memref<!tpu.dma_semaphore, #tpu.memory_space<semaphore_mem>>
      tpu.enqueue_dma source(%124 : memref<4x10x16x384xbf16, #tpu.memory_space<any>>) target(%126 : memref<4x10x16x384xbf16, #tpu.memory_space<vmem>>) target_semaphore(%128 : memref<!tpu.dma_semaphore, #tpu.memory_space<semaphore_mem>>)
    } else {
    }
    %c2_i32_7 = arith.constant 2 : i32
    %17 = arith.muli %arg1, %c2_i32_7 : i32
    %c0_i32_8 = arith.constant 0 : i32
    %c0_i32_9 = arith.constant 0 : i32
    %c0_i32_10 = arith.constant 0 : i32
    %18 = tpu.memref_slice %arg2[%arg0, %17, %c0_i32_8, %c0_i32_9, %c0_i32_10] : memref<2x10x10x16x384xbf16, #tpu.memory_space<any>> -> memref<1x4x10x16x384xbf16, #tpu.memory_space<any>>
    %19 = tpu.memref_squeeze %18 : memref<1x4x10x16x384xbf16, #tpu.memory_space<any>> -> memref<4x10x16x384xbf16, #tpu.memory_space<any>>
    %c0_i32_11 = arith.constant 0 : i32
    %c0_i32_12 = arith.constant 0 : i32
    %c0_i32_13 = arith.constant 0 : i32
    %c0_i32_14 = arith.constant 0 : i32
    %20 = tpu.memref_slice %arg6[%9, %c0_i32_11, %c0_i32_12, %c0_i32_13, %c0_i32_14] : memref<2x4x10x16x384xbf16, #tpu.memory_space<vmem>> -> memref<1x4x10x16x384xbf16, #tpu.memory_space<vmem>>
    %21 = tpu.memref_squeeze %20 : memref<1x4x10x16x384xbf16, #tpu.memory_space<vmem>> -> memref<4x10x16x384xbf16, #tpu.memory_space<vmem>>
    %22 = tpu.memref_slice %arg9[%9] : memref<3x!tpu.dma_semaphore, #tpu.memory_space<semaphore_mem>> -> memref<1x!tpu.dma_semaphore, #tpu.memory_space<semaphore_mem>>
    %23 = tpu.memref_squeeze %22 : memref<1x!tpu.dma_semaphore, #tpu.memory_space<semaphore_mem>> -> memref<!tpu.dma_semaphore, #tpu.memory_space<semaphore_mem>>
    tpu.wait_dma2 semaphore(%23 : memref<!tpu.dma_semaphore, #tpu.memory_space<semaphore_mem>>) src(%19 : memref<4x10x16x384xbf16, #tpu.memory_space<any>>) dst(%21 : memref<4x10x16x384xbf16, #tpu.memory_space<vmem>>)
    %24 = arith.index_cast %9 : i32 to index
    %c0 = arith.constant 0 : index
    %c0_15 = arith.constant 0 : index
    %c0_16 = arith.constant 0 : index
    %c0_17 = arith.constant 0 : index
    %25 = vector.load %arg6[%24, %c0, %c0_15, %c0_16, %c0_17] : memref<2x4x10x16x384xbf16, #tpu.memory_space<vmem>>, vector<1x2x8x16x384xbf16>
    %26 = vector.shape_cast %25 : vector<1x2x8x16x384xbf16> to vector<2x8x16x384xbf16>
    %27 = vector.shape_cast %26 : vector<2x8x16x384xbf16> to vector<256x384xbf16>
    %c0_18 = arith.constant 0 : index
    %c0_19 = arith.constant 0 : index
    %c0_20 = arith.constant 0 : index
    %c0_21 = arith.constant 0 : index
    %28 = vector.load %arg7[%c0_18, %c0_19, %c0_20, %c0_21] : memref<3x3x384x128xbf16, #tpu.memory_space<vmem>>, vector<1x1x384x128xbf16>
    %29 = vector.shape_cast %28 : vector<1x1x384x128xbf16> to vector<384x128xbf16>
    %cst = arith.constant dense<0.000000e+00> : vector<256x128xf32>
    %30 = tpu.matmul %27, %29, %cst {dimension_numbers = #tpu.dot_dimension_numbers<[1], [0], [0], [1], [0, 0, 1, 1], [], []>} : vector<256x384xbf16>, vector<384x128xbf16>, vector<256x128xf32> -> vector<256x128xf32>
    %c0_22 = arith.constant 0 : index
    %c0_23 = arith.constant 0 : index
    %31 = vector.load %arg8[%c0_22, %c0_23] : memref<256x128xf32, #tpu.memory_space<vmem>>, vector<256x128xf32>
    tpu.vector_store %arg8[%c0_22, %c0_23], %30 {strides = array<i32>} : memref<256x128xf32, #tpu.memory_space<vmem>>, vector<256x128xf32>,
    %32 = arith.index_cast %9 : i32 to index
    %c0_24 = arith.constant 0 : index
    %c1 = arith.constant 1 : index
    %c0_25 = arith.constant 0 : index
    %c0_26 = arith.constant 0 : index
    %33 = vector.load %arg6[%32, %c0_24, %c1, %c0_25, %c0_26] : memref<2x4x10x16x384xbf16, #tpu.memory_space<vmem>>, vector<1x2x8x16x384xbf16>
    %34 = vector.shape_cast %33 : vector<1x2x8x16x384xbf16> to vector<2x8x16x384xbf16>
    %35 = vector.shape_cast %34 : vector<2x8x16x384xbf16> to vector<256x384xbf16>
    %c0_27 = arith.constant 0 : index
    %c1_28 = arith.constant 1 : index
    %c0_29 = arith.constant 0 : index
    %c0_30 = arith.constant 0 : index
    %36 = vector.load %arg7[%c0_27, %c1_28, %c0_29, %c0_30] : memref<3x3x384x128xbf16, #tpu.memory_space<vmem>>, vector<1x1x384x128xbf16>
    %37 = vector.shape_cast %36 : vector<1x1x384x128xbf16> to vector<384x128xbf16>
    %cst_31 = arith.constant dense<0.000000e+00> : vector<256x128xf32>
    %38 = tpu.matmul %35, %37, %cst_31 {dimension_numbers = #tpu.dot_dimension_numbers<[1], [0], [0], [1], [0, 0, 1, 1], [], []>} : vector<256x384xbf16>, vector<384x128xbf16>, vector<256x128xf32> -> vector<256x128xf32>
    %c0_32 = arith.constant 0 : index
    %c0_33 = arith.constant 0 : index
    %39 = vector.load %arg8[%c0_32, %c0_33] : memref<256x128xf32, #tpu.memory_space<vmem>>, vector<256x128xf32>
    %40 = arith.addf %39, %38 : vector<256x128xf32>
    %c0_34 = arith.constant 0 : index
    %c0_35 = arith.constant 0 : index
    %41 = vector.load %arg8[%c0_34, %c0_35] : memref<256x128xf32, #tpu.memory_space<vmem>>, vector<256x128xf32>
    tpu.vector_store %arg8[%c0_34, %c0_35], %40 {strides = array<i32>} : memref<256x128xf32, #tpu.memory_space<vmem>>, vector<256x128xf32>,
    %42 = arith.index_cast %9 : i32 to index
    %c0_36 = arith.constant 0 : index
    %c2 = arith.constant 2 : index
    %c0_37 = arith.constant 0 : index
    %c0_38 = arith.constant 0 : index
    %43 = vector.load %arg6[%42, %c0_36, %c2, %c0_37, %c0_38] : memref<2x4x10x16x384xbf16, #tpu.memory_space<vmem>>, vector<1x2x8x16x384xbf16>
    %44 = vector.shape_cast %43 : vector<1x2x8x16x384xbf16> to vector<2x8x16x384xbf16>
    %45 = vector.shape_cast %44 : vector<2x8x16x384xbf16> to vector<256x384xbf16>
    %c0_39 = arith.constant 0 : index
    %c2_40 = arith.constant 2 : index
    %c0_41 = arith.constant 0 : index
    %c0_42 = arith.constant 0 : index
    %46 = vector.load %arg7[%c0_39, %c2_40, %c0_41, %c0_42] : memref<3x3x384x128xbf16, #tpu.memory_space<vmem>>, vector<1x1x384x128xbf16>
    %47 = vector.shape_cast %46 : vector<1x1x384x128xbf16> to vector<384x128xbf16>
    %cst_43 = arith.constant dense<0.000000e+00> : vector<256x128xf32>
    %48 = tpu.matmul %45, %47, %cst_43 {dimension_numbers = #tpu.dot_dimension_numbers<[1], [0], [0], [1], [0, 0, 1, 1], [], []>} : vector<256x384xbf16>, vector<384x128xbf16>, vector<256x128xf32> -> vector<256x128xf32>
    %c0_44 = arith.constant 0 : index
    %c0_45 = arith.constant 0 : index
    %49 = vector.load %arg8[%c0_44, %c0_45] : memref<256x128xf32, #tpu.memory_space<vmem>>, vector<256x128xf32>
    %50 = arith.addf %49, %48 : vector<256x128xf32>
    %c0_46 = arith.constant 0 : index
    %c0_47 = arith.constant 0 : index
    %51 = vector.load %arg8[%c0_46, %c0_47] : memref<256x128xf32, #tpu.memory_space<vmem>>, vector<256x128xf32>
    tpu.vector_store %arg8[%c0_46, %c0_47], %50 {strides = array<i32>} : memref<256x128xf32, #tpu.memory_space<vmem>>, vector<256x128xf32>,
    %52 = arith.index_cast %9 : i32 to index
    %c1_48 = arith.constant 1 : index
    %c0_49 = arith.constant 0 : index
    %c0_50 = arith.constant 0 : index
    %c0_51 = arith.constant 0 : index
    %53 = vector.load %arg6[%52, %c1_48, %c0_49, %c0_50, %c0_51] : memref<2x4x10x16x384xbf16, #tpu.memory_space<vmem>>, vector<1x2x8x16x384xbf16>
    %54 = vector.shape_cast %53 : vector<1x2x8x16x384xbf16> to vector<2x8x16x384xbf16>
    %55 = vector.shape_cast %54 : vector<2x8x16x384xbf16> to vector<256x384xbf16>
    %c1_52 = arith.constant 1 : index
    %c0_53 = arith.constant 0 : index
    %c0_54 = arith.constant 0 : index
    %c0_55 = arith.constant 0 : index
    %56 = vector.load %arg7[%c1_52, %c0_53, %c0_54, %c0_55] : memref<3x3x384x128xbf16, #tpu.memory_space<vmem>>, vector<1x1x384x128xbf16>
    %57 = vector.shape_cast %56 : vector<1x1x384x128xbf16> to vector<384x128xbf16>
    %cst_56 = arith.constant dense<0.000000e+00> : vector<256x128xf32>
    %58 = tpu.matmul %55, %57, %cst_56 {dimension_numbers = #tpu.dot_dimension_numbers<[1], [0], [0], [1], [0, 0, 1, 1], [], []>} : vector<256x384xbf16>, vector<384x128xbf16>, vector<256x128xf32> -> vector<256x128xf32>
    %c0_57 = arith.constant 0 : index
    %c0_58 = arith.constant 0 : index
    %59 = vector.load %arg8[%c0_57, %c0_58] : memref<256x128xf32, #tpu.memory_space<vmem>>, vector<256x128xf32>
    %60 = arith.addf %59, %58 : vector<256x128xf32>
    %c0_59 = arith.constant 0 : index
    %c0_60 = arith.constant 0 : index
    %61 = vector.load %arg8[%c0_59, %c0_60] : memref<256x128xf32, #tpu.memory_space<vmem>>, vector<256x128xf32>
    tpu.vector_store %arg8[%c0_59, %c0_60], %60 {strides = array<i32>} : memref<256x128xf32, #tpu.memory_space<vmem>>, vector<256x128xf32>,
    %62 = arith.index_cast %9 : i32 to index
    %c1_61 = arith.constant 1 : index
    %c1_62 = arith.constant 1 : index
    %c0_63 = arith.constant 0 : index
    %c0_64 = arith.constant 0 : index
    %63 = vector.load %arg6[%62, %c1_61, %c1_62, %c0_63, %c0_64] : memref<2x4x10x16x384xbf16, #tpu.memory_space<vmem>>, vector<1x2x8x16x384xbf16>
    %64 = vector.shape_cast %63 : vector<1x2x8x16x384xbf16> to vector<2x8x16x384xbf16>
    %65 = vector.shape_cast %64 : vector<2x8x16x384xbf16> to vector<256x384xbf16>
    %c1_65 = arith.constant 1 : index
    %c1_66 = arith.constant 1 : index
    %c0_67 = arith.constant 0 : index
    %c0_68 = arith.constant 0 : index
    %66 = vector.load %arg7[%c1_65, %c1_66, %c0_67, %c0_68] : memref<3x3x384x128xbf16, #tpu.memory_space<vmem>>, vector<1x1x384x128xbf16>
    %67 = vector.shape_cast %66 : vector<1x1x384x128xbf16> to vector<384x128xbf16>
    %cst_69 = arith.constant dense<0.000000e+00> : vector<256x128xf32>
    %68 = tpu.matmul %65, %67, %cst_69 {dimension_numbers = #tpu.dot_dimension_numbers<[1], [0], [0], [1], [0, 0, 1, 1], [], []>} : vector<256x384xbf16>, vector<384x128xbf16>, vector<256x128xf32> -> vector<256x128xf32>
    %c0_70 = arith.constant 0 : index
    %c0_71 = arith.constant 0 : index
    %69 = vector.load %arg8[%c0_70, %c0_71] : memref<256x128xf32, #tpu.memory_space<vmem>>, vector<256x128xf32>
    %70 = arith.addf %69, %68 : vector<256x128xf32>
    %c0_72 = arith.constant 0 : index
    %c0_73 = arith.constant 0 : index
    %71 = vector.load %arg8[%c0_72, %c0_73] : memref<256x128xf32, #tpu.memory_space<vmem>>, vector<256x128xf32>
    tpu.vector_store %arg8[%c0_72, %c0_73], %70 {strides = array<i32>} : memref<256x128xf32, #tpu.memory_space<vmem>>, vector<256x128xf32>,
    %72 = arith.index_cast %9 : i32 to index
    %c1_74 = arith.constant 1 : index
    %c2_75 = arith.constant 2 : index
    %c0_76 = arith.constant 0 : index
    %c0_77 = arith.constant 0 : index
    %73 = vector.load %arg6[%72, %c1_74, %c2_75, %c0_76, %c0_77] : memref<2x4x10x16x384xbf16, #tpu.memory_space<vmem>>, vector<1x2x8x16x384xbf16>
    %74 = vector.shape_cast %73 : vector<1x2x8x16x384xbf16> to vector<2x8x16x384xbf16>
    %75 = vector.shape_cast %74 : vector<2x8x16x384xbf16> to vector<256x384xbf16>
    %c1_78 = arith.constant 1 : index
    %c2_79 = arith.constant 2 : index
    %c0_80 = arith.constant 0 : index
    %c0_81 = arith.constant 0 : index
    %76 = vector.load %arg7[%c1_78, %c2_79, %c0_80, %c0_81] : memref<3x3x384x128xbf16, #tpu.memory_space<vmem>>, vector<1x1x384x128xbf16>
    %77 = vector.shape_cast %76 : vector<1x1x384x128xbf16> to vector<384x128xbf16>
    %cst_82 = arith.constant dense<0.000000e+00> : vector<256x128xf32>
    %78 = tpu.matmul %75, %77, %cst_82 {dimension_numbers = #tpu.dot_dimension_numbers<[1], [0], [0], [1], [0, 0, 1, 1], [], []>} : vector<256x384xbf16>, vector<384x128xbf16>, vector<256x128xf32> -> vector<256x128xf32>
    %c0_83 = arith.constant 0 : index
    %c0_84 = arith.constant 0 : index
    %79 = vector.load %arg8[%c0_83, %c0_84] : memref<256x128xf32, #tpu.memory_space<vmem>>, vector<256x128xf32>
    %80 = arith.addf %79, %78 : vector<256x128xf32>
    %c0_85 = arith.constant 0 : index
    %c0_86 = arith.constant 0 : index
    %81 = vector.load %arg8[%c0_85, %c0_86] : memref<256x128xf32, #tpu.memory_space<vmem>>, vector<256x128xf32>
    tpu.vector_store %arg8[%c0_85, %c0_86], %80 {strides = array<i32>} : memref<256x128xf32, #tpu.memory_space<vmem>>, vector<256x128xf32>,
    %82 = arith.index_cast %9 : i32 to index
    %c2_87 = arith.constant 2 : index
    %c0_88 = arith.constant 0 : index
    %c0_89 = arith.constant 0 : index
    %c0_90 = arith.constant 0 : index
    %83 = vector.load %arg6[%82, %c2_87, %c0_88, %c0_89, %c0_90] : memref<2x4x10x16x384xbf16, #tpu.memory_space<vmem>>, vector<1x2x8x16x384xbf16>
    %84 = vector.shape_cast %83 : vector<1x2x8x16x384xbf16> to vector<2x8x16x384xbf16>
    %85 = vector.shape_cast %84 : vector<2x8x16x384xbf16> to vector<256x384xbf16>
    %c2_91 = arith.constant 2 : index
    %c0_92 = arith.constant 0 : index
    %c0_93 = arith.constant 0 : index
    %c0_94 = arith.constant 0 : index
    %86 = vector.load %arg7[%c2_91, %c0_92, %c0_93, %c0_94] : memref<3x3x384x128xbf16, #tpu.memory_space<vmem>>, vector<1x1x384x128xbf16>
    %87 = vector.shape_cast %86 : vector<1x1x384x128xbf16> to vector<384x128xbf16>
    %cst_95 = arith.constant dense<0.000000e+00> : vector<256x128xf32>
    %88 = tpu.matmul %85, %87, %cst_95 {dimension_numbers = #tpu.dot_dimension_numbers<[1], [0], [0], [1], [0, 0, 1, 1], [], []>} : vector<256x384xbf16>, vector<384x128xbf16>, vector<256x128xf32> -> vector<256x128xf32>
    %c0_96 = arith.constant 0 : index
    %c0_97 = arith.constant 0 : index
    %89 = vector.load %arg8[%c0_96, %c0_97] : memref<256x128xf32, #tpu.memory_space<vmem>>, vector<256x128xf32>
    %90 = arith.addf %89, %88 : vector<256x128xf32>
    %c0_98 = arith.constant 0 : index
    %c0_99 = arith.constant 0 : index
    %91 = vector.load %arg8[%c0_98, %c0_99] : memref<256x128xf32, #tpu.memory_space<vmem>>, vector<256x128xf32>
    tpu.vector_store %arg8[%c0_98, %c0_99], %90 {strides = array<i32>} : memref<256x128xf32, #tpu.memory_space<vmem>>, vector<256x128xf32>,
    %92 = arith.index_cast %9 : i32 to index
    %c2_100 = arith.constant 2 : index
    %c1_101 = arith.constant 1 : index
    %c0_102 = arith.constant 0 : index
    %c0_103 = arith.constant 0 : index
    %93 = vector.load %arg6[%92, %c2_100, %c1_101, %c0_102, %c0_103] : memref<2x4x10x16x384xbf16, #tpu.memory_space<vmem>>, vector<1x2x8x16x384xbf16>
    %94 = vector.shape_cast %93 : vector<1x2x8x16x384xbf16> to vector<2x8x16x384xbf16>
    %95 = vector.shape_cast %94 : vector<2x8x16x384xbf16> to vector<256x384xbf16>
    %c2_104 = arith.constant 2 : index
    %c1_105 = arith.constant 1 : index
    %c0_106 = arith.constant 0 : index
    %c0_107 = arith.constant 0 : index
    %96 = vector.load %arg7[%c2_104, %c1_105, %c0_106, %c0_107] : memref<3x3x384x128xbf16, #tpu.memory_space<vmem>>, vector<1x1x384x128xbf16>
    %97 = vector.shape_cast %96 : vector<1x1x384x128xbf16> to vector<384x128xbf16>
    %cst_108 = arith.constant dense<0.000000e+00> : vector<256x128xf32>
    %98 = tpu.matmul %95, %97, %cst_108 {dimension_numbers = #tpu.dot_dimension_numbers<[1], [0], [0], [1], [0, 0, 1, 1], [], []>} : vector<256x384xbf16>, vector<384x128xbf16>, vector<256x128xf32> -> vector<256x128xf32>
    %c0_109 = arith.constant 0 : index
    %c0_110 = arith.constant 0 : index
    %99 = vector.load %arg8[%c0_109, %c0_110] : memref<256x128xf32, #tpu.memory_space<vmem>>, vector<256x128xf32>
    %100 = arith.addf %99, %98 : vector<256x128xf32>
    %c0_111 = arith.constant 0 : index
    %c0_112 = arith.constant 0 : index
    %101 = vector.load %arg8[%c0_111, %c0_112] : memref<256x128xf32, #tpu.memory_space<vmem>>, vector<256x128xf32>
    tpu.vector_store %arg8[%c0_111, %c0_112], %100 {strides = array<i32>} : memref<256x128xf32, #tpu.memory_space<vmem>>, vector<256x128xf32>,
    %102 = arith.index_cast %9 : i32 to index
    %c2_113 = arith.constant 2 : index
    %c2_114 = arith.constant 2 : index
    %c0_115 = arith.constant 0 : index
    %c0_116 = arith.constant 0 : index
    %103 = vector.load %arg6[%102, %c2_113, %c2_114, %c0_115, %c0_116] : memref<2x4x10x16x384xbf16, #tpu.memory_space<vmem>>, vector<1x2x8x16x384xbf16>
    %104 = vector.shape_cast %103 : vector<1x2x8x16x384xbf16> to vector<2x8x16x384xbf16>
    %105 = vector.shape_cast %104 : vector<2x8x16x384xbf16> to vector<256x384xbf16>
    %c2_117 = arith.constant 2 : index
    %c2_118 = arith.constant 2 : index
    %c0_119 = arith.constant 0 : index
    %c0_120 = arith.constant 0 : index
    %106 = vector.load %arg7[%c2_117, %c2_118, %c0_119, %c0_120] : memref<3x3x384x128xbf16, #tpu.memory_space<vmem>>, vector<1x1x384x128xbf16>
    %107 = vector.shape_cast %106 : vector<1x1x384x128xbf16> to vector<384x128xbf16>
    %cst_121 = arith.constant dense<0.000000e+00> : vector<256x128xf32>
    %108 = tpu.matmul %105, %107, %cst_121 {dimension_numbers = #tpu.dot_dimension_numbers<[1], [0], [0], [1], [0, 0, 1, 1], [], []>} : vector<256x384xbf16>, vector<384x128xbf16>, vector<256x128xf32> -> vector<256x128xf32>
    %c0_122 = arith.constant 0 : index
    %c0_123 = arith.constant 0 : index
    %109 = vector.load %arg8[%c0_122, %c0_123] : memref<256x128xf32, #tpu.memory_space<vmem>>, vector<256x128xf32>
    %110 = arith.addf %109, %108 : vector<256x128xf32>
    %c0_124 = arith.constant 0 : index
    %c0_125 = arith.constant 0 : index
    %111 = vector.load %arg8[%c0_124, %c0_125] : memref<256x128xf32, #tpu.memory_space<vmem>>, vector<256x128xf32>
    tpu.vector_store %arg8[%c0_124, %c0_125], %110 {strides = array<i32>} : memref<256x128xf32, #tpu.memory_space<vmem>>, vector<256x128xf32>,
    %c0_126 = arith.constant 0 : index
    %c0_127 = arith.constant 0 : index
    %112 = vector.load %arg8[%c0_126, %c0_127] : memref<256x128xf32, #tpu.memory_space<vmem>>, vector<256x128xf32>
    %c0_128 = arith.constant 0 : index
    %c0_129 = arith.constant 0 : index
    %113 = vector.load %arg4[%c0_128, %c0_129] : memref<1x128xf32, #tpu.memory_space<vmem>>, vector<1x128xf32>
    %114 = vector.broadcast %113 : vector<1x128xf32> to vector<256x128xf32>
    %115 = arith.addf %112, %114 : vector<256x128xf32>
    %116 = vector.shape_cast %115 : vector<256x128xf32> to vector<2x8x16x128xf32>
    %c0_130 = arith.constant 0 : index
    %c0_131 = arith.constant 0 : index
    %c0_132 = arith.constant 0 : index
    %c0_133 = arith.constant 0 : index
    %c0_134 = arith.constant 0 : index
    %117 = vector.load %arg5[%c0_130, %c0_131, %c0_132, %c0_133, %c0_134] : memref<1x2x8x16x128xf32, #tpu.memory_space<vmem>>, vector<1x2x8x16x128xf32>
    %118 = vector.shape_cast %117 : vector<1x2x8x16x128xf32> to vector<2x8x16x128xf32>
    %119 = vector.shape_cast %116 : vector<2x8x16x128xf32> to vector<1x2x8x16x128xf32>
    tpu.vector_store %arg5[%c0_130, %c0_131, %c0_132, %c0_133, %c0_134], %119 {strides = array<i32>} : memref<1x2x8x16x128xf32, #tpu.memory_space<vmem>>, vector<1x2x8x16x128xf32>,
    return
  }
  func.func @transform_2(%arg0: i32, %arg1: i32) -> (i32, i32) {
    %c0_i32 = arith.constant 0 : i32
    %c0_i32_0 = arith.constant 0 : i32
    %c0_i32_1 = arith.constant 0 : i32
    return %c0_i32, %c0_i32_0 : i32, i32
  }
  func.func @transform_3(%arg0: i32, %arg1: i32) -> (i32, i32, i32, i32, i32) {
    %c0_i32 = arith.constant 0 : i32
    %c0_i32_0 = arith.constant 0 : i32
    %c0_i32_1 = arith.constant 0 : i32
    %c0_i32_2 = arith.constant 0 : i32
    return %arg0, %arg1, %c0_i32, %c0_i32_0, %c0_i32_1 : i32, i32, i32, i32, i32
  }
}

</mosaic_0001>

<bundles_post_ra>
// kernel: tpu_custom_call.1
= control target key start
LH: loop header
LB: loop body
LE: loop exit
PB: predicated region body
PF: predicated region fallthrough
CT: control target
= control target key end

     0   :  { %s15105_s0 = inlined_call_operand.hbm [shape: bf16[2,10,10,16,384], index: 0, kind: input, shape index: {}]   ;;  %s15106_s1 = inlined_call_operand.hbm [shape: bf16[3,3,384,128], index: 1, kind: input, shape index: {}]   ;;  %s15107_s2 = inlined_call_operand.hbm [shape: f32[1,128], index: 2, kind: input, shape index: {}]   ;;  %s15108_s3 = inlined_call_operand.hbm [shape: f32[2,8,8,16,128], index: 3, kind: output, shape index: {}]  }
   0x1   :  { %15116 = sst [smem:[#allocation42_spill]] %s15106_s1 }
   0x2   :  { %15117 = sst [smem:[#allocation43_spill]] %s15107_s2 }
   0x3   :  { %8 = vsyncpa [#allocation7], 0 }
   0x4   :  { %9 = vsyncpa [#allocation8], 0 }
   0x5   :  { %11 = vsyncpa [#allocation8 + $0x1], 0  ;;  %s12643_s12 = smov 0   ;;  %s12645_s13 = smov 0  }
   0x6   :  { %s12647_s14 = smov 0   ;;  %s12649_s15 = smov 0  }
   0x7   :  { %s12651_s16 = smov 0   ;;  %s12653_s17 = smov 0  }
   0x8   :  { %s12655_s18 = smov 0   ;;  %s12657_s19 = smov 0  }
   0x9 LB: > { %15118 = sst [smem:[#allocation22_spill]] %s12607_s17  ;;  %s8811_s20 = sadd.s32 4294967295, %s12615_s19   ;;  %s12615_s19 = sphi %s12657_s19, %s17_s19   ;;  %s12611_s18 = sphi %s12655_s18, %s15244_s18   ;;  %s12607_s17 = sphi %s12653_s17, %s15243_s17   ;;  %s12603_s16 = sphi %s12651_s16, %s15242_s16   ;;  %s12599_s15 = sphi %s12649_s15, %s15241_s15   ;;  %s12595_s14 = sphi %s12647_s14, %s15247_s14   ;;  %s12591_s13 = sphi %s12645_s13, %s15246_s13   ;;  %s12587_s12 = sphi %s12643_s12, %s15245_s12  }
   0xa   : > { %15119 = sst [smem:[#allocation23_spill]] %s12611_s18  ;;  %s8812_s21 = sadd.s32 4294967294, %s12615_s19  }
   0xb   : > { %s26_s22 = sadd.s32 1, %s12607_s17  ;;  %s29_s23 = sadd.s32 1, %s12611_s18 }
   0xc   : > { %p27_p0 = scmp.ge.s32.totalorder %s26_s22, 4  ;;  %s59_s24 = sadd.s32 1, %s12595_s14 }
   0xd   : > { %p69_p1 = scmp.ne.s32.totalorder %s12595_s14, %s12591_s13  ;;  %p70_p2 = scmp.eq.s32.totalorder %s8811_s20, 7 }
   0xe   : > { %s15249_s22 = smov (%p27_p0, %s26_s22), 0  ;;  %s15251_s23 = smov (!%p27_p0, %s29_s23), %s12611_s18 }
   0xf   : > { %15120 = sst [smem:[#allocation24_spill]] %s15249_s22  ;;  %s55_s25 = ssub.s32 %s12607_s17, %s15249_s22 }
  0x10   : > { %p12695_p3 = por %p70_p2, %p69_p1  ;;  %p31_p4 = scmp.ge.s32.totalorder %s15251_s23, 2 }
  0x11   : > { %p75_p5 = scmp.ne.s32.totalorder %s12591_s13, %s12587_s12  ;;  %p76_p6 = scmp.eq.s32.totalorder %s8812_s21, 7 }
  0x12   : > { %p8813_p7 = scmp.ge.s32.totalorder %s12615_s19, 1  ;;  %s15253_s23 = smov (%p31_p4, %s15251_s23), 0 }
  0x13   : > { %15122 = sst [smem:[#allocation25_spill]] %s15253_s23  ;;  %p12704_p8 = por %p76_p6, %p75_p5 }
  0x14   : > { %p83_p9 = scmp.lt.s32.totalorder %s12615_s19, 9  ;;  %s54_s28 = ssub.s32 %s12611_s18, %s15253_s23 }
  0x15   : > { %s15123_s27 = scalar_select %p12704_p8, 1, 0 }
  0x16   : > { %s56_s29 = sor.u32 %s55_s25, %s54_s28  ;;  %p12711_p10 = pnand %p8813_p7, %p83_p9 }
  0x17   : > { %p57_p11 = scmp.eq.s32.totalorder %s56_s29, 0  ;;  %p12715_p12 = scmp.eq.s32.totalorder %s8811_s20, 0 }
  0x18   : > { %p11694_p13 = pneg %p12711_p10  ;;  %s12617_s6 = smov [#allocation6]  }
  0x19   : > { %s12722_s5 = scalar_select %p57_p11, %s12595_s14, %s59_s24  }
  0x1a   : > { %s96_s7 = sshll.u32 %s12617_s6, 4  ;;  %p11695_p0 = pnand %p12715_p12, %p11694_p13  ;;  %s97_s7 = int_to_ptr.vmem [resolvable:$true] %s96_s7 }
  0x1b   : > { %s12421_s8 = scalar_lea.vmem %s97_s7, 16  ;;  %s12428_s9 = scalar_lea.vmem %s97_s7, 32 }
  0x1c   : > { %p12412_p1 = pneg %p11695_p0  ;;  %p12422_p2 = scmp.ne.s32.totalorder %s97_s7, %s12421_s8 }
  0x1d   : > { %p12429_p6 = scmp.lt.s32.totalorder %s97_s7, %s97_s7  ;;  %p12430_p7 = scmp.lt.s32.totalorder %s12428_s9, %s12421_s8 }
  0x1e   : > { %p12424_p4 = pnand %p12422_p2, %p12412_p1 }
  0x1f   : > { %p12431_p9 = por %p12430_p7, %p12429_p6 }
  0x20   : > { %p12425_p5 = pneg %p12424_p4 }
  0x22   : > { %p12432_p8 = pnand %p12431_p9, %p12425_p5 }
  0x24   : > { %12435 = shalt.err (!%p12432_p8)
}
  0x25   : > { %s15126_s2 = sld [smem:[#allocation43_spill]] }
  0x27   : > { %109 = sbr.rel (%p12711_p10) target bundleno = 1233 (0x4d1), region = 24 }
  0x2b   : > { %11697 = dma.hbm_to_vmem [thread:$0]  (!%p11695_p0), %s15126_s2, 16, %s97_s7, [#allocation7]  }
  0x2c   : > { %12572 = dma.done.wait (%p12715_p12), [#allocation7], 16  }
  0x2d   : > { %12574 = vsyncadd (%p12715_p12), [#allocation7], 4294967280  ;;  %s15109_s20 = sand.u32 1, %s12591_s13   ;;  %p126_p8 = scmp.lt.s32.totalorder %s12599_s15, 0 }
  0x2e   : > { %s12739_s21 = sshll.u32 %s15109_s20, 8  ;;  %s127_s24 = ssub.s32 0, %s12599_s15 }
  0x2f   : > { %s8818_s25 = smin.u32 %s12599_s15, %s127_s24  ;;  %p11704_p10 = scmp.eq.s32.totalorder %s12599_s15, 0 }
  0x30   : > { %s129_s28 = sand.u32 1, %s8818_s25   ;;  %s10006_s30 = smul.u32 38400, %s12603_s16 }
  0x31   : > { %s130_s29 = ssub.s32 0, %s129_s28  ;;  %s12618_s9 = smov [#allocation2]  }
  0x32   : > { %s15255_s29 = smov (!%p126_p8, %s130_s29), %s129_s28  ;;  %s144_s8 = scalar_lea.hbm %s15105_s0, %s10006_s30 }
  0x33   : > { %p8820_p11 = scmp.lt.s32.totalorder %s15255_s29, 0  ;;  %s136_s4 = sadd.s32 2, %s15255_s29 }
  0x34   : > { %s152_s10 = sshll.u32 %s12618_s9, 4  ;;  %s12436_s11 = scalar_lea.hbm %s144_s8, 15360  ;;  %s12750_s10 = int_to_ptr.vmem [resolvable:$true] %s152_s10 }
  0x35   : > { %s15257_s4 = smov (!%p8820_p11, %s136_s4), %s15255_s29  ;;  %p12437_p12 = scmp.ne.s32.totalorder %s144_s8, %s12436_s11 }
  0x36   : > { %s15111_s28 = scalar_lea.hbm %s15105_s0, 76800  ;;  %p12441_p1 = scmp.lt.s32.totalorder %s144_s8, %s15105_s0 }
  0x37   : > { %p12438_p13 = pnand %p12437_p12, %p11704_p10  ;;  %p12442_p2 = scmp.lt.s32.totalorder %s15111_s28, %s12436_s11 }
  0x39   : > { %p12439_p0 = pneg %p12438_p13  ;;  %p12443_p4 = por %p12442_p2, %p12441_p1 }
  0x3b   : > { %p12444_p5 = pnand %p12443_p4, %p12439_p0 }
  0x3d   : > { %12447 = shalt.err (!%p12444_p5)  }
  0x3e   : > { %s12448_s29 = scalar_lea.vmem %s12750_s10, 15360  ;;  %s15110_s2 = scalar_lea.vmem %s12750_s10, 30720 }
  0x3f   : > { %p12449_p6 = scmp.ne.s32.totalorder %s12750_s10, %s12448_s29  ;;  %p12455_p8 = scmp.lt.s32.totalorder %s12750_s10, %s12750_s10 }
  0x40   : > { %p12456_p11 = scmp.lt.s32.totalorder %s15110_s2, %s12448_s29 }
  0x41   : > { %p12450_p7 = pnand %p12449_p6, %p11704_p10 }
  0x42   : > { %p12457_p12 = por %p12456_p11, %p12455_p8 }
  0x43   : > { %p12451_p9 = pneg %p12450_p7 }
  0x45   : > { %p12458_p13 = pnand %p12457_p12, %p12451_p9 }
  0x47   : > { %12461 = shalt.err (!%p12458_p13)  }
  0x48   : > { %11687 = dma.hbm_to_vmem [thread:$0]  (%p11704_p10), %s144_s8, 15360, %s12750_s10, [#allocation5] }
  0x49   : > { %s12619_s20 = smov [#allocation3]  }
  0x4a   : > { %s164_s7 = sshll.u32 %s12619_s20, 4  ;;  %s165_s7 = int_to_ptr.vmem [resolvable:$true] %s164_s7 }
  0x4b   : > { %s12472_s9 = scalar_lea.vmem %s165_s7, 27648  ;;  %p12479_p4 = scmp.lt.s32.totalorder %s165_s7, %s165_s7 }
  0x4c   : > { %p12473_p0 = scmp.ne.s32.totalorder %s165_s7, %s12472_s9  ;;  %p12480_p5 = scmp.lt.s32.totalorder %s12472_s9, %s12472_s9 }
  0x4e   : > { %p12474_p1 = pnand %p12473_p0, %p11704_p10  ;;  %p12481_p6 = por %p12480_p5, %p12479_p4 }
  0x50   : > { %p12475_p2 = pneg %p12474_p1 }
  0x52   : > { %p12482_p7 = pnand %p12481_p6, %p12475_p2 }
  0x54   : > { %12485 = shalt.err (!%p12482_p7)  }
  0x55   : > { %s15127_s1 = sld [smem:[#allocation42_spill]]  ;;  %s12784_s8 = scalar_lea.vmem [#allocation9], %s12739_s21 }
  0x5b   : > { %11688 = dma.hbm_to_vmem [thread:$0]  (%p11704_p10), %s15127_s1, 27648, %s165_s7, [#allocation5 + $0x2] }
  0x5c   : > { %12576 = dma.done.wait (%p11704_p10), [#allocation5 + $0x2], 27648 }
  0x5d   : > { %12578 = vsyncadd (%p11704_p10), [#allocation5 + $0x2], 4294939648  ;;  %s174_s25 = sadd.s32 1, %s12599_s15  ;;  %s179_s30 = ssub.s32 1, %s15257_s4 }
  0x5e   : > { %s8721_s6 = smul.u32 120, %s12599_s15  ;;  %p12794_p9 = scmp.lt.s32.totalorder %s174_s25, 4 }
  0x5f   : > { %s8722_s29 = smul.u32 600, %s12603_s16  ;;  %s189_s22 = scalar_lea.sflag [#allocation5], %s179_s30 }
  0x60   : > { %s10007_s21 = smul.u32 960, %s179_s30 }
  0x61   : > { %s8723_s7 = sadd.s32 %s8722_s29, %s8721_s6 }
  0x62   : > { %s8824_s9 = sshll.u32 %s8723_s7, 6  ;;  %s188_s28 = scalar_lea.vmem [#allocation2], %s10007_s21 }
  0x63   : > { %s8725_s2 = scalar_lea.hbm %s15105_s0, %s8824_s9  ;;  %s197_s1 = sshll.u32 %s188_s28, 4  ;;  %s198_s1 = int_to_ptr.vmem [resolvable:$true] %s197_s1 }
  0x64   : > { %s8726_s23 = scalar_lea.hbm %s8725_s2, 7680  ;;  %s12512_s18 = scalar_lea.hbm %s8725_s2, 23040 }
  0x65   : > { %p12487_p10 = scmp.ne.s32.totalorder %s8726_s23, %s12512_s18  ;;  %p12491_p12 = scmp.lt.s32.totalorder %s8726_s23, %s15105_s0 }
  0x66   : > { %s15129_s7 = scalar_lea.hbm %s15105_s0, 76800 }
  0x67   : > { %p12488_p8 = pnand %p12487_p10, %p12794_p9  ;;  %p12492_p13 = scmp.lt.s32.totalorder %s15129_s7, %s12512_s18 }
  0x69   : > { %p12489_p11 = pneg %p12488_p8  ;;  %p12493_p0 = por %p12492_p13, %p12491_p12 }
  0x6b   : > { %p12494_p1 = pnand %p12493_p0, %p12489_p11 }
  0x6d   : > { %12497 = shalt.err (!%p12494_p1)  }
  0x6e   : > { %s12498_s28 = scalar_lea.vmem %s198_s1, 15360  ;;  %p12505_p6 = scmp.lt.s32.totalorder %s198_s1, %s12750_s10 }
  0x6f   : > { %p12499_p2 = scmp.ne.s32.totalorder %s198_s1, %s12498_s28  ;;  %s15130_s2 = scalar_lea.vmem %s12750_s10, 30720 }
  0x70   : > { %p12506_p7 = scmp.lt.s32.totalorder %s15130_s2, %s12498_s28 }
  0x71   : > { %p12500_p4 = pnand %p12499_p2, %p12794_p9 }
  0x72   : > { %p12507_p10 = por %p12506_p7, %p12505_p6 }
  0x73   : > { %p12501_p5 = pneg %p12500_p4 }
  0x75   : > { %p12508_p8 = pnand %p12507_p10, %p12501_p5 }
  0x77   : > { %12511 = shalt.err (!%p12508_p8)  }
  0x78   : > { %11691 = dma.hbm_to_vmem [thread:$0]  (%p12794_p9), %s8726_s23, 15360, %s198_s1, %s189_s22 }
  0x79   : > { %s201_s17 = scalar_lea.sflag [#allocation5], %s15257_s4 }
  0x7a   : > { %12579 = dma.done.wait %s201_s17, 15360 }
  0x7b   : > { %12580 = vsyncadd %s201_s17, 4294951936  ;;  %v11776_v0 = vld [vmem:[#allocation3 + $0x78] sm:$0xff]   ;;  %v11778_v2 = vld [vmem:[#allocation3 + $0x70] sm:$0xff]   ;;  %s10008_s1 = smul.u32 960, %s15257_s4  ;;  %s10009_s22 = sshll.u32 %s12599_s15, 5 }
  0x7c   : > { %v11777_v1 = vld [vmem:[#allocation3 + $0x38] sm:$0xff]   ;;  %10010 = vmatprep.subr.bf16.mxu0 %v11776_v0  ;;  %11666 = vmatprep.subr.bf16.mxu1 %v11776_v0  ;;  %v11779_v3 = vld [vmem:[#allocation3 + $0x30] sm:$0xff]   ;;  %v11780_v4 = vld [vmem:[#allocation3 + $0x68] sm:$0xff]   ;;  %s9999_s23 = sshll.u32 %s12603_s16, 7  ;;  %s8669_s16 = sshll.u32 %s12784_s8, 4  ;;  %s15047_s16 = int_to_ptr.vmem [resolvable:$true] %s8669_s16 }
  0x7d   : > { %10011 = vmatpush3.bf16.msra.mxu0 %v11777_v1  ;;  %11674 = vmatpush3.bf16.msra.mxu1 %v11777_v1  ;;  %v11781_v5 = vld [vmem:[#allocation3 + $0x28] sm:$0xff]   ;;  %v11782_v6 = vld [vmem:[#allocation3 + $0x60] sm:$0xff]   ;;  %v11784_v8 = vld [vmem:[#allocation3 + $0x58] sm:$0xff]   ;;  %s12819_s18 = scalar_lea.vmem [#allocation2], %s10008_s1  ;;  %s8666_s4 = sadd.s32 %s10009_s22, %s9999_s23 }
  0x7e   : > { %10012 = vmatprep.subr.bf16.mxu0 %v11778_v2  ;;  %11667 = vmatprep.subr.bf16.mxu1 %v11778_v2  ;;  %v11783_v7 = vld [vmem:[#allocation3 + $0x20] sm:$0xff]   ;;  %v11785_v9 = vld [vmem:[#allocation3 + $0x18] sm:$0xff]   ;;  %v11786_v10 = vld [vmem:[#allocation3 + $0x50] sm:$0xff]   ;;  %s10000_s15 = sshll.u32 %s8666_s4, 7  ;;  %s15239_s21 = sand.u32 1, %s12591_s13  }
  0x7f   : > { %v11794_v11 = vld [vmem:[%s12819_s18 + $0x4] ss:$12 sps:$4 sm:$0xff]   ;;  %v11797_v12 = vld [vmem:[%s12819_s18 + $0x154] ss:$12 sps:$4 sm:$0xff]   ;;  %v11788_v14 = vld [vmem:[#allocation3 + $0x48] sm:$0xff]   ;;  %s15045_s20 = scalar_lea.hbm %s15108_s3, %s10000_s15  ;;  %s15054_s9 = scalar_lea.sflag [#allocation8], %s15239_s21 }
  0x80   : > { %v11787_v13 = vld [vmem:[#allocation3 + $0x10] sm:$0xff]   ;;  %755 = vmatprep.mubr.bf16.mxu0 %v11794_v11  ;;  %851 = vmatprep.mubr.bf16.mxu1 %v11797_v12  ;;  %v11789_v15 = vld [vmem:[#allocation3 + $0x8] sm:$0xff]   ;;  %v11790_v16 = vld [vmem:[#allocation3 + $0x40] sm:$0xff]   ;;  %s12513_s11 = scalar_lea.vmem %s15047_s16, 4096  ;;  %s12620_s24 = smov [#allocation9]  }
  0x81   : > { %10013 = vmatpush3.bf16.msra.mxu0 %v11779_v3  ;;  %11675 = vmatpush3.bf16.msra.mxu1 %v11779_v3  ;;  %v11791_v17 = vld [vmem:[#allocation3] sm:$0xff]   ;;  %v11798_v18 = vld [vmem:[#allocation3 + $0xb8] sm:$0xff]   ;;  %v11800_v22 = vld [vmem:[#allocation3 + $0xb0] sm:$0xff]   ;;  %p12514_p9 = scmp.ne.s32.totalorder %s15047_s16, %s12513_s11  ;;  %s12517_s25 = sshll.u32 %s12620_s24, 4  ;;  %s12518_s25 = int_to_ptr.vmem [resolvable:$false] %s12517_s25 }
  0x82   : > { %10014 = vmatprep.subr.bf16.mxu0 %v11780_v4  ;;  %11668 = vmatprep.subr.bf16.mxu1 %v11780_v4  ;;  %v11799_v19 = vld [vmem:[#allocation3 + $0x178] sm:$0xff]   ;;  %v11792_v20 = vld [vmem:[%s12819_s18] ss:$12 sps:$4 sm:$0xff]   ;;  %v11809_v25 = vld [vmem:[#allocation3 + $0x170] sm:$0xff]   ;;  %s12519_s6 = scalar_lea.vmem %s12518_s25, 8192  ;;  %p12520_p13 = scmp.lt.s32.totalorder %s15047_s16, %s12518_s25 }
  0x83   : > { %v11795_v21 = vld [vmem:[%s12819_s18 + $0x150] ss:$12 sps:$4 sm:$0xff]   ;;  %v11803_v24 = vld [vmem:[%s12819_s18 + $0x16c] ss:$12 sps:$4 sm:$0xff]   ;;  %v11806_v29 = vld [vmem:[%s12819_s18 + $0x168] ss:$12 sps:$4 sm:$0xff]   ;;  %p12515_p11 = pnand %p12514_p9, %p12695_p3  ;;  %p12521_p0 = scmp.lt.s32.totalorder %s12519_s6, %s12513_s11 }
  0x84   : > { %v12826_v23 = vld [vmem:[%s12819_s18 + $0x1c] ss:$12 sps:$4 sm:$0xff]   ;;  %v12831_v28 = vld [vmem:[%s12819_s18 + $0x18] ss:$12 sps:$4 sm:$0xff]   ;;  %v12835_v31 = vld [vmem:[%s12819_s18 + $0x34] ss:$12 sps:$4 sm:$0xff]  }
  0x85   : > { %10015 = vmatpush3.bf16.msra.mxu0 %v11781_v5  ;;  %11676 = vmatpush3.bf16.msra.mxu1 %v11781_v5  ;;  %v11807_v26 = vld [vmem:[#allocation3 + $0xa8] sm:$0xff]   ;;  %v11808_v30 = vld [vmem:[#allocation3 + $0xa0] sm:$0xff]   ;;  %v12841_v34 = vld [vmem:[%s12819_s18 + $0x30] ss:$12 sps:$4 sm:$0xff]   ;;  %p12516_p12 = pneg %p12515_p11  ;;  %p12522_p1 = por %p12521_p0, %p12520_p13 }
  0x86   : > { %10016 = vmatprep.subr.bf16.mxu0 %v11782_v6  ;;  %11669 = vmatprep.subr.bf16.mxu1 %v11782_v6  ;;  %v11825_v27 = vld [vmem:[#allocation3 + $0x168] sm:$0xff]   ;;  %v11812_v32 = vld [vmem:[%s12819_s18 + $0x184] ss:$12 sps:$4 sm:$0xff]   ;;  %v11816_v35 = vld [vmem:[#allocation3 + $0x98] sm:$0xff]  }
  0x87   : > { %v11834_v33 = vld [vmem:[#allocation3 + $0x160] sm:$0xff]   ;;  %v11817_v37 = vld [vmem:[#allocation3 + $0x90] sm:$0xff]   ;;  %v12845_v38 = vld [vmem:[%s12819_s18 + $0x4c] ss:$12 sps:$4 sm:$0xff]   ;;  %p12523_p2 = pnand %p12522_p1, %p12516_p12 }
  0x88   : > { %v11815_v36 = vld [vmem:[%s12819_s18 + $0x180] ss:$12 sps:$4 sm:$0xff]   ;;  %v11820_v39 = vld [vmem:[%s12819_s18 + $0x19c] ss:$12 sps:$4 sm:$0xff]   ;;  %v11823_v41 = vld [vmem:[%s12819_s18 + $0x198] ss:$12 sps:$4 sm:$0xff]  }
  0x89   : > { %10017 = vmatpush3.bf16.msra.mxu0 %v11783_v7  ;;  %11677 = vmatpush3.bf16.msra.mxu1 %v11783_v7  ;;  %v12851_v40 = vld [vmem:[%s12819_s18 + $0x48] ss:$12 sps:$4 sm:$0xff]   ;;  %v11847_v43 = vld [vmem:[#allocation3 + $0x158] sm:$0xff]   ;;  %v11826_v44 = vld [vmem:[#allocation3 + $0x80] sm:$0xff]  }
  0x8a   : > { %10018 = vmatprep.subr.bf16.mxu0 %v11784_v8  ;;  %11670 = vmatprep.subr.bf16.mxu1 %v11784_v8  ;;  %v11824_v42 = vld [vmem:[#allocation3 + $0x88] sm:$0xff]   ;;  %v12855_v45 = vld [vmem:[%s12819_s18 + $0x64] ss:$12 sps:$4 sm:$0xff]   ;;  %v11832_v49 = vld [vmem:[#allocation3 + $0x138] sm:$0xff]  }
  0x8b   : > { %v11829_v46 = vld [vmem:[%s12819_s18 + $0x8] ss:$12 sps:$4 sm:$0xff]   ;;  %v12861_v47 = vld [vmem:[%s12819_s18 + $0x60] ss:$12 sps:$4 sm:$0xff]   ;;  %v11833_v50 = vld [vmem:[#allocation3 + $0xf8] sm:$0xff]  }
  0x8c   : > { %v11831_v48 = vld [vmem:[%s12819_s18 + $0x20] ss:$12 sps:$4 sm:$0xff]   ;;  %v11857_v51 = vld [vmem:[#allocation3 + $0x150] sm:$0xff]   ;;  %v12865_v52 = vld [vmem:[%s12819_s18 + $0x7c] ss:$12 sps:$4 sm:$0xff]  }
  0x8d   : > { %10019 = vmatpush3.bf16.msra.mxu0 %v11785_v9  ;;  %11678 = vmatpush3.bf16.msra.mxu1 %v11785_v9  ;;  %v11837_v53 = vld [vmem:[%s12819_s18 + $0x38] ss:$12 sps:$4 sm:$0xff]   ;;  %v11840_v54 = vld [vmem:[#allocation3 + $0x130] sm:$0xff]   ;;  %v11848_v57 = vld [vmem:[#allocation3 + $0x128] sm:$0xff]  }
  0x8e   : > { %10020 = vmatprep.subr.bf16.mxu0 %v11786_v10  ;;  %11671 = vmatprep.subr.bf16.mxu1 %v11786_v10  ;;  %v11841_v55 = vld [vmem:[#allocation3 + $0xf0] sm:$0xff]   ;;  %v12871_v56 = vld [vmem:[%s12819_s18 + $0x78] ss:$12 sps:$4 sm:$0xff]   ;;  %v11870_v61 = vld [vmem:[#allocation3 + $0x148] sm:$0xff]  }
  0x8f   : > { %v11839_v58 = vld [vmem:[%s12819_s18 + $0x50] ss:$12 sps:$4 sm:$0xff]   ;;  %v12875_v59 = vld [vmem:[%s12819_s18 + $0x94] ss:$12 sps:$4 sm:$0xff]   ;;  %v11849_v62 = vld [vmem:[#allocation3 + $0xe8] sm:$0xff]  }
  0x90   : > { %v11844_v60 = vld [vmem:[%s12819_s18 + $0x68] ss:$12 sps:$4 sm:$0xff]   ;;  %v11855_v63 = vld [vmem:[#allocation3 + $0x120] sm:$0xff]   ;;  %v12881_v0 = vld [vmem:[%s12819_s18 + $0x90] ss:$12 sps:$4 sm:$0xff]  }
  0x91   : > { %10021 = vmatpush3.bf16.msra.mxu0 %v11787_v13  ;;  %11679 = vmatpush3.bf16.msra.mxu1 %v11787_v13  ;;  %v11846_v1 = vld [vmem:[%s12819_s18 + $0x80] ss:$12 sps:$4 sm:$0xff]   ;;  %v11863_v4 = vld [vmem:[#allocation3 + $0x118] sm:$0xff]   ;;  %v11871_v8 = vld [vmem:[#allocation3 + $0x110] sm:$0xff]  }
  0x92   : > { %10022 = vmatprep.subr.bf16.mxu0 %v11788_v14  ;;  %11672 = vmatprep.subr.bf16.mxu1 %v11788_v14  ;;  %v11856_v2 = vld [vmem:[#allocation3 + $0xe0] sm:$0xff]   ;;  %v12885_v3 = vld [vmem:[%s12819_s18 + $0xac] ss:$12 sps:$4 sm:$0xff]   ;;  %v12891_v9 = vld [vmem:[%s12819_s18 + $0xa8] ss:$12 sps:$4 sm:$0xff]  }
  0x93   : > { %v11852_v5 = vld [vmem:[%s12819_s18 + $0x98] ss:$12 sps:$4 sm:$0xff]   ;;  %v11854_v10 = vld [vmem:[%s12819_s18 + $0xb0] ss:$12 sps:$4 sm:$0xff]   ;;  %v11858_v12 = vld [vmem:[%s12819_s18 + $0xf4] ss:$12 sps:$4 sm:$0xff]  }
  0x94   : > { %v11880_v6 = vld [vmem:[#allocation3 + $0x140] sm:$0xff]   ;;  %v11864_v7 = vld [vmem:[#allocation3 + $0xd8] sm:$0xff]   ;;  %v11872_v11 = vld [vmem:[#allocation3 + $0xd0] sm:$0xff]  }
  0x95   : > { %10023 = vmatpush3.bf16.msra.mxu0 %v11789_v15  ;;  %11680 = vmatpush3.bf16.msra.mxu1 %v11789_v15  ;;  %v11878_v13 = vld [vmem:[#allocation3 + $0x108] sm:$0xff]   ;;  %v11860_v14 = vld [vmem:[%s12819_s18 + $0xf8] ss:$12 sps:$4 sm:$0xff]  }
  0x96   : > { %10024 = vmatprep.subr.bf16.mxu0 %v11790_v16  ;;  %11673 = vmatprep.subr.bf16.mxu1 %v11790_v16  ;;  %v11879_v15 = vld [vmem:[#allocation3 + $0xc8] sm:$0xff]   ;;  %v11890_v16 = vld [vmem:[#allocation3 + $0x1f8] sm:$0xff]  }
  0x99   : > { %10025 = vmatpush3.bf16.msra.mxu0 %v11791_v17  ;;  %11681 = vmatpush3.bf16.msra.mxu1 %v11791_v17  ;;  %v11886_v17 = vld [vmem:[#allocation3 + $0x100] sm:$0xff]  }
  0x9a   : > { %11234 = vmatprep.subr.bf16.mxu1 %v11798_v18  ;;  %11282 = vmatprep.subr.bf16.mxu0 %v11799_v19 }
  0x9c   : > { %756 = vmatmul.mubr.bf16.vlgmr.msra.gmra.mxu0 %v11792_v20  ;;  %852 = vmatmul.mubr.bf16.vlgmr.msra.gmra.mxu1 %v11795_v21  ;;  %v11887_v20 = vld [vmem:[#allocation3 + $0xc0] sm:$0xff]   ;;  %v11892_v21 = vld [vmem:[#allocation3 + $0x238] sm:$0xff]  }
  0x9d   : > { %11235 = vmatpush3.bf16.msra.mxu1 %v11798_v18  ;;  %11283 = vmatpush3.bf16.msra.mxu0 %v11799_v19  ;;  %v11861_v18 = vld [vmem:[%s12819_s18 + $0xf0] ss:$12 sps:$4 sm:$0xff]  }
  0x9e   : > { %11236 = vmatprep.subr.bf16.mxu1 %v11800_v22  ;;  %763 = vmatprep.mubr.bf16.mxu0 %v12826_v23  ;;  %v11862_v19 = vld [vmem:[%s12819_s18 + $0x110] ss:$12 sps:$4 sm:$0xff]  }
  0x9f   : > { %859 = vmatprep.mubr.bf16.mxu1 %v11803_v24  ;;  %11284 = vmatprep.subr.bf16.mxu0 %v11809_v25  ;;  %v11867_v24 = vld [vmem:[%s12819_s18 + $0x128] ss:$12 sps:$4 sm:$0xff]  }
  0xa1   : > { %11237 = vmatpush3.bf16.msra.mxu1 %v11800_v22  ;;  %11285 = vmatpush3.bf16.msra.mxu0 %v11809_v25  ;;  %v12900_v22 = vld [vmem:[%s12819_s18 + $0x10c] ss:$12 sps:$4 sm:$0xff]   ;;  %v12905_v25 = vld [vmem:[%s12819_s18 + $0x108] ss:$12 sps:$4 sm:$0xff]  }
  0xa2   : > { %11238 = vmatprep.subr.bf16.mxu1 %v11807_v26  ;;  %11286 = vmatprep.subr.bf16.mxu0 %v11825_v27 }
  0xa4   : > { %764 = vmatmul.mubr.bf16.gmra.mxu0 %v12831_v28  ;;  %860 = vmatmul.mubr.bf16.gmra.mxu1 %v11806_v29  ;;  %v11875_v29 = vld [vmem:[%s12819_s18 + $0x158] ss:$12 sps:$4 sm:$0xff]  }
  0xa5   : > { %11239 = vmatpush3.bf16.msra.mxu1 %v11807_v26  ;;  %771 = vmatprep.mubr.bf16.mxu0 %v12835_v31  ;;  %v11869_v26 = vld [vmem:[%s12819_s18 + $0x140] ss:$12 sps:$4 sm:$0xff]  }
  0xa6   : > { %11240 = vmatprep.subr.bf16.mxu1 %v11808_v30  ;;  %867 = vmatprep.mubr.bf16.mxu1 %v11812_v32  ;;  %v11877_v32 = vld [vmem:[%s12819_s18 + $0x170] ss:$12 sps:$4 sm:$0xff]  }
  0xa7   : > { %11287 = vmatpush3.bf16.msra.mxu0 %v11825_v27  ;;  %v12909_v27 = vld [vmem:[%s12819_s18 + $0x124] ss:$12 sps:$4 sm:$0xff]  }
  0xa8   : > { %11288 = vmatprep.subr.bf16.mxu0 %v11834_v33 }
  0xa9   : > { %11241 = vmatpush3.bf16.msra.mxu1 %v11808_v30  ;;  %v12915_v30 = vld [vmem:[%s12819_s18 + $0x120] ss:$12 sps:$4 sm:$0xff]  }
  0xaa   : > { %11242 = vmatprep.subr.bf16.mxu1 %v11816_v35 }
  0xab   : > { %11289 = vmatpush3.bf16.msra.mxu0 %v11834_v33  ;;  %v12919_v33 = vld [vmem:[%s12819_s18 + $0x13c] ss:$12 sps:$4 sm:$0xff]  }
  0xac   : > { %772 = vmatmul.mubr.bf16.gmra.mxu0 %v12841_v34  ;;  %868 = vmatmul.mubr.bf16.gmra.mxu1 %v11815_v36  ;;  %v12925_v36 = vld [vmem:[%s12819_s18 + $0x138] ss:$12 sps:$4 sm:$0xff]  }
  0xad   : > { %11243 = vmatpush3.bf16.msra.mxu1 %v11816_v35  ;;  %779 = vmatprep.mubr.bf16.mxu0 %v12845_v38  ;;  %v11883_v35 = vld [vmem:[%s12819_s18 + $0x188] ss:$12 sps:$4 sm:$0xff]  }
  0xae   : > { %11244 = vmatprep.subr.bf16.mxu1 %v11817_v37  ;;  %875 = vmatprep.mubr.bf16.mxu1 %v11820_v39  ;;  %v11888_v39 = vld [vmem:[%s12819_s18 + $0x20] ss:$12 sps:$4 sm:$0xff]  }
  0xaf   : > { %11290 = vmatprep.subr.bf16.mxu0 %v11847_v43 }
  0xb0   : > { %11291 = vmatpush3.bf16.msra.mxu0 %v11847_v43  ;;  %v11893_v43 = vld [vmem:[%s12819_s18 + $0x50] ss:$12 sps:$4 sm:$0xff]  }
  0xb1   : > { %11245 = vmatpush3.bf16.msra.mxu1 %v11817_v37  ;;  %11292 = vmatprep.subr.bf16.mxu0 %v11857_v51  ;;  %v11885_v37 = vld [vmem:[%s12819_s18 + $0x1a0] ss:$12 sps:$4 sm:$0xff]  }
  0xb2   : > { %11246 = vmatprep.subr.bf16.mxu1 %v11824_v42 }
  0xb4   : > { %780 = vmatmul.mubr.bf16.gmra.mxu0 %v12851_v40  ;;  %876 = vmatmul.mubr.bf16.gmra.mxu1 %v11823_v41  ;;  %v11889_v41 = vld [vmem:[%s12819_s18 + $0x38] ss:$12 sps:$4 sm:$0xff]  }
  0xb5   : > { %11247 = vmatpush3.bf16.msra.mxu1 %v11824_v42  ;;  %787 = vmatprep.mubr.bf16.mxu0 %v12855_v45  ;;  %v11891_v42 = vld [vmem:[#allocation3 + $0x1b8] sm:$0xff]  }
  0xb6   : > { %11248 = vmatprep.subr.bf16.mxu1 %v11826_v44  ;;  %11250 = vmatprep.mubr.bf16.mxu1 %v11829_v46  ;;  %v11901_v46 = vld [vmem:[#allocation3 + $0x230] sm:$0xff]  }
  0xb7   : > { %11293 = vmatpush3.bf16.msra.mxu0 %v11857_v51  ;;  %v11897_v51 = vld [vmem:[%s12819_s18 + $0x80] ss:$12 sps:$4 sm:$0xff]  }
  0xb8   : > { %11294 = vmatprep.subr.bf16.mxu0 %v11870_v61 }
  0xb9   : > { %11249 = vmatpush3.bf16.msra.mxu1 %v11826_v44  ;;  %v11895_v44 = vld [vmem:[#allocation3 + $0x1f0] sm:$0xff]  }
  0xba   : > { %10146 = vmatprep.subr.bf16.mxu1 %v11832_v49  ;;  %v11899_v49 = vld [vmem:[#allocation3 + $0x1e8] sm:$0xff]  }
  0xbb   : > { %11295 = vmatpush3.bf16.msra.mxu0 %v11870_v61  ;;  %v11909_v61 = vld [vmem:[#allocation3 + $0x198] sm:$0xff]  }
  0xbc   : > { %788 = vmatmul.mubr.bf16.gmra.mxu0 %v12861_v47  ;;  %11251 = vmatmul.mubr.bf16.vlgmr.msra.gmra.mxu1 %v11831_v48  ;;  %v11896_v48 = vld [vmem:[#allocation3 + $0x1b0] sm:$0xff]  }
  0xbd   : > { %10147 = vmatpush3.bf16.msra.mxu1 %v11833_v50  ;;  %795 = vmatprep.mubr.bf16.mxu0 %v12865_v52  ;;  %v11910_v50 = vld [vmem:[#allocation3 + $0x228] sm:$0xff]  }
  0xbe   : > { %11254 = vmatprep.mubr.bf16.mxu1 %v11837_v53  ;;  %10148 = vmatprep.subr.bf16.mxu1 %v11840_v54  ;;  %v11900_v53 = vld [vmem:[#allocation3 + $0x1a8] sm:$0xff]   ;;  %v11919_v54 = vld [vmem:[#allocation3 + $0x220] sm:$0xff]  }
  0xbf   : > { %11296 = vmatprep.subr.bf16.mxu0 %v11880_v6 }
  0xc0   : > { %11297 = vmatpush3.bf16.msra.mxu0 %v11880_v6  ;;  %v11925_v6 = vld [vmem:[#allocation3 + $0x1c0] sm:$0xff]  }
  0xc1   : > { %10149 = vmatpush3.bf16.msra.mxu1 %v11841_v55  ;;  %10282 = vmatprep.subr.bf16.mxu0 %v11890_v16  ;;  %v11898_v55 = vld [vmem:[%s12819_s18 + $0x98] ss:$12 sps:$4 sm:$0xff]  }
  0xc2   : > { %10150 = vmatprep.subr.bf16.mxu1 %v11848_v57  ;;  %v11908_v57 = vld [vmem:[#allocation3 + $0x1d8] sm:$0xff]  }
  0xc3   : > { %v12396_v16 = vld [vmem:[%s12819_s18 + $0x4c] ss:$12 sps:$4 sm:$0xff]  }
  0xc4   : > { %796 = vmatmul.mubr.bf16.gmra.mxu0 %v12871_v56  ;;  %11255 = vmatmul.mubr.bf16.gmra.mxu1 %v11839_v58  ;;  %v11928_v58 = vld [vmem:[#allocation3 + $0x218] sm:$0xff]  }
  0xc5   : > { %803 = vmatprep.mubr.bf16.mxu0 %v12875_v59  ;;  %11258 = vmatprep.mubr.bf16.mxu1 %v11844_v60  ;;  %v11902_v60 = vld [vmem:[%s12819_s18 + $0xb0] ss:$12 sps:$4 sm:$0xff]  }
  0xc6   : > { %10151 = vmatpush3.bf16.msra.mxu1 %v11849_v62  ;;  %v11913_v62 = vld [vmem:[#allocation3 + $0x1d0] sm:$0xff]  }
  0xc7   : > { %10152 = vmatprep.subr.bf16.mxu1 %v11855_v63  ;;  %v11903_v63 = vld [vmem:[%s12819_s18 + $0xc8] ss:$12 sps:$4 sm:$0xff]  }
  0xca   : > { %10153 = vmatpush3.bf16.msra.mxu1 %v11856_v2  ;;  %v11938_v2 = vld [vmem:[#allocation3 + $0x208] sm:$0xff]  }
  0xcb   : > { %10154 = vmatprep.subr.bf16.mxu1 %v11863_v4  ;;  %v11906_v4 = vld [vmem:[%s12819_s18 + $0x110] ss:$12 sps:$4 sm:$0xff]  }
  0xcc   : > { %804 = vmatmul.mubr.bf16.gmra.mxu0 %v12881_v0  ;;  %11259 = vmatmul.mubr.bf16.gmra.mxu1 %v11846_v1  ;;  %v11917_v1 = vld [vmem:[#allocation3 + $0x1c8] sm:$0xff]  }
  0xcd   : > { %811 = vmatprep.mubr.bf16.mxu0 %v12885_v3  ;;  %11262 = vmatprep.mubr.bf16.mxu1 %v11852_v5  ;;  %v11918_v5 = vld [vmem:[#allocation3 + $0x188] sm:$0xff]  }
  0xce   : > { %10155 = vmatpush3.bf16.msra.mxu1 %v11864_v7  ;;  %v11927_v7 = vld [vmem:[#allocation3 + $0x2f8] sm:$0xff]  }
  0xcf   : > { %10156 = vmatprep.subr.bf16.mxu1 %v11871_v8  ;;  %v11956_v8 = vld [vmem:[#allocation3 + $0x2b8] sm:$0xff]  }
  0xd2   : > { %10157 = vmatpush3.bf16.msra.mxu1 %v11872_v11  ;;  %v11911_v11 = vld [vmem:[%s12819_s18 + $0x140] ss:$12 sps:$4 sm:$0xff]  }
  0xd3   : > { %10158 = vmatprep.subr.bf16.mxu1 %v11878_v13  ;;  %v12957_v13 = vld [vmem:[%s12819_s18 + $0xc4] ss:$12 sps:$4 sm:$0xff]  }
  0xd4   : > { %812 = vmatmul.mubr.bf16.gmra.mxu0 %v12891_v9  ;;  %11263 = vmatmul.mubr.bf16.gmra.mxu1 %v11854_v10  ;;  %v11907_v10 = vld [vmem:[%s12819_s18 + $0x128] ss:$12 sps:$4 sm:$0xff]  }
  0xd5   : > { %819 = vmatprep.mubr.bf16.mxu0 %v11858_v12  ;;  %11266 = vmatprep.mubr.bf16.mxu1 %v11860_v14  ;;  %v11916_v12 = vld [vmem:[%s12819_s18 + $0x188] ss:$12 sps:$4 sm:$0xff]  }
  0xd6   : > { %10159 = vmatpush3.bf16.msra.mxu1 %v11879_v15  ;;  %v11929_v14 = vld [vmem:[#allocation3 + $0x2f0] sm:$0xff]   ;;  %v11937_v15 = vld [vmem:[#allocation3 + $0x2e8] sm:$0xff]  }
  0xd7   : > { %10160 = vmatprep.subr.bf16.mxu1 %v11886_v17  ;;  %v11945_v17 = vld [vmem:[#allocation3 + $0x2e0] sm:$0xff]  }
  0xda   : > { %10161 = vmatpush3.bf16.msra.mxu1 %v11887_v20  ;;  %v11955_v20 = vld [vmem:[#allocation3 + $0x2d8] sm:$0xff]  }
  0xdb   : > { %11330 = vmatprep.subr.bf16.mxu1 %v11892_v21 }
  0xdc   : > { %820 = vmatmul.mubr.bf16.gmra.mxu0 %v11861_v18  ;;  %11267 = vmatmul.mubr.bf16.gmra.mxu1 %v11862_v19  ;;  %v12397_v18 = vld [vmem:[%s12819_s18 + $0x48] ss:$12 sps:$4 sm:$0xff]   ;;  %v12398_v19 = vld [vmem:[%s12819_s18 + $0x64] ss:$12 sps:$4 sm:$0xff]  }
  0xdd   : > { %827 = vmatprep.mubr.bf16.mxu0 %v12900_v22  ;;  %11270 = vmatprep.mubr.bf16.mxu1 %v11867_v24  ;;  %v12399_v24 = vld [vmem:[%s12819_s18 + $0x60] ss:$12 sps:$4 sm:$0xff]  }
  0xe4   : > { %828 = vmatmul.mubr.bf16.gmra.mxu0 %v12905_v25  ;;  %11271 = vmatmul.mubr.bf16.gmra.mxu1 %v11869_v26  ;;  %v11973_v26 = vld [vmem:[#allocation3 + $0x2c8] sm:$0xff]  }
  0xe5   : > { %835 = vmatprep.mubr.bf16.mxu0 %v12909_v27  ;;  %11274 = vmatprep.mubr.bf16.mxu1 %v11875_v29  ;;  %v12988_v29 = vld [vmem:[%s12819_s18 + $0x16c] ss:$12 sps:$4 sm:$0xff]  }
  0xec   : > { %836 = vmatmul.mubr.bf16.gmra.mxu0 %v12915_v30  ;;  %11275 = vmatmul.mubr.bf16.gmra.mxu1 %v11877_v32  ;;  %v12401_v32 = vld [vmem:[%s12819_s18 + $0x78] ss:$12 sps:$4 sm:$0xff]  }
  0xed   : > { %843 = vmatprep.mubr.bf16.mxu0 %v12919_v33  ;;  %11278 = vmatprep.mubr.bf16.mxu1 %v11883_v35  ;;  %v11997_v35 = vld [vmem:[#allocation3 + $0x378] sm:$0xff]  }
  0xf4   : > { %844 = vmatmul.mubr.bf16.gmra.mxu0 %v12925_v36  ;;  %11279 = vmatmul.mubr.bf16.gmra.mxu1 %v11885_v37  ;;  %v12998_v37 = vld [vmem:[%s12819_s18 + $0x184] ss:$12 sps:$4 sm:$0xff]  }
  0xf5   : > { %1625 = vmatprep.mubr.bf16.mxu1 %v12826_v23  ;;  %11298 = vmatprep.mubr.bf16.mxu0 %v11888_v39  ;;  %v11894_v23 = vld [vmem:[%s12819_s18 + $0x68] ss:$12 sps:$4 sm:$0xff]  }
  0xfc   : > { %1626 = vmatmul.mubr.bf16.vlgmr.msra.gmra.mxu1 %v12831_v28  ;;  %11299 = vmatmul.mubr.bf16.vlgmr.msra.gmra.mxu0 %v11889_v41  ;;  %v11904_v28 = vld [vmem:[#allocation3 + $0x1e0] sm:$0xff]  }
  0xfd   : > { %10283 = vmatpush3.bf16.msra.mxu0 %v11891_v42  ;;  %11331 = vmatpush3.bf16.msra.mxu1 %v11892_v21  ;;  %v12978_v21 = vld [vmem:[%s12819_s18 + $0x154] ss:$12 sps:$4 sm:$0xff]   ;;  %v12403_v42 = vld [vmem:[%s12819_s18 + $0x90] ss:$12 sps:$4 sm:$0xff]  }
  0xfe   : > { %1633 = vmatprep.mubr.bf16.mxu1 %v12835_v31  ;;  %11302 = vmatprep.mubr.bf16.mxu0 %v11893_v43  ;;  %v11905_v31 = vld [vmem:[#allocation3 + $0x1a0] sm:$0xff]   ;;  %v12404_v43 = vld [vmem:[%s12819_s18 + $0xac] ss:$12 sps:$4 sm:$0xff]  }
  0xff   : > { %10284 = vmatprep.subr.bf16.mxu0 %v11895_v44  ;;  %11332 = vmatprep.subr.bf16.mxu1 %v11901_v46 }
 0x101   : > { %10285 = vmatpush3.bf16.msra.mxu0 %v11896_v48  ;;  %11333 = vmatpush3.bf16.msra.mxu1 %v11901_v46  ;;  %v13005_v48 = vld [vmem:[%s12819_s18 + $0x180] ss:$12 sps:$4 sm:$0xff]  }
 0x102   : > { %10286 = vmatprep.subr.bf16.mxu0 %v11899_v49  ;;  %11334 = vmatprep.subr.bf16.mxu1 %v11910_v50 }
 0x104   : > { %1634 = vmatmul.mubr.bf16.gmra.mxu1 %v12841_v34  ;;  %11303 = vmatmul.mubr.bf16.gmra.mxu0 %v11894_v23  ;;  %v11930_v34 = vld [vmem:[#allocation3 + $0x210] sm:$0xff]  }
 0x105   : > { %1641 = vmatprep.mubr.bf16.mxu1 %v12845_v38  ;;  %11306 = vmatprep.mubr.bf16.mxu0 %v11897_v51  ;;  %v11914_v38 = vld [vmem:[#allocation3 + $0x190] sm:$0xff]  }
 0x106   : > { %10287 = vmatpush3.bf16.msra.mxu0 %v11900_v53  ;;  %11335 = vmatpush3.bf16.msra.mxu1 %v11910_v50  ;;  %v13012_v53 = vld [vmem:[%s12819_s18 + $0x19c] ss:$12 sps:$4 sm:$0xff]  }
 0x107   : > { %10288 = vmatprep.subr.bf16.mxu0 %v11904_v28  ;;  %11336 = vmatprep.subr.bf16.mxu1 %v11919_v54 }
 0x10a   : > { %10289 = vmatpush3.bf16.msra.mxu0 %v11905_v31  ;;  %11337 = vmatpush3.bf16.msra.mxu1 %v11919_v54 }
 0x10b   : > { %10290 = vmatprep.subr.bf16.mxu0 %v11908_v57  ;;  %11338 = vmatprep.subr.bf16.mxu1 %v11928_v58 }
 0x10c   : > { %1642 = vmatmul.mubr.bf16.gmra.mxu1 %v12851_v40  ;;  %11307 = vmatmul.mubr.bf16.gmra.mxu0 %v11898_v55  ;;  %v11946_v40 = vld [vmem:[#allocation3 + $0x200] sm:$0xff]  }
 0x10d   : > { %1649 = vmatprep.mubr.bf16.mxu1 %v12855_v45  ;;  %11310 = vmatprep.mubr.bf16.mxu0 %v11902_v60  ;;  %v11926_v45 = vld [vmem:[#allocation3 + $0x180] sm:$0xff]   ;;  %v12405_v60 = vld [vmem:[%s12819_s18 + $0xa8] ss:$12 sps:$4 sm:$0xff]  }
 0x10e   : > { %10291 = vmatpush3.bf16.msra.mxu0 %v11909_v61  ;;  %11339 = vmatpush3.bf16.msra.mxu1 %v11928_v58 }
 0x10f   : > { %10292 = vmatprep.subr.bf16.mxu0 %v11913_v62  ;;  %11340 = vmatprep.subr.bf16.mxu1 %v11930_v34 }
 0x112   : > { %10293 = vmatpush3.bf16.msra.mxu0 %v11914_v38  ;;  %11341 = vmatpush3.bf16.msra.mxu1 %v11930_v34  ;;  %v13023_v34 = vld [vmem:[%s12819_s18 + $0x198] ss:$12 sps:$4 sm:$0xff]  }
 0x113   : > { %10294 = vmatprep.subr.bf16.mxu0 %v11917_v1  ;;  %11342 = vmatprep.subr.bf16.mxu1 %v11938_v2 }
 0x114   : > { %1650 = vmatmul.mubr.bf16.gmra.mxu1 %v12861_v47  ;;  %11311 = vmatmul.mubr.bf16.gmra.mxu0 %v11903_v63  ;;  %v11912_v47 = vld [vmem:[%s12819_s18 + $0x158] ss:$12 sps:$4 sm:$0xff]  }
 0x115   : > { %1657 = vmatprep.mubr.bf16.mxu1 %v12865_v52  ;;  %11314 = vmatprep.mubr.bf16.mxu0 %v11906_v4  ;;  %v11915_v52 = vld [vmem:[%s12819_s18 + $0x170] ss:$12 sps:$4 sm:$0xff]   ;;  %v13028_v4 = vld [vmem:[%s12819_s18 + $0x1b4] ss:$12 sps:$4 sm:$0xff]  }
 0x116   : > { %10295 = vmatpush3.bf16.msra.mxu0 %v11918_v5  ;;  %11343 = vmatpush3.bf16.msra.mxu1 %v11938_v2  ;;  %v11949_v5 = vld [vmem:[%s12819_s18 + $0xdc] ss:$12 sps:$4 sm:$0xff]  }
 0x117   : > { %10296 = vmatprep.subr.bf16.mxu0 %v11925_v6  ;;  %11344 = vmatprep.subr.bf16.mxu1 %v11946_v40 }
 0x11a   : > { %10297 = vmatpush3.bf16.msra.mxu0 %v11926_v45  ;;  %11345 = vmatpush3.bf16.msra.mxu1 %v11946_v40 }
 0x11b   : > { %11378 = vmatprep.subr.bf16.mxu0 %v11927_v7  ;;  %10418 = vmatprep.subr.bf16.mxu1 %v11956_v8 }
 0x11c   : > { %1658 = vmatmul.mubr.bf16.gmra.mxu1 %v12871_v56  ;;  %11315 = vmatmul.mubr.bf16.gmra.mxu0 %v11907_v10  ;;  %v11922_v56 = vld [vmem:[%s12819_s18 + $0x1a0] ss:$12 sps:$4 sm:$0xff]  }
 0x11d   : > { %1665 = vmatprep.mubr.bf16.mxu1 %v12875_v59  ;;  %11318 = vmatprep.mubr.bf16.mxu0 %v11911_v11  ;;  %v12963_v59 = vld [vmem:[%s12819_s18 + $0xc0] ss:$12 sps:$4 sm:$0xff]  }
 0x124   : > { %1666 = vmatmul.mubr.bf16.gmra.mxu1 %v12881_v0  ;;  %11319 = vmatmul.mubr.bf16.gmra.mxu0 %v11912_v47  ;;  %v11924_v0 = vld [vmem:[%s12819_s18 + $0x1b8] ss:$12 sps:$4 sm:$0xff]  }
 0x125   : > { %1673 = vmatprep.mubr.bf16.mxu1 %v12885_v3  ;;  %11322 = vmatprep.mubr.bf16.mxu0 %v11915_v52  ;;  %v12394_v3 = vld [vmem:[%s12819_s18 + $0x34] ss:$12 sps:$4 sm:$0xff]   ;;  %v13037_v52 = vld [vmem:[%s12819_s18 + $0x1b0] ss:$12 sps:$4 sm:$0xff]  }
 0x12c   : > { %1674 = vmatmul.mubr.bf16.gmra.mxu1 %v12891_v9  ;;  %11323 = vmatmul.mubr.bf16.gmra.mxu0 %v11916_v12  ;;  %v12395_v9 = vld [vmem:[%s12819_s18 + $0x30] ss:$12 sps:$4 sm:$0xff]   ;;  %v11952_v12 = vld [vmem:[%s12819_s18 + $0xd8] ss:$12 sps:$4 sm:$0xff]  }
 0x12d   : > { %1681 = vmatprep.mubr.bf16.mxu1 %v12957_v13  ;;  %11326 = vmatprep.mubr.bf16.mxu0 %v11922_v56 }
 0x134   : > { %1682 = vmatmul.mubr.bf16.gmra.mxu1 %v12963_v59  ;;  %11327 = vmatmul.mubr.bf16.gmra.mxu0 %v11924_v0 }
 0x135   : > { %1689 = vmatprep.mubr.bf16.mxu1 %v12900_v22  ;;  %2559 = vmatprep.mubr.bf16.mxu0 %v12394_v3  ;;  %v11964_v22 = vld [vmem:[#allocation3 + $0x2d0] sm:$0xff]  }
 0x13c   : > { %1690 = vmatmul.mubr.bf16.gmra.mxu1 %v12905_v25  ;;  %2560 = vmatmul.mubr.bf16.vlgmr.msra.gmra.mxu0 %v12395_v9  ;;  %v12400_v25 = vld [vmem:[%s12819_s18 + $0x7c] ss:$12 sps:$4 sm:$0xff]  }
 0x13d   : > { %11379 = vmatpush3.bf16.msra.mxu0 %v11927_v7  ;;  %1697 = vmatprep.mubr.bf16.mxu1 %v12909_v27  ;;  %v12985_v27 = vld [vmem:[%s12819_s18 + $0x150] ss:$12 sps:$4 sm:$0xff]  }
 0x13e   : > { %2567 = vmatprep.mubr.bf16.mxu0 %v12396_v16  ;;  %11380 = vmatprep.subr.bf16.mxu0 %v11929_v14 }
 0x141   : > { %11381 = vmatpush3.bf16.msra.mxu0 %v11929_v14  ;;  %v11953_v14 = vld [vmem:[%s12819_s18 + $0x38] ss:$12 sps:$4 sm:$0xff]  }
 0x142   : > { %11382 = vmatprep.subr.bf16.mxu0 %v11937_v15 }
 0x144   : > { %1698 = vmatmul.mubr.bf16.gmra.mxu1 %v12915_v30  ;;  %2568 = vmatmul.mubr.bf16.gmra.mxu0 %v12397_v18  ;;  %v11982_v30 = vld [vmem:[#allocation3 + $0x2c0] sm:$0xff]  }
 0x145   : > { %1705 = vmatprep.mubr.bf16.mxu1 %v12919_v33  ;;  %2575 = vmatprep.mubr.bf16.mxu0 %v12398_v19  ;;  %v12402_v33 = vld [vmem:[%s12819_s18 + $0x94] ss:$12 sps:$4 sm:$0xff]   ;;  %v12406_v19 = vld [vmem:[%s12819_s18 + $0x124] ss:$12 sps:$4 sm:$0xff]  }
 0x146   : > { %11383 = vmatpush3.bf16.msra.mxu0 %v11937_v15 }
 0x147   : > { %11384 = vmatprep.subr.bf16.mxu0 %v11945_v17 }
 0x14a   : > { %11385 = vmatpush3.bf16.msra.mxu0 %v11945_v17 }
 0x14b   : > { %11386 = vmatprep.subr.bf16.mxu0 %v11955_v20 }
 0x14c   : > { %1706 = vmatmul.mubr.bf16.gmra.mxu1 %v12925_v36  ;;  %2576 = vmatmul.mubr.bf16.gmra.mxu0 %v12399_v24  ;;  %v12995_v36 = vld [vmem:[%s12819_s18 + $0x168] ss:$12 sps:$4 sm:$0xff]   ;;  %v11954_v24 = vld [vmem:[%s12819_s18 + $0x50] ss:$12 sps:$4 sm:$0xff]  }
 0x14d   : > { %1713 = vmatprep.mubr.bf16.mxu1 %v12978_v21  ;;  %2583 = vmatprep.mubr.bf16.mxu0 %v12400_v25 }
 0x14e   : > { %11387 = vmatpush3.bf16.msra.mxu0 %v11955_v20 }
 0x14f   : > { %11388 = vmatprep.subr.bf16.mxu0 %v11964_v22 }
 0x152   : > { %11389 = vmatpush3.bf16.msra.mxu0 %v11964_v22 }
 0x153   : > { %11390 = vmatprep.subr.bf16.mxu0 %v11973_v26 }
 0x154   : > { %1714 = vmatmul.mubr.bf16.gmra.mxu1 %v12985_v27  ;;  %2584 = vmatmul.mubr.bf16.gmra.mxu0 %v12401_v32 }
 0x155   : > { %1721 = vmatprep.mubr.bf16.mxu1 %v12988_v29  ;;  %2591 = vmatprep.mubr.bf16.mxu0 %v12402_v33 }
 0x156   : > { %11391 = vmatpush3.bf16.msra.mxu0 %v11973_v26 }
 0x157   : > { %11392 = vmatprep.subr.bf16.mxu0 %v11982_v30 }
 0x15a   : > { %11393 = vmatpush3.bf16.msra.mxu0 %v11982_v30  ;;  %v11957_v30 = vld [vmem:[#allocation3 + $0x278] sm:$0xff]  }
 0x15b   : > { %10554 = vmatprep.subr.bf16.mxu0 %v11997_v35  ;;  %v11958_v35 = vld [vmem:[%s12819_s18 + $0x68] ss:$12 sps:$4 sm:$0xff]  }
 0x15c   : > { %v10026_v39 = vpop.f32.mrf.mxu0  ;;  %v10098_v41 = vpop.f32.mrf.mxu1  ;;  %1722 = vmatmul.mubr.bf16.gmra.mxu1 %v12995_v36  ;;  %2592 = vmatmul.mubr.bf16.gmra.mxu0 %v12403_v42  ;;  %v11960_v42 = vld [vmem:[#allocation3 + $0x2b0] sm:$0xff]  }
 0x15d   : > { %1729 = vmatprep.mubr.bf16.mxu1 %v12998_v37  ;;  %2599 = vmatprep.mubr.bf16.mxu0 %v12404_v43 }
 0x15e   : > { %v10027_v44 = vpop.f32.mrf.mxu0  ;;  %v10099_v46 = vpop.f32.mrf.mxu1 }
 0x15f   : > { %v13007_v49 = vadd.f32 %v10027_v44, %v10026_v39  ;;  %v13009_v50 = vadd.f32 %v10099_v46, %v10098_v41  ;;  %v11961_v46 = vld [vmem:[#allocation3 + $0x270] sm:$0xff]  }
 0x160   : > { %v10029_v23 = vpop.f32.mrf.mxu0  ;;  %v10101_v51 = vpop.f32.mrf.mxu1 }
 0x162   : > { %v10030_v28 = vpop.f32.mrf.mxu0  ;;  %v10102_v54 = vpop.f32.mrf.mxu1 }
 0x163   : > { %v13014_v31 = vadd.f32 %v10030_v28, %v10029_v23  ;;  %v13016_v55 = vadd.f32 %v10102_v54, %v10101_v51  ;;  %v12407_v28 = vld [vmem:[%s12819_s18 + $0x120] ss:$12 sps:$4 sm:$0xff]  }
 0x164   : > { %v10032_v57 = vpop.f32.mrf.mxu0  ;;  %v10104_v58 = vpop.f32.mrf.mxu1  ;;  %1730 = vmatmul.mubr.bf16.gmra.mxu1 %v13005_v48  ;;  %2600 = vmatmul.mubr.bf16.gmra.mxu0 %v12405_v60 }
 0x165   : > { %1737 = vmatprep.mubr.bf16.mxu1 %v13012_v53  ;;  %2607 = vmatprep.mubr.bf16.mxu0 %v12957_v13 }
 0x166   : > { %v10033_v61 = vpop.f32.mrf.mxu0  ;;  %v10105_v62 = vpop.f32.mrf.mxu1 }
 0x167   : > { %v10034_v38 = vadd.f32 %v10033_v61, %v10032_v57  ;;  %v13025_v63 = vadd.f32 %v10105_v62, %v10104_v58  ;;  %v12408_v57 = vld [vmem:[%s12819_s18 + $0x13c] ss:$12 sps:$4 sm:$0xff]   ;;  %v11959_v62 = vld [vmem:[%s12819_s18 + $0x80] ss:$12 sps:$4 sm:$0xff]  }
 0x168   : > { %v10035_v1 = vpop.f32.mrf.mxu0  ;;  %v10107_v2 = vpop.f32.mrf.mxu1  ;;  %v11965_v58 = vld [vmem:[#allocation3 + $0x2a8] sm:$0xff]  }
 0x16a   : > { %v10036_v6 = vpop.f32.mrf.mxu0  ;;  %v10108_v40 = vpop.f32.mrf.mxu1 }
 0x16b   : > { %v10037_v45 = vadd.f32 %v10036_v6, %v10035_v1  ;;  %v13031_v7 = vadd.f32 %v10108_v40, %v10107_v2 }
 0x16c   : > { %v10038_v8 = vpop.f32.mrf.mxu0  ;;  %v10110_v10 = vpop.f32.mrf.mxu1  ;;  %1738 = vmatmul.mubr.bf16.gmra.mxu1 %v13023_v34  ;;  %2608 = vmatmul.mubr.bf16.gmra.mxu0 %v12963_v59 }
 0x16d   : > { %1745 = vmatprep.mubr.bf16.mxu1 %v13028_v4  ;;  %2615 = vmatprep.mubr.bf16.mxu0 %v11949_v5 }
 0x16e   : > { %v10039_v11 = vpop.f32.mrf.mxu0  ;;  %v10111_v47 = vpop.f32.mrf.mxu1 }
 0x16f   : > { %v13040_v13 = vadd.f32 %v10039_v11, %v10038_v8  ;;  %v13042_v56 = vadd.f32 %v10111_v47, %v10110_v10  ;;  %v11966_v8 = vld [vmem:[#allocation3 + $0x268] sm:$0xff]   ;;  %v11969_v47 = vld [vmem:[#allocation3 + $0x2a0] sm:$0xff]  }
 0x170   : > { %v10041_v0 = vpop.f32.mrf.mxu0  ;;  %v10113_v3 = vpop.f32.mrf.mxu1 }
 0x172   : > { %v10042_v9 = vpop.f32.mrf.mxu0  ;;  %v10114_v15 = vpop.f32.mrf.mxu1 }
 0x173   : > { %v13045_v59 = vadd.f32 %v10042_v9, %v10041_v0  ;;  %v13047_v16 = vadd.f32 %v10114_v15, %v10113_v3  ;;  %v11974_v15 = vld [vmem:[#allocation3 + $0x298] sm:$0xff]  }
 0x174   : > { %v10044_v17 = vpop.f32.mrf.mxu0  ;;  %v10116_v18 = vpop.f32.mrf.mxu1  ;;  %1746 = vmatmul.mubr.bf16.gmra.mxu1 %v13037_v52  ;;  %2616 = vmatmul.mubr.bf16.gmra.mxu0 %v11952_v12 }
 0x175   : > { %2623 = vmatprep.mubr.bf16.mxu0 %v12406_v19  ;;  %11346 = vmatprep.mubr.bf16.mxu1 %v11953_v14  ;;  %v12409_v14 = vld [vmem:[%s12819_s18 + $0x138] ss:$12 sps:$4 sm:$0xff]   ;;  %v11963_v19 = vld [vmem:[%s12819_s18 + $0xb0] ss:$12 sps:$4 sm:$0xff]  }
 0x176   : > { %v10045_v20 = vpop.f32.mrf.mxu0  ;;  %v10117_v22 = vpop.f32.mrf.mxu1 }
 0x177   : > { %v10046_v25 = vadd.f32 %v10045_v20, %v10044_v17  ;;  %v13052_v26 = vadd.f32 %v10117_v22, %v10116_v18  ;;  %v11967_v22 = vld [vmem:[%s12819_s18 + $0xc8] ss:$12 sps:$4 sm:$0xff]  }
 0x178   : > { %v10047_v32 = vpop.f32.mrf.mxu0  ;;  %v10119_v33 = vpop.f32.mrf.mxu1 }
 0x17a   : > { %v10048_v39 = vpop.f32.mrf.mxu0  ;;  %v10120_v41 = vpop.f32.mrf.mxu1 }
 0x17b   : > { %v10049_v43 = vadd.f32 %v10048_v39, %v10047_v32  ;;  %v13055_v44 = vadd.f32 %v10120_v41, %v10119_v33 }
 0x17c   : > { %v10050_v23 = vpop.f32.mrf.mxu0  ;;  %v11252_v51 = vpop.f32.mrf.mxu1  ;;  %2624 = vmatmul.mubr.bf16.gmra.mxu0 %v12407_v28  ;;  %11347 = vmatmul.mubr.bf16.vlgmr.msra.gmra.mxu1 %v11954_v24 }
 0x17d   : > { %v13058_v54 = vadd.f32 %v11252_v51, %v10034_v38  ;;  %10419 = vmatpush3.bf16.msra.mxu1 %v11957_v30  ;;  %2631 = vmatprep.mubr.bf16.mxu0 %v12408_v57  ;;  %v11962_v38 = vld [vmem:[%s12819_s18 + $0x98] ss:$12 sps:$4 sm:$0xff]   ;;  %v11968_v57 = vld [vmem:[%s12819_s18 + $0xe0] ss:$12 sps:$4 sm:$0xff]  }
 0x17e   : > { %v10051_v60 = vpop.f32.mrf.mxu0  ;;  %v918_v61 = vpop.f32.mrf.mxu1  ;;  %11350 = vmatprep.mubr.bf16.mxu1 %v11958_v35  ;;  %10420 = vmatprep.subr.bf16.mxu1 %v11960_v42 }
 0x17f   : > { %v10052_v1 = vadd.f32 %v10051_v60, %v10050_v23  ;;  %v13063_v2 = vadd.f32 %v13007_v49, %v918_v61  ;;  %v11983_v23 = vld [vmem:[#allocation3 + $0x288] sm:$0xff]  }
 0x180   : > { %v10053_v5 = vpop.f32.mrf.mxu0  ;;  %v11253_v6 = vpop.f32.mrf.mxu1 }
 0x181   : > { %v13065_v40 = vadd.f32 %v11253_v6, %v10037_v45  ;;  %10421 = vmatpush3.bf16.msra.mxu1 %v11961_v46  ;;  %v11970_v45 = vld [vmem:[#allocation3 + $0x260] sm:$0xff]   ;;  %v11979_v46 = vld [vmem:[#allocation3 + $0x250] sm:$0xff]  }
 0x182   : > { %v10054_v10 = vpop.f32.mrf.mxu0  ;;  %v921_v11 = vpop.f32.mrf.mxu1  ;;  %10422 = vmatprep.subr.bf16.mxu1 %v11965_v58 }
 0x183   : > { %v10055_v12 = vadd.f32 %v10054_v10, %v10053_v5  ;;  %v13069_v0 = vadd.f32 %v13014_v31, %v921_v11  ;;  %v11984_v5 = vld [vmem:[#allocation3 + $0x248] sm:$0xff]  }
 0x184   : > { %v10056_v3 = vpop.f32.mrf.mxu0  ;;  %v11256_v49 = vpop.f32.mrf.mxu1  ;;  %2632 = vmatmul.mubr.bf16.gmra.mxu0 %v12409_v14  ;;  %11351 = vmatmul.mubr.bf16.gmra.mxu1 %v11959_v62  ;;  %v11971_v62 = vld [vmem:[%s12819_s18 + $0x128] ss:$12 sps:$4 sm:$0xff]  }
 0x185   : > { %v13072_v9 = vadd.f32 %v11256_v49, %v10046_v25  ;;  %2639 = vmatprep.mubr.bf16.mxu0 %v12978_v21  ;;  %11354 = vmatprep.mubr.bf16.mxu1 %v11962_v38  ;;  %v11975_v25 = vld [vmem:[#allocation3 + $0x258] sm:$0xff]   ;;  %v11978_v21 = vld [vmem:[#allocation3 + $0x290] sm:$0xff]  }
 0x186   : > { %v10057_v17 = vpop.f32.mrf.mxu0  ;;  %v934_v18 = vpop.f32.mrf.mxu1  ;;  %10423 = vmatpush3.bf16.msra.mxu1 %v11966_v8 }
 0x187   : > { %v10058_v20 = vadd.f32 %v10057_v17, %v10056_v3  ;;  %v13077_v31 = vadd.f32 %v13040_v13, %v934_v18  ;;  %10424 = vmatprep.subr.bf16.mxu1 %v11969_v47  ;;  %v13099_v3 = vld [vmem:[#allocation3 + $0x3b8] sm:$0xff]  }
 0x188   : > { %v10059_v24 = vpop.f32.mrf.mxu0  ;;  %v11257_v30 = vpop.f32.mrf.mxu1 }
 0x189   : > { %v13080_v32 = vadd.f32 %v11257_v30, %v10049_v43 }
 0x18a   : > { %v10060_v33 = vpop.f32.mrf.mxu0  ;;  %v937_v35 = vpop.f32.mrf.mxu1  ;;  %10425 = vmatpush3.bf16.msra.mxu1 %v11970_v45  ;;  %v11972_v45 = vld [vmem:[%s12819_s18 + $0x140] ss:$12 sps:$4 sm:$0xff]  }
 0x18b   : > { %v10061_v39 = vadd.f32 %v10060_v33, %v10059_v24  ;;  %v13083_v41 = vadd.f32 %v13045_v59, %v937_v35  ;;  %10426 = vmatprep.subr.bf16.mxu1 %v11974_v15 }
 0x18c   : > { %v10062_v42 = vpop.f32.mrf.mxu0  ;;  %v11260_v13 = vpop.f32.mrf.mxu1  ;;  %2640 = vmatmul.mubr.bf16.gmra.mxu0 %v12985_v27  ;;  %11355 = vmatmul.mubr.bf16.gmra.mxu1 %v11963_v19 }
 0x18d   : > { %v13086_v43 = vadd.f32 %v11260_v13, %v10058_v20  ;;  %2647 = vmatprep.mubr.bf16.mxu0 %v12988_v29  ;;  %11358 = vmatprep.mubr.bf16.mxu1 %v11967_v22  ;;  %v11990_v29 = vld [vmem:[#allocation3 + $0x280] sm:$0xff]  }
 0x18e   : > { %v10063_v51 = vpop.f32.mrf.mxu0  ;;  %v950_v28 = vpop.f32.mrf.mxu1  ;;  %10427 = vmatpush3.bf16.msra.mxu1 %v11975_v25 }
 0x18f   : > { %v10064_v59 = vadd.f32 %v10063_v51, %v10062_v42  ;;  %v13090_v58 = vadd.f32 %v10052_v1, %v950_v28  ;;  %10428 = vmatprep.subr.bf16.mxu1 %v11978_v21  ;;  %v11991_v1 = vld [vmem:[#allocation3 + $0x240] sm:$0xff]   ;;  %v11980_v51 = vld [vmem:[%s12819_s18 + $0x188] ss:$12 sps:$4 sm:$0xff]  }
 0x190   : > { %v10065_v60 = vpop.f32.mrf.mxu0  ;;  %v11261_v61 = vpop.f32.mrf.mxu1 }
 0x191   : > { %v13092_v27 = vadd.f32 %v11261_v61, %v10061_v39  ;;  %v11977_v39 = vld [vmem:[%s12819_s18 + $0x170] ss:$12 sps:$4 sm:$0xff]  }
 0x192   : > { %v10066_v6 = vpop.f32.mrf.mxu0  ;;  %v953_v38 = vpop.f32.mrf.mxu1  ;;  %10429 = vmatpush3.bf16.msra.mxu1 %v11979_v46 }
 0x193   : > { %v10067_v8 = vadd.f32 %v10066_v6, %v10065_v60  ;;  %v13095_v10 = vadd.f32 %v10055_v12, %v953_v38  ;;  %10430 = vmatprep.subr.bf16.mxu1 %v11983_v23  ;;  %v11987_v38 = vld [vmem:[%s12819_s18 + $0x1cc] ss:$12 sps:$4 sm:$0xff]  }
 0x194   : > { %v10068_v11 = vpop.f32.mrf.mxu0  ;;  %v11264_v47 = vpop.f32.mrf.mxu1  ;;  %2648 = vmatmul.mubr.bf16.gmra.mxu0 %v12995_v36  ;;  %11359 = vmatmul.mubr.bf16.gmra.mxu1 %v11968_v57  ;;  %v11976_v36 = vld [vmem:[%s12819_s18 + $0x158] ss:$12 sps:$4 sm:$0xff]  }
 0x195   : > { %2655 = vmatprep.mubr.bf16.mxu0 %v12998_v37  ;;  %11362 = vmatprep.mubr.bf16.mxu1 %v11971_v62 }
 0x196   : > { %v10069_v49 = vpop.f32.mrf.mxu0  ;;  %v966_v14 = vpop.f32.mrf.mxu1  ;;  %10431 = vmatpush3.bf16.msra.mxu1 %v11984_v5  ;;  %v11981_v5 = vld [vmem:[%s12819_s18 + $0x1a0] ss:$12 sps:$4 sm:$0xff]  }
 0x197   : > { %v10070_v15 = vadd.f32 %v10069_v49, %v10068_v11  ;;  %v13102_v12 = vadd.f32 %v10064_v59, %v966_v14  ;;  %10432 = vmatprep.subr.bf16.mxu1 %v11990_v29 }
 0x198   : > { %v10071_v17 = vpop.f32.mrf.mxu0  ;;  %v11265_v18 = vpop.f32.mrf.mxu1 }
 0x199   : > { %v13104_v19 = vadd.f32 %v11264_v47, %v10070_v15  ;;  %v11988_v47 = vld [vmem:[%s12819_s18 + $0x1b8] ss:$12 sps:$4 sm:$0xff]  }
 0x19a   : > { %v10072_v20 = vpop.f32.mrf.mxu0  ;;  %v969_v22 = vpop.f32.mrf.mxu1  ;;  %10433 = vmatpush3.bf16.msra.mxu1 %v11991_v1 }
 0x19b   : > { %v10073_v37 = vadd.f32 %v10072_v20, %v10071_v17  ;;  %v13107_v24 = vadd.f32 %v10067_v8, %v969_v22  ;;  %11426 = vmatprep.subr.bf16.mxu1 %v13099_v3  ;;  %v11989_v20 = vld [vmem:[%s12819_s18 + $0x1d0] ss:$12 sps:$4 sm:$0xff]  }
 0x19c   : > { %v10074_v30 = vpop.f32.mrf.mxu0  ;;  %v11268_v25 = vpop.f32.mrf.mxu1  ;;  %2656 = vmatmul.mubr.bf16.gmra.mxu0 %v13005_v48  ;;  %11363 = vmatmul.mubr.bf16.gmra.mxu1 %v11972_v45 }
 0x19d   : > { %v13111_v33 = vadd.f32 %v11265_v18, %v10073_v37  ;;  %2663 = vmatprep.mubr.bf16.mxu0 %v13012_v53  ;;  %11366 = vmatprep.mubr.bf16.mxu1 %v11976_v36  ;;  %v11985_v36 = vld [vmem:[%s12819_s18 + $0x1c8] ss:$12 sps:$4 sm:$0xff]  }
 0x19e   : > { %v10075_v35 = vpop.f32.mrf.mxu0  ;;  %v982_v21 = vpop.f32.mrf.mxu1 }
 0x19f   : > { %v10076_v42 = vadd.f32 %v10075_v35, %v10074_v30 }
 0x1a0   : > { %v10077_v13 = vpop.f32.mrf.mxu0  ;;  %v11269_v46 = vpop.f32.mrf.mxu1 }
 0x1a1   : > { %v13115_v23 = vadd.f32 %v10076_v42, %v982_v21  ;;  %v11994_v21 = vld [vmem:[%s12819_s18 + $0xf4] ss:$12 sps:$4 sm:$0xff]  }
 0x1a2   : > { %v10078_v28 = vpop.f32.mrf.mxu0  ;;  %v985_v57 = vpop.f32.mrf.mxu1 }
 0x1a3   : > { %v10079_v48 = vadd.f32 %v10078_v28, %v10077_v13 }
 0x1a4   : > { %v10080_v59 = vpop.f32.mrf.mxu0  ;;  %v11272_v60 = vpop.f32.mrf.mxu1  ;;  %2664 = vmatmul.mubr.bf16.gmra.mxu0 %v13023_v34  ;;  %11367 = vmatmul.mubr.bf16.gmra.mxu1 %v11977_v39 }
 0x1a5   : > { %v13119_v53 = vadd.f32 %v10079_v48, %v985_v57  ;;  %2671 = vmatprep.mubr.bf16.mxu0 %v13028_v4  ;;  %11370 = vmatprep.mubr.bf16.mxu1 %v11980_v51 }
 0x1a6   : > { %v10081_v61 = vpop.f32.mrf.mxu0  ;;  %v998_v62 = vpop.f32.mrf.mxu1 }
 0x1a7   : > { %v10082_v6 = vadd.f32 %v10081_v61, %v10080_v59  ;;  %v11992_v59 = vld [vmem:[%s12819_s18 + $0xf0] ss:$12 sps:$4 sm:$0xff]  }
 0x1a8   : > { %v10083_v29 = vpop.f32.mrf.mxu0  ;;  %v13124_v8 = vpop.f32.mrf.mxu1  ;;  %v11996_v61 = vld [vmem:[%s12819_s18 + $0x110] ss:$12 sps:$4 sm:$0xff]  }
 0x1a9   : > { %v13126_v11 = vadd.f32 %v11268_v25, %v10082_v6 }
 0x1aa   : > { %v10084_v34 = vpop.f32.mrf.mxu0  ;;  %v1001_v1 = vpop.f32.mrf.mxu1 }
 0x1ab   : > { %v10085_v49 = vadd.f32 %v10084_v34, %v10083_v29  ;;  %v13161_v29 = vld [vmem:[%s12819_s18 + $0x10c] ss:$12 sps:$4 sm:$0xff]  }
 0x1ac   : > { %v10086_v14 = vpop.f32.mrf.mxu0  ;;  %v11276_v45 = vpop.f32.mrf.mxu1  ;;  %2672 = vmatmul.mubr.bf16.gmra.mxu0 %v13037_v52  ;;  %11371 = vmatmul.mubr.bf16.gmra.mxu1 %v11981_v5  ;;  %v11998_v5 = vld [vmem:[#allocation3 + $0x338] sm:$0xff]  }
 0x1ad   : > { %v13130_v4 = vadd.f32 %v11269_v46, %v10085_v49  ;;  %v13133_v15 = vadd.f32 %v11276_v45, %v13025_v63  ;;  %2679 = vmatprep.mubr.bf16.mxu0 %v11987_v38  ;;  %11374 = vmatprep.mubr.bf16.mxu1 %v11988_v47  ;;  %v11995_v63 = vld [vmem:[%s12819_s18 + $0xf8] ss:$12 sps:$4 sm:$0xff]   ;;  %v12003_v47 = vld [vmem:[%s12819_s18 + $0x128] ss:$12 sps:$4 sm:$0xff]  }
 0x1ae   : > { %v10087_v17 = vpop.f32.mrf.mxu0  ;;  %v1014_v18 = vpop.f32.mrf.mxu1  ;;  %v12014_v45 = vld [vmem:[#allocation3 + $0x3b0] sm:$0xff]  }
 0x1af   : > { %v10088_v22 = vadd.f32 %v10087_v17, %v10086_v14  ;;  %v13138_v37 = vadd.f32 %v13009_v50, %v1014_v18  ;;  %v12006_v18 = vld [vmem:[#allocation3 + $0x330] sm:$0xff]  }
 0x1b0   : > { %v10089_v30 = vpop.f32.mrf.mxu0  ;;  %v11277_v52 = vpop.f32.mrf.mxu1 }
 0x1b1   : > { %v13140_v25 = vadd.f32 %v10088_v22, %v998_v62  ;;  %v13143_v35 = vadd.f32 %v11277_v52, %v13031_v7  ;;  %v12029_v22 = vld [vmem:[#allocation3 + $0x3a8] sm:$0xff]  }
 0x1b2   : > { %v10090_v39 = vpop.f32.mrf.mxu0  ;;  %v1017_v42 = vpop.f32.mrf.mxu1 }
 0x1b3   : > { %v10091_v13 = vadd.f32 %v10090_v39, %v10089_v30  ;;  %v13148_v46 = vadd.f32 %v13016_v55, %v1017_v42  ;;  %v13182_v39 = vld [vmem:[%s12819_s18 + $0x124] ss:$12 sps:$4 sm:$0xff]  }
 0x1b4   : > { %v10092_v51 = vpop.f32.mrf.mxu0  ;;  %v11280_v50 = vpop.f32.mrf.mxu1  ;;  %2680 = vmatmul.mubr.bf16.gmra.mxu0 %v11985_v36  ;;  %11375 = vmatmul.mubr.bf16.gmra.mxu1 %v11989_v20 }
 0x1b5   : > { %v13150_v28 = vadd.f32 %v10091_v13, %v1001_v1  ;;  %v13153_v7 = vadd.f32 %v11280_v50, %v13052_v26  ;;  %3493 = vmatprep.mubr.bf16.mxu1 %v11994_v21  ;;  %11394 = vmatprep.mubr.bf16.mxu0 %v11995_v63  ;;  %v12005_v1 = vld [vmem:[#allocation3 + $0x370] sm:$0xff]   ;;  %v12004_v21 = vld [vmem:[%s12819_s18 + $0x140] ss:$12 sps:$4 sm:$0xff]  }
 0x1b6   : > { %v10093_v57 = vpop.f32.mrf.mxu0  ;;  %v1030_v48 = vpop.f32.mrf.mxu1  ;;  %v12013_v50 = vld [vmem:[#allocation3 + $0x328] sm:$0xff]  }
 0x1b7   : > { %v10094_v62 = vadd.f32 %v10093_v57, %v10092_v51  ;;  %v13158_v55 = vadd.f32 %v13042_v56, %v1030_v48  ;;  %v12010_v51 = vld [vmem:[%s12819_s18 + $0x158] ss:$12 sps:$4 sm:$0xff]  }
 0x1b8   : > { %v10095_v6 = vpop.f32.mrf.mxu0  ;;  %v11281_v38 = vpop.f32.mrf.mxu1 }
 0x1b9   : > { %v13164_v34 = vadd.f32 %v11272_v60, %v10094_v62  ;;  %v13167_v26 = vadd.f32 %v11281_v38, %v13055_v44  ;;  %v12012_v60 = vld [vmem:[#allocation3 + $0x368] sm:$0xff]   ;;  %v12021_v38 = vld [vmem:[#allocation3 + $0x320] sm:$0xff]  }
 0x1ba   : > { %v10096_v49 = vpop.f32.mrf.mxu0  ;;  %v1033_v14 = vpop.f32.mrf.mxu1 }
 0x1bb   : > { %v10097_v17 = vadd.f32 %v10096_v49, %v10095_v6  ;;  %v13170_v56 = vadd.f32 %v13047_v16, %v1033_v14  ;;  %v13177_v16 = vld [vmem:[%s12819_s18 + $0x108] ss:$12 sps:$4 sm:$0xff]   ;;  %v12056_v49 = vld [vmem:[#allocation3 + $0x398] sm:$0xff]  }
 0x1bc   : > { %v10162_v36 = vpop.f32.mrf.mxu1  ;;  %v11300_v20 = vpop.f32.mrf.mxu0  ;;  %3494 = vmatmul.mubr.bf16.vlgmr.msra.gmra.mxu1 %v11992_v59  ;;  %11395 = vmatmul.mubr.bf16.vlgmr.msra.gmra.mxu0 %v11996_v61  ;;  %v12044_v59 = vld [vmem:[#allocation3 + $0x3a0] sm:$0xff]  }
 0x1bd   : > { %v13173_v44 = vadd.f32 %v13124_v8, %v10097_v17  ;;  %10555 = vmatpush3.bf16.msra.mxu0 %v11998_v5  ;;  %11427 = vmatpush3.bf16.msra.mxu1 %v13099_v3  ;;  %v12020_v3 = vld [vmem:[#allocation3 + $0x360] sm:$0xff]   ;;  %v12011_v17 = vld [vmem:[%s12819_s18 + $0x170] ss:$12 sps:$4 sm:$0xff]  }
 0x1be   : > { %v10163_v30 = vpop.f32.mrf.mxu1  ;;  %v1788_v52 = vpop.f32.mrf.mxu0  ;;  %3501 = vmatprep.mubr.bf16.mxu1 %v13161_v29  ;;  %11398 = vmatprep.mubr.bf16.mxu0 %v12003_v47 }
 0x1bf   : > { %v10164_v63 = vadd.f32 %v10163_v30, %v10162_v36  ;;  %10556 = vmatprep.subr.bf16.mxu0 %v12005_v1  ;;  %11428 = vmatprep.subr.bf16.mxu1 %v12014_v45  ;;  %v12027_v1 = vld [vmem:[#allocation3 + $0x358] sm:$0xff]  }
 0x1c0   : > { %v10165_v42 = vpop.f32.mrf.mxu1  ;;  %v11301_v8 = vpop.f32.mrf.mxu0 }
 0x1c1   : > { %v1789_v13 = vadd.f32 %v10164_v63, %v1788_v52  ;;  %10557 = vmatpush3.bf16.msra.mxu0 %v12006_v18  ;;  %11429 = vmatpush3.bf16.msra.mxu1 %v12014_v45  ;;  %v12018_v63 = vld [vmem:[%s12819_s18 + $0x188] ss:$12 sps:$4 sm:$0xff]  }
 0x1c2   : > { %v10166_v57 = vpop.f32.mrf.mxu1  ;;  %v1791_v48 = vpop.f32.mrf.mxu0  ;;  %10558 = vmatprep.subr.bf16.mxu0 %v12012_v60  ;;  %11430 = vmatprep.subr.bf16.mxu1 %v12029_v22  ;;  %v13200_v60 = vld [vmem:[%s12819_s18 + $0x13c] ss:$12 sps:$4 sm:$0xff]  }
 0x1c3   : > { %v13186_v61 = vadd.f32 %v1789_v13, %v13063_v2  ;;  %v10167_v62 = vadd.f32 %v10166_v57, %v10165_v42  ;;  %v13193_v2 = vld [vmem:[%s12819_s18 + $0x120] ss:$12 sps:$4 sm:$0xff]   ;;  %v12028_v42 = vld [vmem:[#allocation3 + $0x318] sm:$0xff]   ;;  %v12035_v13 = vld [vmem:[#allocation3 + $0x350] sm:$0xff]  }
 0x1c4   : > { %v10168_v5 = vpop.f32.mrf.mxu1  ;;  %v13188_v6 = vpop.f32.mrf.mxu0  ;;  %3502 = vmatmul.mubr.bf16.gmra.mxu1 %v13177_v16  ;;  %11399 = vmatmul.mubr.bf16.gmra.mxu0 %v12004_v21 }
 0x1c5   : > { %15131 = vst [vmem:[#allocation26_spill] sm:$0xff] %v13186_v61  ;;  %v1792_v47 = vadd.f32 %v10167_v62, %v1791_v48  ;;  %3509 = vmatprep.mubr.bf16.mxu1 %v13182_v39  ;;  %11402 = vmatprep.mubr.bf16.mxu0 %v12010_v51 }
 0x1c6   : > { %v10169_v14 = vpop.f32.mrf.mxu1  ;;  %v1804_v45 = vpop.f32.mrf.mxu0  ;;  %10559 = vmatpush3.bf16.msra.mxu0 %v12013_v50  ;;  %11431 = vmatpush3.bf16.msra.mxu1 %v12029_v22  ;;  %v12064_v22 = vld [vmem:[#allocation3 + $0x390] sm:$0xff]  }
 0x1c7   : > { %v13197_v18 = vadd.f32 %v1792_v47, %v13069_v0  ;;  %v10170_v36 = vadd.f32 %v10169_v14, %v10168_v5  ;;  %10560 = vmatprep.subr.bf16.mxu0 %v12020_v3  ;;  %11432 = vmatprep.subr.bf16.mxu1 %v12044_v59  ;;  %v13215_v47 = vld [vmem:[%s12819_s18 + $0x138] ss:$12 sps:$4 sm:$0xff]   ;;  %v13219_v14 = vld [vmem:[%s12819_s18 + $0x154] ss:$12 sps:$4 sm:$0xff]  }
 0x1c8   : > { %v10171_v30 = vpop.f32.mrf.mxu1  ;;  %v13202_v52 = vpop.f32.mrf.mxu0 }
 0x1c9   : > { %15132 = vst [vmem:[#allocation27_spill] sm:$0xff] %v13197_v18  ;;  %v1797_v21 = vadd.f32 %v11300_v20, %v10170_v36  ;;  %v12036_v20 = vld [vmem:[#allocation3 + $0x310] sm:$0xff]  }
 0x1ca   : > { %v10172_v51 = vpop.f32.mrf.mxu1  ;;  %v1807_v57 = vpop.f32.mrf.mxu0  ;;  %10561 = vmatpush3.bf16.msra.mxu0 %v12021_v38  ;;  %11433 = vmatpush3.bf16.msra.mxu1 %v12044_v59  ;;  %v12042_v59 = vld [vmem:[#allocation3 + $0x348] sm:$0xff]  }
 0x1cb   : > { %v10173_v0 = vadd.f32 %v10172_v51, %v10171_v30  ;;  %10562 = vmatprep.subr.bf16.mxu0 %v12027_v1  ;;  %11434 = vmatprep.subr.bf16.mxu1 %v12056_v49  ;;  %v13206_v50 = vadd.f32 %v1797_v21, %v13058_v54  ;;  %v12019_v54 = vld [vmem:[%s12819_s18 + $0x1a0] ss:$12 sps:$4 sm:$0xff]  }
 0x1cc   : > { %v10174_v3 = vpop.f32.mrf.mxu1  ;;  %v13208_v48 = vpop.f32.mrf.mxu0  ;;  %3510 = vmatmul.mubr.bf16.gmra.mxu1 %v13193_v2  ;;  %11403 = vmatmul.mubr.bf16.gmra.mxu0 %v12011_v17  ;;  %v12072_v17 = vld [vmem:[#allocation3 + $0x388] sm:$0xff]  }
 0x1cd   : > { %15133 = vst [vmem:[#allocation28_spill] sm:$0xff] %v13206_v50  ;;  %v1800_v62 = vadd.f32 %v11301_v8, %v10173_v0  ;;  %3517 = vmatprep.mubr.bf16.mxu1 %v13200_v60  ;;  %11406 = vmatprep.mubr.bf16.mxu0 %v12018_v63  ;;  %v12025_v63 = vld [vmem:[%s12819_s18 + $0x1e8] ss:$12 sps:$4 sm:$0xff]   ;;  %v12050_v0 = vld [vmem:[#allocation3 + $0x340] sm:$0xff]  }
 0x1ce   : > { %v10175_v5 = vpop.f32.mrf.mxu1  ;;  %v13212_v38 = vpop.f32.mrf.mxu0  ;;  %10563 = vmatpush3.bf16.msra.mxu0 %v12028_v42  ;;  %11435 = vmatpush3.bf16.msra.mxu1 %v12056_v49  ;;  %v12043_v51 = vld [vmem:[#allocation3 + $0x308] sm:$0xff]   ;;  %v12080_v49 = vld [vmem:[#allocation3 + $0x380] sm:$0xff]  }
 0x1cf   : > { %v10176_v1 = vadd.f32 %v10175_v5, %v10174_v3  ;;  %10564 = vmatprep.subr.bf16.mxu0 %v12035_v13  ;;  %11436 = vmatprep.subr.bf16.mxu1 %v12064_v22  ;;  %v13222_v8 = vadd.f32 %v1800_v62, %v13065_v40  ;;  %v12026_v5 = vld [vmem:[%s12819_s18 + $0x200] ss:$12 sps:$4 sm:$0xff]  }
 0x1d0   : > { %v10177_v36 = vpop.f32.mrf.mxu1  ;;  %v13224_v30 = vpop.f32.mrf.mxu0 }
 0x1d1   : > { %15134 = vst [vmem:[#allocation29_spill] sm:$0xff] %v13222_v8  ;;  %v1805_v21 = vadd.f32 %v10176_v1, %v1804_v45  ;;  %v12051_v45 = vld [vmem:[#allocation3 + $0x300] sm:$0xff]  }
 0x1d2   : > { %v10178_v18 = vpop.f32.mrf.mxu1  ;;  %v13227_v61 = vpop.f32.mrf.mxu0  ;;  %10565 = vmatpush3.bf16.msra.mxu0 %v12036_v20  ;;  %11437 = vmatpush3.bf16.msra.mxu1 %v12064_v22  ;;  %v12090_v22 = vld [vmem:[#allocation3 + $0x438] sm:$0xff]  }
 0x1d3   : > { %v10179_v42 = vadd.f32 %v10178_v18, %v10177_v36  ;;  %10566 = vmatprep.subr.bf16.mxu0 %v12042_v59  ;;  %11438 = vmatprep.subr.bf16.mxu1 %v12072_v17  ;;  %v13230_v40 = vadd.f32 %v1805_v21, %v13077_v31  ;;  %v13236_v18 = vld [vmem:[#allocation3 + $0x478] sm:$0xff]  }
 0x1d4   : > { %v10180_v13 = vpop.f32.mrf.mxu1  ;;  %v13232_v3 = vpop.f32.mrf.mxu0  ;;  %3518 = vmatmul.mubr.bf16.gmra.mxu1 %v13215_v47  ;;  %11407 = vmatmul.mubr.bf16.gmra.mxu0 %v12019_v54  ;;  %v13241_v31 = vld [vmem:[%s12819_s18 + $0x150] ss:$12 sps:$4 sm:$0xff]  }
 0x1d5   : > { %15135 = vst [vmem:[#allocation30_spill] sm:$0xff] %v13230_v40  ;;  %v1808_v62 = vadd.f32 %v10179_v42, %v1807_v57  ;;  %3525 = vmatprep.mubr.bf16.mxu1 %v13219_v14  ;;  %11410 = vmatprep.mubr.bf16.mxu0 %v12025_v63  ;;  %v13251_v63 = vld [vmem:[%s12819_s18 + $0x16c] ss:$12 sps:$4 sm:$0xff]  }
 0x1d6   : > { %v10181_v20 = vpop.f32.mrf.mxu1  ;;  %v13238_v59 = vpop.f32.mrf.mxu0  ;;  %10567 = vmatpush3.bf16.msra.mxu0 %v12043_v51  ;;  %11439 = vmatpush3.bf16.msra.mxu1 %v12072_v17  ;;  %v12033_v42 = vld [vmem:[%s12819_s18 + $0x218] ss:$12 sps:$4 sm:$0xff]  }
 0x1d7   : > { %v10182_v1 = vadd.f32 %v10181_v20, %v10180_v13  ;;  %10568 = vmatprep.subr.bf16.mxu0 %v12050_v0  ;;  %11440 = vmatprep.subr.bf16.mxu1 %v12080_v49  ;;  %v13245_v57 = vadd.f32 %v1808_v62, %v13083_v41  ;;  %v13268_v13 = vld [vmem:[%s12819_s18 + $0x168] ss:$12 sps:$4 sm:$0xff]  }
 0x1d8   : > { %v10183_v54 = vpop.f32.mrf.mxu1  ;;  %v13247_v36 = vpop.f32.mrf.mxu0 }
 0x1d9   : > { %15136 = vst [vmem:[#allocation31_spill] sm:$0xff] %v13245_v57  ;;  %v1813_v21 = vadd.f32 %v13188_v6, %v10182_v1  ;;  %v12040_v1 = vld [vmem:[%s12819_s18 + $0x248] ss:$12 sps:$4 sm:$0xff]  }
 0x1da   : > { %v10184_v40 = vpop.f32.mrf.mxu1  ;;  %v13254_v8 = vpop.f32.mrf.mxu0  ;;  %10569 = vmatpush3.bf16.msra.mxu0 %v12051_v45  ;;  %11441 = vmatpush3.bf16.msra.mxu1 %v12080_v49  ;;  %v12034_v45 = vld [vmem:[%s12819_s18 + $0x230] ss:$12 sps:$4 sm:$0xff]  }
 0x1db   : > { %v10185_v17 = vadd.f32 %v10184_v40, %v10183_v54  ;;  %11474 = vmatprep.subr.bf16.mxu0 %v13236_v18  ;;  %10690 = vmatprep.subr.bf16.mxu1 %v12090_v22  ;;  %v13258_v41 = vadd.f32 %v1813_v21, %v13072_v9 }
 0x1dc   : > { %v10186_v51 = vpop.f32.mrf.mxu1  ;;  %v13260_v6 = vpop.f32.mrf.mxu0  ;;  %3526 = vmatmul.mubr.bf16.gmra.mxu1 %v13241_v31  ;;  %11411 = vmatmul.mubr.bf16.gmra.mxu0 %v12026_v5 }
 0x1dd   : > { %15137 = vst [vmem:[#allocation32_spill] sm:$0xff] %v13258_v41  ;;  %v1816_v0 = vadd.f32 %v13202_v52, %v10185_v17  ;;  %3533 = vmatprep.mubr.bf16.mxu1 %v13251_v63  ;;  %11414 = vmatprep.mubr.bf16.mxu0 %v12033_v42  ;;  %v13278_v52 = vld [vmem:[%s12819_s18 + $0x184] ss:$12 sps:$4 sm:$0xff]  }
 0x1de   : > { %v10187_v49 = vpop.f32.mrf.mxu1  ;;  %v13265_v40 = vpop.f32.mrf.mxu0 }
 0x1df   : > { %v10188_v9 = vadd.f32 %v10187_v49, %v10186_v51  ;;  %v13272_v62 = vadd.f32 %v1816_v0, %v13080_v32 }
 0x1e0   : > { %v10189_v22 = vpop.f32.mrf.mxu1  ;;  %v13274_v20 = vpop.f32.mrf.mxu0 }
 0x1e1   : > { %15138 = vst [vmem:[#allocation33_spill] sm:$0xff] %v13272_v62  ;;  %v1821_v5 = vadd.f32 %v10188_v9, %v13212_v38  ;;  %v13294_v9 = vld [vmem:[%s12819_s18 + $0x180] ss:$12 sps:$4 sm:$0xff]  }
 0x1e2   : > { %v10190_v54 = vpop.f32.mrf.mxu1  ;;  %v13281_v21 = vpop.f32.mrf.mxu0 }
 0x1e3   : > { %v10191_v42 = vadd.f32 %v10190_v54, %v10189_v22  ;;  %v13284_v17 = vadd.f32 %v1821_v5, %v13090_v58  ;;  %v12041_v58 = vld [vmem:[%s12819_s18 + $0x260] ss:$12 sps:$4 sm:$0xff]  }
 0x1e4   : > { %v10192_v51 = vpop.f32.mrf.mxu1  ;;  %v13286_v32 = vpop.f32.mrf.mxu0  ;;  %3534 = vmatmul.mubr.bf16.gmra.mxu1 %v13268_v13  ;;  %11415 = vmatmul.mubr.bf16.gmra.mxu0 %v12034_v45 }
 0x1e5   : > { %15139 = vst [vmem:[#allocation34_spill] sm:$0xff] %v13284_v17  ;;  %v1824_v38 = vadd.f32 %v10191_v42, %v13227_v61  ;;  %3541 = vmatprep.mubr.bf16.mxu1 %v13278_v52  ;;  %11418 = vmatprep.mubr.bf16.mxu0 %v12040_v1  ;;  %v13304_v61 = vld [vmem:[%s12819_s18 + $0x19c] ss:$12 sps:$4 sm:$0xff]   ;;  %v12048_v42 = vld [vmem:[%s12819_s18 + $0x278] ss:$12 sps:$4 sm:$0xff]  }
 0x1e6   : > { %v10193_v0 = vpop.f32.mrf.mxu1  ;;  %v13291_v49 = vpop.f32.mrf.mxu0 }
 0x1e7   : > { %v10194_v22 = vadd.f32 %v10193_v0, %v10192_v51  ;;  %v13298_v5 = vadd.f32 %v1824_v38, %v13095_v10 }
 0x1e8   : > { %v10195_v54 = vpop.f32.mrf.mxu1  ;;  %v13300_v17 = vpop.f32.mrf.mxu0 }
 0x1e9   : > { %15140 = vst [vmem:[#allocation35_spill] sm:$0xff] %v13298_v5  ;;  %v1829_v45 = vadd.f32 %v13208_v48, %v10194_v22  ;;  %v13320_v22 = vld [vmem:[%s12819_s18 + $0x198] ss:$12 sps:$4 sm:$0xff]  }
 0x1ea   : > { %v10196_v1 = vpop.f32.mrf.mxu1  ;;  %v13307_v57 = vpop.f32.mrf.mxu0 }
 0x1eb   : > { %v10197_v62 = vadd.f32 %v10196_v1, %v10195_v54  ;;  %v13310_v41 = vadd.f32 %v1829_v45, %v13086_v43  ;;  %v12049_v43 = vld [vmem:[%s12819_s18 + $0x290] ss:$12 sps:$4 sm:$0xff]  }
 0x1ec   : > { %v10198_v51 = vpop.f32.mrf.mxu1  ;;  %v13312_v10 = vpop.f32.mrf.mxu0  ;;  %3542 = vmatmul.mubr.bf16.gmra.mxu1 %v13294_v9  ;;  %11419 = vmatmul.mubr.bf16.gmra.mxu0 %v12041_v58 }
 0x1ed   : > { %15141 = vst [vmem:[#allocation36_spill] sm:$0xff] %v13310_v41  ;;  %v1832_v48 = vadd.f32 %v13224_v30, %v10197_v62  ;;  %3549 = vmatprep.mubr.bf16.mxu1 %v13304_v61  ;;  %11422 = vmatprep.mubr.bf16.mxu0 %v12048_v42  ;;  %v12054_v30 = vld [vmem:[%s12819_s18 + $0x1e4] ss:$12 sps:$4 sm:$0xff]  }
 0x1ee   : > { %v10199_v38 = vpop.f32.mrf.mxu1  ;;  %v13317_v0 = vpop.f32.mrf.mxu0 }
 0x1ef   : > { %v10200_v54 = vadd.f32 %v10199_v38, %v10198_v51  ;;  %v13324_v45 = vadd.f32 %v1832_v48, %v13092_v27 }
 0x1f0   : > { %v10201_v1 = vpop.f32.mrf.mxu1  ;;  %v13326_v5 = vpop.f32.mrf.mxu0 }
 0x1f1   : > { %15142 = vst [vmem:[#allocation37_spill] sm:$0xff] %v13324_v45  ;;  %v1837_v58 = vadd.f32 %v10200_v54, %v13238_v59  ;;  %v13350_v45 = vld [vmem:[%s12819_s18 + $0x1fc] ss:$12 sps:$4 sm:$0xff]  }
 0x1f2   : > { %v10202_v62 = vpop.f32.mrf.mxu1  ;;  %v13330_v41 = vpop.f32.mrf.mxu0 }
 0x1f3   : > { %v10203_v42 = vadd.f32 %v10202_v62, %v10201_v1  ;;  %v13333_v50 = vadd.f32 %v1837_v58, %v13102_v12  ;;  %v12052_v1 = vld [vmem:[%s12819_s18 + $0x1e0] ss:$12 sps:$4 sm:$0xff]  }
 0x1f4   : > { %v10204_v51 = vpop.f32.mrf.mxu1  ;;  %v13335_v38 = vpop.f32.mrf.mxu0  ;;  %3550 = vmatmul.mubr.bf16.gmra.mxu1 %v13320_v22  ;;  %11423 = vmatmul.mubr.bf16.gmra.mxu0 %v12049_v43 }
 0x1f5   : > { %15143 = vst [vmem:[#allocation38_spill] sm:$0xff] %v13333_v50  ;;  %v1840_v27 = vadd.f32 %v10203_v42, %v13254_v8  ;;  %3557 = vmatprep.mubr.bf16.mxu1 %v12054_v30  ;;  %4427 = vmatprep.mubr.bf16.mxu0 %v13161_v29  ;;  %v12063_v30 = vld [vmem:[#allocation3 + $0x470] sm:$0xff]  }
 0x1f6   : > { %v10205_v59 = vpop.f32.mrf.mxu1  ;;  %v13340_v48 = vpop.f32.mrf.mxu0 }
 0x1f7   : > { %v10206_v54 = vadd.f32 %v10205_v59, %v10204_v51  ;;  %v13344_v12 = vadd.f32 %v1840_v27, %v13107_v24  ;;  %v12071_v24 = vld [vmem:[#allocation3 + $0x468] sm:$0xff]  }
 0x1f8   : > { %v10207_v58 = vpop.f32.mrf.mxu1  ;;  %v13346_v62 = vpop.f32.mrf.mxu0 }
 0x1f9   : > { %15144 = vst [vmem:[#allocation39_spill] sm:$0xff] %v13344_v12  ;;  %v1845_v50 = vadd.f32 %v13232_v3, %v10206_v54 }
 0x1fa   : > { %v10208_v43 = vpop.f32.mrf.mxu1  ;;  %v13352_v8 = vpop.f32.mrf.mxu0 }
 0x1fb   : > { %v10209_v29 = vadd.f32 %v10208_v43, %v10207_v58  ;;  %v13355_v42 = vadd.f32 %v1845_v50, %v13104_v19  ;;  %v13365_v58 = vld [vmem:[%s12819_s18 + $0x1f8] ss:$12 sps:$4 sm:$0xff]  }
 0x1fc   : > { %v10210_v51 = vpop.f32.mrf.mxu1  ;;  %v10298_v59 = vpop.f32.mrf.mxu0  ;;  %3558 = vmatmul.mubr.bf16.gmra.mxu1 %v12052_v1  ;;  %4428 = vmatmul.mubr.bf16.vlgmr.msra.gmra.mxu0 %v13177_v16 }
 0x1fd   : > { %v1848_v3 = vadd.f32 %v13247_v36, %v10209_v29  ;;  %11475 = vmatpush3.bf16.msra.mxu0 %v13236_v18  ;;  %3565 = vmatprep.mubr.bf16.mxu1 %v13350_v45  ;;  %v13372_v18 = vld [vmem:[%s12819_s18 + $0x214] ss:$12 sps:$4 sm:$0xff]  }
 0x1fe   : > { %v10211_v27 = vpop.f32.mrf.mxu1  ;;  %v10299_v54 = vpop.f32.mrf.mxu0  ;;  %4435 = vmatprep.mubr.bf16.mxu0 %v13182_v39  ;;  %11476 = vmatprep.subr.bf16.mxu0 %v12063_v30 }
 0x1ff   : > { %v10212_v19 = vadd.f32 %v10211_v27, %v10210_v51  ;;  %v13362_v50 = vadd.f32 %v10299_v54, %v10298_v59  ;;  %v13368_v16 = vadd.f32 %v1848_v3, %v13111_v33  ;;  %v12079_v59 = vld [vmem:[#allocation3 + $0x460] sm:$0xff]  }
 0x200   : > { %v10213_v1 = vpop.f32.mrf.mxu1  ;;  %v10301_v43 = vpop.f32.mrf.mxu0 }
 0x201   : > { %v1853_v36 = vadd.f32 %v10212_v19, %v13265_v40  ;;  %11477 = vmatpush3.bf16.msra.mxu0 %v12063_v30 }
 0x202   : > { %v10214_v29 = vpop.f32.mrf.mxu1  ;;  %v10302_v12 = vpop.f32.mrf.mxu0  ;;  %11478 = vmatprep.subr.bf16.mxu0 %v12071_v24 }
 0x203   : > { %v10215_v39 = vadd.f32 %v10214_v29, %v10213_v1  ;;  %v13374_v51 = vadd.f32 %v10302_v12, %v10301_v43  ;;  %v13377_v27 = vadd.f32 %v1853_v36, %v13115_v23  ;;  %v13387_v23 = vld [vmem:[%s12819_s18 + $0x210] ss:$12 sps:$4 sm:$0xff]   ;;  %v13394_v29 = vld [vmem:[%s12819_s18 + $0x22c] ss:$12 sps:$4 sm:$0xff]  }
 0x204   : > { %v10216_v33 = vpop.f32.mrf.mxu1  ;;  %v10304_v3 = vpop.f32.mrf.mxu0  ;;  %3566 = vmatmul.mubr.bf16.gmra.mxu1 %v13365_v58  ;;  %4436 = vmatmul.mubr.bf16.gmra.mxu0 %v13193_v2  ;;  %v12089_v1 = vld [vmem:[#allocation3 + $0x458] sm:$0xff]  }
 0x205   : > { %v1856_v40 = vadd.f32 %v10215_v39, %v13281_v21  ;;  %3573 = vmatprep.mubr.bf16.mxu1 %v13372_v18  ;;  %4443 = vmatprep.mubr.bf16.mxu0 %v13200_v60 }
 0x206   : > { %v10217_v30 = vpop.f32.mrf.mxu1  ;;  %v10305_v12 = vpop.f32.mrf.mxu0  ;;  %11479 = vmatpush3.bf16.msra.mxu0 %v12071_v24  ;;  %v12098_v24 = vld [vmem:[#allocation3 + $0x450] sm:$0xff]  }
 0x207   : > { %v10218_v54 = vadd.f32 %v10217_v30, %v10216_v33  ;;  %v13384_v19 = vadd.f32 %v10305_v12, %v10304_v3  ;;  %11480 = vmatprep.subr.bf16.mxu0 %v12079_v59  ;;  %v13390_v43 = vadd.f32 %v1856_v40, %v13119_v53 }
 0x208   : > { %v10219_v2 = vpop.f32.mrf.mxu1  ;;  %v10307_v36 = vpop.f32.mrf.mxu0 }
 0x209   : > { %15145 = vst [vmem:[#allocation40_spill] sm:$0xff] %v13390_v43  ;;  %v1861_v21 = vadd.f32 %v13260_v6, %v10218_v54 }
 0x20a   : > { %v10220_v60 = vpop.f32.mrf.mxu1  ;;  %v10308_v39 = vpop.f32.mrf.mxu0  ;;  %11481 = vmatpush3.bf16.msra.mxu0 %v12079_v59  ;;  %v12107_v59 = vld [vmem:[#allocation3 + $0x448] sm:$0xff]  }
 0x20b   : > { %v10221_v33 = vadd.f32 %v10220_v60, %v10219_v2  ;;  %v13396_v3 = vadd.f32 %v10308_v39, %v10307_v36  ;;  %11482 = vmatprep.subr.bf16.mxu0 %v12089_v1  ;;  %v13399_v30 = vadd.f32 %v1861_v21, %v13126_v11  ;;  %v13412_v60 = vld [vmem:[%s12819_s18 + $0x228] ss:$12 sps:$4 sm:$0xff]   ;;  %v13416_v39 = vld [vmem:[%s12819_s18 + $0x244] ss:$12 sps:$4 sm:$0xff]  }
 0x20c   : > { %v10222_v12 = vpop.f32.mrf.mxu1  ;;  %v10310_v53 = vpop.f32.mrf.mxu0  ;;  %3574 = vmatmul.mubr.bf16.gmra.mxu1 %v13387_v23  ;;  %4444 = vmatmul.mubr.bf16.gmra.mxu0 %v13215_v47 }
 0x20d   : > { %v1864_v6 = vadd.f32 %v13274_v20, %v10221_v33  ;;  %3581 = vmatprep.mubr.bf16.mxu1 %v13394_v29  ;;  %4451 = vmatprep.mubr.bf16.mxu0 %v13219_v14 }
 0x20e   : > { %v10223_v40 = vpop.f32.mrf.mxu1  ;;  %v10311_v54 = vpop.f32.mrf.mxu0  ;;  %11483 = vmatpush3.bf16.msra.mxu0 %v12089_v1 }
 0x20f   : > { %v10224_v11 = vadd.f32 %v10223_v40, %v10222_v12  ;;  %v13406_v2 = vadd.f32 %v10311_v54, %v10310_v53  ;;  %11484 = vmatprep.subr.bf16.mxu0 %v12098_v24  ;;  %v13409_v36 = vadd.f32 %v1864_v6, %v13130_v4  ;;  %v12116_v4 = vld [vmem:[#allocation3 + $0x440] sm:$0xff]  }
 0x210   : > { %v10225_v21 = vpop.f32.mrf.mxu1  ;;  %v10313_v47 = vpop.f32.mrf.mxu0 }
 0x211   : > { %v1869_v20 = vadd.f32 %v10224_v11, %v13291_v49 }
 0x212   : > { %v10226_v14 = vpop.f32.mrf.mxu1  ;;  %v10314_v33 = vpop.f32.mrf.mxu0  ;;  %11485 = vmatpush3.bf16.msra.mxu0 %v12098_v24 }
 0x213   : > { %v10227_v43 = vadd.f32 %v10226_v14, %v10225_v21  ;;  %v13418_v1 = vadd.f32 %v10314_v33, %v10313_v47  ;;  %11486 = vmatprep.subr.bf16.mxu0 %v12107_v59  ;;  %v13421_v12 = vadd.f32 %v1869_v20, %v13140_v25  ;;  %v12131_v21 = vld [vmem:[#allocation3 + $0x4f8] sm:$0xff]   ;;  %v13434_v20 = vld [vmem:[%s12819_s18 + $0x240] ss:$12 sps:$4 sm:$0xff]  }
 0x214   : > { %v10228_v53 = vpop.f32.mrf.mxu1  ;;  %v10316_v6 = vpop.f32.mrf.mxu0  ;;  %3582 = vmatmul.mubr.bf16.gmra.mxu1 %v13412_v60  ;;  %4452 = vmatmul.mubr.bf16.gmra.mxu0 %v13241_v31 }
 0x215   : > { %v1872_v49 = vadd.f32 %v10227_v43, %v13307_v57  ;;  %3589 = vmatprep.mubr.bf16.mxu1 %v13416_v39  ;;  %4459 = vmatprep.mubr.bf16.mxu0 %v13251_v63  ;;  %v13438_v43 = vld [vmem:[%s12819_s18 + $0x25c] ss:$12 sps:$4 sm:$0xff]  }
 0x216   : > { %v10229_v24 = vpop.f32.mrf.mxu1  ;;  %v10317_v40 = vpop.f32.mrf.mxu0  ;;  %11487 = vmatpush3.bf16.msra.mxu0 %v12107_v59 }
 0x217   : > { %v10230_v25 = vadd.f32 %v10229_v24, %v10228_v53  ;;  %v13428_v54 = vadd.f32 %v10317_v40, %v10316_v6  ;;  %v13431_v11 = vadd.f32 %v1872_v49, %v13150_v28  ;;  %11488 = vmatprep.subr.bf16.mxu0 %v12116_v4 }
 0x218   : > { %v10231_v47 = vpop.f32.mrf.mxu1  ;;  %v10319_v31 = vpop.f32.mrf.mxu0 }
 0x219   : > { %v1877_v57 = vadd.f32 %v13286_v32, %v10230_v25 }
 0x21a   : > { %v10232_v63 = vpop.f32.mrf.mxu1  ;;  %v10320_v14 = vpop.f32.mrf.mxu0  ;;  %11489 = vmatpush3.bf16.msra.mxu0 %v12116_v4 }
 0x21b   : > { %v10233_v59 = vadd.f32 %v10232_v63, %v10231_v47  ;;  %v13440_v33 = vadd.f32 %v10320_v14, %v10319_v31  ;;  %v13443_v53 = vadd.f32 %v1877_v57, %v13164_v34  ;;  %10826 = vmatprep.subr.bf16.mxu0 %v12131_v21  ;;  %v13456_v47 = vld [vmem:[%s12819_s18 + $0x258] ss:$12 sps:$4 sm:$0xff]   ;;  %v13460_v31 = vld [vmem:[%s12819_s18 + $0x274] ss:$12 sps:$4 sm:$0xff]  }
 0x21c   : > { %v10234_v28 = vpop.f32.mrf.mxu1  ;;  %v10322_v6 = vpop.f32.mrf.mxu0  ;;  %3590 = vmatmul.mubr.bf16.gmra.mxu1 %v13434_v20  ;;  %4460 = vmatmul.mubr.bf16.gmra.mxu0 %v13268_v13 }
 0x21d   : > { %v1880_v32 = vadd.f32 %v13300_v17, %v10233_v59  ;;  %3597 = vmatprep.mubr.bf16.mxu1 %v13438_v43  ;;  %4467 = vmatprep.mubr.bf16.mxu0 %v13278_v52 }
 0x21e   : > { %v10235_v4 = vpop.f32.mrf.mxu1  ;;  %v10323_v49 = vpop.f32.mrf.mxu0 }
 0x21f   : > { %v10236_v24 = vadd.f32 %v10235_v4, %v10234_v28  ;;  %v13450_v34 = vadd.f32 %v10323_v49, %v10322_v6  ;;  %v13453_v40 = vadd.f32 %v1880_v32, %v13173_v44 }
 0x220   : > { %v10237_v25 = vpop.f32.mrf.mxu1  ;;  %v10325_v21 = vpop.f32.mrf.mxu0 }
 0x221   : > { %v1885_v13 = vadd.f32 %v10236_v24, %v13317_v0 }
 0x222   : > { %v10238_v17 = vpop.f32.mrf.mxu1  ;;  %v10326_v57 = vpop.f32.mrf.mxu0 }
 0x223   : > { %v10239_v63 = vadd.f32 %v10238_v17, %v10237_v25  ;;  %v13462_v52 = vadd.f32 %v10326_v57, %v10325_v21  ;;  %v13465_v14 = vadd.f32 %v1885_v13, %v13138_v37  ;;  %v13478_v25 = vld [vmem:[%s12819_s18 + $0x270] ss:$12 sps:$4 sm:$0xff]   ;;  %v13482_v21 = vld [vmem:[%s12819_s18 + $0x28c] ss:$12 sps:$4 sm:$0xff]  }
 0x224   : > { %v10240_v59 = vpop.f32.mrf.mxu1  ;;  %v10328_v44 = vpop.f32.mrf.mxu0  ;;  %3598 = vmatmul.mubr.bf16.gmra.mxu1 %v13456_v47  ;;  %4468 = vmatmul.mubr.bf16.gmra.mxu0 %v13294_v9 }
 0x225   : > { %v1888_v0 = vadd.f32 %v10239_v63, %v13330_v41  ;;  %3605 = vmatprep.mubr.bf16.mxu1 %v13460_v31  ;;  %4475 = vmatprep.mubr.bf16.mxu0 %v13304_v61  ;;  %v12086_v41 = vld [vmem:[%s12819_s18 + $0x1b4] ss:$12 sps:$4 sm:$0xff]  }
 0x226   : > { %v10241_v28 = vpop.f32.mrf.mxu1  ;;  %v10329_v6 = vpop.f32.mrf.mxu0 }
 0x227   : > { %v10242_v32 = vadd.f32 %v10241_v28, %v10240_v59  ;;  %v13472_v4 = vadd.f32 %v10329_v6, %v10328_v44  ;;  %v13475_v37 = vadd.f32 %v1888_v0, %v13148_v46 }
 0x228   : > { %v10243_v49 = vpop.f32.mrf.mxu1  ;;  %v10331_v24 = vpop.f32.mrf.mxu0 }
 0x229   : > { %v1893_v9 = vadd.f32 %v13312_v10, %v10242_v32 }
 0x22a   : > { %v10244_v13 = vpop.f32.mrf.mxu1  ;;  %v10332_v17 = vpop.f32.mrf.mxu0 }
 0x22b   : > { %v10245_v61 = vadd.f32 %v10244_v13, %v10243_v49  ;;  %v13485_v57 = vadd.f32 %v10332_v17, %v10331_v24  ;;  %v13488_v63 = vadd.f32 %v1893_v9, %v13133_v15  ;;  %v13500_v24 = vld [vmem:[%s12819_s18 + $0x288] ss:$12 sps:$4 sm:$0xff]   ;;  %v12084_v9 = vld [vmem:[%s12819_s18 + $0x1b0] ss:$12 sps:$4 sm:$0xff]  }
 0x22c   : > { %v10246_v46 = vpop.f32.mrf.mxu1  ;;  %v10334_v59 = vpop.f32.mrf.mxu0  ;;  %3606 = vmatmul.mubr.bf16.gmra.mxu1 %v13478_v25  ;;  %4476 = vmatmul.mubr.bf16.gmra.mxu0 %v13320_v22  ;;  %v12087_v13 = vld [vmem:[%s12819_s18 + $0x110] ss:$12 sps:$4 sm:$0xff]  }
 0x22d   : > { %v1896_v10 = vadd.f32 %v13326_v5, %v10245_v61  ;;  %3613 = vmatprep.mubr.bf16.mxu1 %v13482_v21  ;;  %4483 = vmatprep.mubr.bf16.mxu0 %v12086_v41 }
 0x22e   : > { %v10247_v44 = vpop.f32.mrf.mxu1  ;;  %v10335_v0 = vpop.f32.mrf.mxu0 }
 0x22f   : > { %v10248_v28 = vadd.f32 %v10247_v44, %v10246_v46  ;;  %v13494_v6 = vadd.f32 %v10335_v0, %v10334_v59  ;;  %v13497_v15 = vadd.f32 %v1896_v10, %v13143_v35 }
 0x230   : > { %v10249_v32 = vpop.f32.mrf.mxu1  ;;  %v10337_v49 = vpop.f32.mrf.mxu0 }
 0x231   : > { %v1901_v22 = vadd.f32 %v10248_v28, %v13340_v48 }
 0x232   : > { %v10250_v5 = vpop.f32.mrf.mxu1  ;;  %v10338_v17 = vpop.f32.mrf.mxu0 }
 0x233   : > { %v10251_v61 = vadd.f32 %v10250_v5, %v10249_v32  ;;  %v13505_v41 = vadd.f32 %v10338_v17, %v10337_v49  ;;  %v13508_v46 = vadd.f32 %v1901_v22, %v13158_v55  ;;  %v12088_v22 = vld [vmem:[%s12819_s18 + $0x128] ss:$12 sps:$4 sm:$0xff]  }
 0x234   : > { %v10252_v59 = vpop.f32.mrf.mxu1  ;;  %v10340_v35 = vpop.f32.mrf.mxu0  ;;  %3614 = vmatmul.mubr.bf16.gmra.mxu1 %v13500_v24  ;;  %4484 = vmatmul.mubr.bf16.gmra.mxu0 %v12084_v9  ;;  %v12091_v9 = vld [vmem:[#allocation3 + $0x3f8] sm:$0xff]  }
 0x235   : > { %15146 = vst [vmem:[#allocation41_spill] sm:$0xff] %v13508_v46  ;;  %v1904_v10 = vadd.f32 %v10251_v61, %v13352_v8  ;;  %4491 = vmatprep.mubr.bf16.mxu0 %v13350_v45  ;;  %11442 = vmatprep.mubr.bf16.mxu1 %v12087_v13  ;;  %v12092_v8 = vld [vmem:[%s12819_s18 + $0x140] ss:$12 sps:$4 sm:$0xff]   ;;  %v12094_v61 = vld [vmem:[#allocation3 + $0x430] sm:$0xff]  }
 0x236   : > { %v10253_v48 = vpop.f32.mrf.mxu1  ;;  %v10341_v44 = vpop.f32.mrf.mxu0 }
 0x237   : > { %v10254_v0 = vadd.f32 %v10253_v48, %v10252_v59  ;;  %v13513_v28 = vadd.f32 %v10341_v44, %v10340_v35  ;;  %v13516_v32 = vadd.f32 %v1904_v10, %v13170_v56  ;;  %v12095_v10 = vld [vmem:[#allocation3 + $0x3f0] sm:$0xff]  }
 0x238   : > { %v10255_v55 = vpop.f32.mrf.mxu1  ;;  %v10343_v49 = vpop.f32.mrf.mxu0 }
 0x239   : > { %v1909_v5 = vadd.f32 %v13335_v38, %v10254_v0 }
 0x23a   : > { %v10256_v17 = vpop.f32.mrf.mxu1  ;;  %v10344_v46 = vpop.f32.mrf.mxu0 }
 0x23b   : > { %v13522_v45 = vadd.f32 %v1909_v5, %v13153_v7  ;;  %v10257_v13 = vadd.f32 %v10256_v17, %v10255_v55  ;;  %v13524_v59 = vadd.f32 %v10344_v46, %v10343_v49  ;;  %v12099_v46 = vld [vmem:[#allocation3 + $0x428] sm:$0xff]  }
 0x23c   : > { %v10346_v35 = vpop.f32.mrf.mxu0  ;;  %v11348_v48 = vpop.f32.mrf.mxu1  ;;  %4492 = vmatmul.mubr.bf16.gmra.mxu0 %v13365_v58  ;;  %11443 = vmatmul.mubr.bf16.vlgmr.msra.gmra.mxu1 %v12088_v22  ;;  %v15147_v58 = vld [vmem:[#allocation28_spill] sm:$0xff]  ;;  %v15148_v5 = vld [vmem:[#allocation26_spill] sm:$0xff] }
 0x23d   : > { %v1912_v56 = vadd.f32 %v13346_v62, %v10257_v13  ;;  %v2731_v38 = vadd.f32 %v11348_v48, %v13384_v19  ;;  %10691 = vmatpush3.bf16.msra.mxu1 %v12091_v9  ;;  %4499 = vmatprep.mubr.bf16.mxu0 %v13372_v18  ;;  %v12093_v18 = vld [vmem:[%s12819_s18 + $0x158] ss:$12 sps:$4 sm:$0xff]   ;;  %v12100_v13 = vld [vmem:[#allocation3 + $0x3e8] sm:$0xff]  }
 0x23e   : > { %v10347_v7 = vpop.f32.mrf.mxu0  ;;  %v2722_v44 = vpop.f32.mrf.mxu1  ;;  %11446 = vmatprep.mubr.bf16.mxu1 %v12092_v8  ;;  %10692 = vmatprep.subr.bf16.mxu1 %v12094_v61  ;;  %v12096_v8 = vld [vmem:[%s12819_s18 + $0x170] ss:$12 sps:$4 sm:$0xff]  }
 0x23f   : > { %v13531_v0 = vadd.f32 %v1912_v56, %v13167_v26  ;;  %v13534_v55 = vadd.f32 %v2731_v38, %v15147_v58  ;;  %v13536_v62 = vadd.f32 %v10347_v7, %v10346_v35  ;;  %v2723_v19 = vadd.f32 %v13362_v50, %v2722_v44  ;;  %v15149_v48 = vld [vmem:[#allocation29_spill] sm:$0xff] }
 0x240   : > { %v10349_v49 = vpop.f32.mrf.mxu0  ;;  %v11349_v22 = vpop.f32.mrf.mxu1  ;;  %v12103_v38 = vld [vmem:[#allocation3 + $0x420] sm:$0xff]  }
 0x241   : > { %v13541_v9 = vadd.f32 %v2723_v19, %v15148_v5  ;;  %v2734_v17 = vadd.f32 %v11349_v22, %v13396_v3  ;;  %10693 = vmatpush3.bf16.msra.mxu1 %v12095_v10  ;;  %v15150_v3 = vld [vmem:[#allocation27_spill] sm:$0xff] }
 0x242   : > { %v10350_v61 = vpop.f32.mrf.mxu0  ;;  %v2725_v26 = vpop.f32.mrf.mxu1  ;;  %10694 = vmatprep.subr.bf16.mxu1 %v12099_v46 }
 0x243   : > { %v13546_v56 = vadd.f32 %v2734_v17, %v15149_v48  ;;  %v13548_v35 = vadd.f32 %v10350_v61, %v10349_v49  ;;  %v2726_v50 = vadd.f32 %v13374_v51, %v2725_v26  ;;  %v12104_v51 = vld [vmem:[#allocation3 + $0x3e0] sm:$0xff]   ;;  %v15151_v49 = vld [vmem:[#allocation32_spill] sm:$0xff] }
 0x244   : > { %v10352_v7 = vpop.f32.mrf.mxu0  ;;  %v11352_v44 = vpop.f32.mrf.mxu1  ;;  %4500 = vmatmul.mubr.bf16.gmra.mxu0 %v13387_v23  ;;  %11447 = vmatmul.mubr.bf16.gmra.mxu1 %v12093_v18  ;;  %v12108_v18 = vld [vmem:[#allocation3 + $0x418] sm:$0xff]   ;;  %v15152_v26 = vld [vmem:[#allocation30_spill] sm:$0xff] }
 0x245   : > { %v13553_v10 = vadd.f32 %v2726_v50, %v15150_v3  ;;  %v2747_v46 = vadd.f32 %v11352_v44, %v13428_v54  ;;  %4507 = vmatprep.mubr.bf16.mxu0 %v13394_v29  ;;  %11450 = vmatprep.mubr.bf16.mxu1 %v12096_v8  ;;  %v12097_v54 = vld [vmem:[%s12819_s18 + $0x188] ss:$12 sps:$4 sm:$0xff]   ;;  %v12101_v48 = vld [vmem:[%s12819_s18 + $0x1a0] ss:$12 sps:$4 sm:$0xff]   ;;  %v12109_v44 = vld [vmem:[#allocation3 + $0x3d8] sm:$0xff]  }
 0x246   : > { %v10353_v58 = vpop.f32.mrf.mxu0  ;;  %v2738_v19 = vpop.f32.mrf.mxu1  ;;  %10695 = vmatpush3.bf16.msra.mxu1 %v12100_v13  ;;  %v15153_v3 = vld [vmem:[#allocation33_spill] sm:$0xff] }
 0x247   : > { %v13558_v22 = vadd.f32 %v2747_v46, %v15151_v49  ;;  %v13560_v5 = vadd.f32 %v10353_v58, %v10352_v7  ;;  %v2739_v23 = vadd.f32 %v13406_v2, %v2738_v19  ;;  %10696 = vmatprep.subr.bf16.mxu1 %v12103_v38  ;;  %v12112_v38 = vld [vmem:[#allocation3 + $0x410] sm:$0xff]  }
 0x248   : > { %v10355_v17 = vpop.f32.mrf.mxu0  ;;  %v11353_v61 = vpop.f32.mrf.mxu1 }
 0x249   : > { %v13565_v29 = vadd.f32 %v2739_v23, %v15152_v26  ;;  %v2750_v8 = vadd.f32 %v11353_v61, %v13440_v33  ;;  %v15154_v33 = vld [vmem:[#allocation31_spill] sm:$0xff] }
 0x24a   : > { %v10356_v13 = vpop.f32.mrf.mxu0  ;;  %v2741_v50 = vpop.f32.mrf.mxu1  ;;  %10697 = vmatpush3.bf16.msra.mxu1 %v12104_v51 }
 0x24b   : > { %v13570_v7 = vadd.f32 %v2750_v8, %v15153_v3  ;;  %v13572_v46 = vadd.f32 %v10356_v13, %v10355_v17  ;;  %v2742_v2 = vadd.f32 %v13418_v1, %v2741_v50  ;;  %10698 = vmatprep.subr.bf16.mxu1 %v12108_v18  ;;  %v12113_v1 = vld [vmem:[#allocation3 + $0x3d0] sm:$0xff]   ;;  %v15156_v50 = vld [vmem:[#allocation34_spill] sm:$0xff] }
 0x24c   : > { %v10358_v58 = vpop.f32.mrf.mxu0  ;;  %v11356_v19 = vpop.f32.mrf.mxu1  ;;  %4508 = vmatmul.mubr.bf16.gmra.mxu0 %v13412_v60  ;;  %11451 = vmatmul.mubr.bf16.gmra.mxu1 %v12097_v54  ;;  %v15155_v18 = vld [vmem:[#allocation36_spill] sm:$0xff]  ;;  %v12117_v54 = vld [vmem:[#allocation3 + $0x408] sm:$0xff]  }
 0x24d   : > { %v13577_v49 = vadd.f32 %v2742_v2, %v15154_v33  ;;  %v2763_v51 = vadd.f32 %v11356_v19, %v13472_v4  ;;  %4515 = vmatprep.mubr.bf16.mxu0 %v13416_v39  ;;  %11454 = vmatprep.mubr.bf16.mxu1 %v12101_v48  ;;  %v12102_v4 = vld [vmem:[%s12819_s18 + $0x1b8] ss:$12 sps:$4 sm:$0xff]   ;;  %v12105_v3 = vld [vmem:[%s12819_s18 + $0x200] ss:$12 sps:$4 sm:$0xff]  }
 0x24e   : > { %v10359_v23 = vpop.f32.mrf.mxu0  ;;  %v2754_v17 = vpop.f32.mrf.mxu1  ;;  %10699 = vmatpush3.bf16.msra.mxu1 %v12109_v44  ;;  %v12118_v19 = vld [vmem:[#allocation3 + $0x3c8] sm:$0xff]   ;;  %v15157_v33 = vld [vmem:[#allocation37_spill] sm:$0xff] }
 0x24f   : > { %v13582_v61 = vadd.f32 %v2763_v51, %v15155_v18  ;;  %v13584_v26 = vadd.f32 %v10359_v23, %v10358_v58  ;;  %v2755_v60 = vadd.f32 %v13450_v34, %v2754_v17  ;;  %10700 = vmatprep.subr.bf16.mxu1 %v12112_v38  ;;  %v12124_v38 = vld [vmem:[#allocation3 + $0x400] sm:$0xff]  }
 0x250   : > { %v10361_v8 = vpop.f32.mrf.mxu0  ;;  %v11357_v13 = vpop.f32.mrf.mxu1 }
 0x251   : > { %v13589_v39 = vadd.f32 %v2755_v60, %v15156_v50  ;;  %v2766_v48 = vadd.f32 %v11357_v13, %v13485_v57  ;;  %v15158_v57 = vld [vmem:[#allocation35_spill] sm:$0xff] }
 0x252   : > { %v10362_v44 = vpop.f32.mrf.mxu0  ;;  %v2757_v2 = vpop.f32.mrf.mxu1  ;;  %10701 = vmatpush3.bf16.msra.mxu1 %v12113_v1 }
 0x253   : > { %v13594_v58 = vadd.f32 %v2766_v48, %v15157_v33  ;;  %v13596_v51 = vadd.f32 %v10362_v44, %v10361_v8  ;;  %v2758_v34 = vadd.f32 %v13462_v52, %v2757_v2  ;;  %10702 = vmatprep.subr.bf16.mxu1 %v12117_v54  ;;  %v12125_v52 = vld [vmem:[#allocation3 + $0x3c0] sm:$0xff]   ;;  %v12110_v2 = vld [vmem:[%s12819_s18 + $0x230] ss:$12 sps:$4 sm:$0xff]  }
 0x254   : > { %v10364_v23 = vpop.f32.mrf.mxu0  ;;  %v11360_v17 = vpop.f32.mrf.mxu1  ;;  %4516 = vmatmul.mubr.bf16.gmra.mxu0 %v13434_v20  ;;  %11455 = vmatmul.mubr.bf16.gmra.mxu1 %v12102_v4  ;;  %v13609_v4 = vld [vmem:[#allocation3 + $0x538] sm:$0xff]   ;;  %v15159_v44 = vld [vmem:[#allocation38_spill] sm:$0xff] }
 0x255   : > { %v13601_v18 = vadd.f32 %v2758_v34, %v15158_v57  ;;  %v2779_v1 = vadd.f32 %v11360_v17, %v13513_v28  ;;  %4523 = vmatprep.mubr.bf16.mxu0 %v13438_v43  ;;  %11458 = vmatprep.mubr.bf16.mxu1 %v12105_v3  ;;  %v12106_v28 = vld [vmem:[%s12819_s18 + $0x218] ss:$12 sps:$4 sm:$0xff]  }
 0x256   : > { %v10365_v60 = vpop.f32.mrf.mxu0  ;;  %v2770_v8 = vpop.f32.mrf.mxu1  ;;  %10703 = vmatpush3.bf16.msra.mxu1 %v12118_v19 }
 0x257   : > { %v13606_v54 = vadd.f32 %v2779_v1, %v13355_v42  ;;  %v10366_v13 = vadd.f32 %v10365_v60, %v10364_v23  ;;  %v2771_v20 = vadd.f32 %v13494_v6, %v2770_v8  ;;  %10704 = vmatprep.subr.bf16.mxu1 %v12124_v38 }
 0x258   : > { %v10367_v50 = vpop.f32.mrf.mxu0  ;;  %v11361_v48 = vpop.f32.mrf.mxu1 }
 0x259   : > { %v13613_v43 = vadd.f32 %v2771_v20, %v15159_v44  ;;  %v2782_v3 = vadd.f32 %v11361_v48, %v13524_v59  ;;  %v15160_v59 = vld [vmem:[#allocation39_spill] sm:$0xff] }
 0x25a   : > { %v10368_v19 = vpop.f32.mrf.mxu0  ;;  %v2773_v33 = vpop.f32.mrf.mxu1  ;;  %10705 = vmatpush3.bf16.msra.mxu1 %v12125_v52  ;;  %v12111_v20 = vld [vmem:[%s12819_s18 + $0x248] ss:$12 sps:$4 sm:$0xff]  }
 0x25b   : > { %v13618_v42 = vadd.f32 %v2782_v3, %v13368_v16  ;;  %v10369_v34 = vadd.f32 %v10368_v19, %v10367_v50  ;;  %v2774_v6 = vadd.f32 %v13505_v41, %v2773_v33  ;;  %11522 = vmatprep.subr.bf16.mxu1 %v13609_v4 }
 0x25c   : > { %v10370_v38 = vpop.f32.mrf.mxu0  ;;  %v11364_v23 = vpop.f32.mrf.mxu1  ;;  %4524 = vmatmul.mubr.bf16.gmra.mxu0 %v13456_v47  ;;  %11459 = vmatmul.mubr.bf16.gmra.mxu1 %v12106_v28 }
 0x25d   : > { %v13624_v17 = vadd.f32 %v2774_v6, %v15160_v59  ;;  %v2795_v57 = vadd.f32 %v11364_v23, %v13560_v5  ;;  %4531 = vmatprep.mubr.bf16.mxu0 %v13460_v31  ;;  %11462 = vmatprep.mubr.bf16.mxu1 %v12110_v2  ;;  %v12114_v5 = vld [vmem:[%s12819_s18 + $0x260] ss:$12 sps:$4 sm:$0xff]   ;;  %v12115_v59 = vld [vmem:[%s12819_s18 + $0x278] ss:$12 sps:$4 sm:$0xff]  }
 0x25e   : > { %v10371_v16 = vpop.f32.mrf.mxu0  ;;  %v2786_v1 = vpop.f32.mrf.mxu1 }
 0x25f   : > { %v13629_v41 = vadd.f32 %v2795_v57, %v13399_v30  ;;  %v10372_v60 = vadd.f32 %v10371_v16, %v10370_v38  ;;  %v2787_v8 = vadd.f32 %v13536_v62, %v2786_v1  ;;  %v12121_v1 = vld [vmem:[%s12819_s18 + $0x2a4] ss:$12 sps:$4 sm:$0xff]  }
 0x260   : > { %v10373_v52 = vpop.f32.mrf.mxu0  ;;  %v11365_v47 = vpop.f32.mrf.mxu1 }
 0x261   : > { %v13634_v50 = vadd.f32 %v2787_v8, %v13377_v27  ;;  %v2798_v48 = vadd.f32 %v11365_v47, %v13572_v46  ;;  %v15161_v27 = vld [vmem:[#allocation40_spill] sm:$0xff] }
 0x262   : > { %v10374_v28 = vpop.f32.mrf.mxu0  ;;  %v2789_v31 = vpop.f32.mrf.mxu1 }
 0x263   : > { %v13639_v44 = vadd.f32 %v2798_v48, %v13409_v36  ;;  %v10375_v3 = vadd.f32 %v10374_v28, %v10373_v52  ;;  %v2790_v30 = vadd.f32 %v13548_v35, %v2789_v31 }
 0x264   : > { %v10376_v2 = vpop.f32.mrf.mxu0  ;;  %v11368_v62 = vpop.f32.mrf.mxu1  ;;  %4532 = vmatmul.mubr.bf16.gmra.mxu0 %v13478_v25  ;;  %11463 = vmatmul.mubr.bf16.gmra.mxu1 %v12111_v20 }
 0x265   : > { %v13644_v19 = vadd.f32 %v2790_v30, %v15161_v27  ;;  %v2811_v46 = vadd.f32 %v11368_v62, %v10366_v13  ;;  %4539 = vmatprep.mubr.bf16.mxu0 %v13482_v21  ;;  %11466 = vmatprep.mubr.bf16.mxu1 %v12114_v5  ;;  %v12122_v13 = vld [vmem:[%s12819_s18 + $0x290] ss:$12 sps:$4 sm:$0xff]  }
 0x266   : > { %v10377_v36 = vpop.f32.mrf.mxu0  ;;  %v2802_v33 = vpop.f32.mrf.mxu1  ;;  %v12128_v27 = vld [vmem:[%s12819_s18 + $0x124] ss:$12 sps:$4 sm:$0xff]  }
 0x267   : > { %v13648_v6 = vadd.f32 %v2811_v46, %v13443_v53  ;;  %v10378_v35 = vadd.f32 %v10377_v36, %v10376_v2  ;;  %v2803_v38 = vadd.f32 %v13584_v26, %v2802_v33  ;;  %v12119_v2 = vld [vmem:[%s12819_s18 + $0x2a0] ss:$12 sps:$4 sm:$0xff]   ;;  %v12129_v46 = vld [vmem:[%s12819_s18 + $0x128] ss:$12 sps:$4 sm:$0xff]  }
 0x268   : > { %v10379_v23 = vpop.f32.mrf.mxu0  ;;  %v11369_v25 = vpop.f32.mrf.mxu1 }
 0x269   : > { %v13653_v57 = vadd.f32 %v2803_v38, %v13421_v12  ;;  %v2814_v16 = vadd.f32 %v11369_v25, %v10369_v34 }
 0x26a   : > { %v10380_v8 = vpop.f32.mrf.mxu0  ;;  %v2805_v21 = vpop.f32.mrf.mxu1 }
 0x26b   : > { %v13658_v52 = vadd.f32 %v2814_v16, %v13453_v40  ;;  %v10381_v47 = vadd.f32 %v10380_v8, %v10379_v23  ;;  %v2806_v53 = vadd.f32 %v13596_v51, %v2805_v21  ;;  %v12126_v8 = vld [vmem:[%s12819_s18 + $0x120] ss:$12 sps:$4 sm:$0xff]  }
 0x26c   : > { %v10382_v20 = vpop.f32.mrf.mxu0  ;;  %v11372_v26 = vpop.f32.mrf.mxu1  ;;  %4540 = vmatmul.mubr.bf16.gmra.mxu0 %v13500_v24  ;;  %11467 = vmatmul.mubr.bf16.gmra.mxu1 %v12115_v59  ;;  %v12123_v24 = vld [vmem:[%s12819_s18 + $0x2a8] ss:$12 sps:$4 sm:$0xff]   ;;  %v12130_v21 = vld [vmem:[%s12819_s18 + $0x140] ss:$12 sps:$4 sm:$0xff]  }
 0x26d   : > { %v13663_v12 = vadd.f32 %v2806_v53, %v13431_v11  ;;  %v2827_v34 = vadd.f32 %v11372_v26, %v10378_v35  ;;  %4547 = vmatprep.mubr.bf16.mxu0 %v12121_v1  ;;  %11470 = vmatprep.mubr.bf16.mxu1 %v12122_v13 }
 0x26e   : > { %v10383_v40 = vpop.f32.mrf.mxu0  ;;  %v2818_v48 = vpop.f32.mrf.mxu1 }
 0x26f   : > { %v13666_v5 = vadd.f32 %v2827_v34, %v13488_v63  ;;  %v10384_v51 = vadd.f32 %v10383_v40, %v10382_v20  ;;  %v2819_v28 = vadd.f32 %v10372_v60, %v2818_v48  ;;  %v12132_v20 = vld [vmem:[#allocation3 + $0x4b8] sm:$0xff]  }
 0x270   : > { %v10385_v31 = vpop.f32.mrf.mxu0  ;;  %v11373_v30 = vpop.f32.mrf.mxu1  ;;  %v12136_v34 = vld [vmem:[%s12819_s18 + $0x13c] ss:$12 sps:$4 sm:$0xff]   ;;  %v12137_v40 = vld [vmem:[%s12819_s18 + $0x158] ss:$12 sps:$4 sm:$0xff]  }
 0x271   : > { %v13671_v62 = vadd.f32 %v2819_v28, %v13465_v14  ;;  %v2830_v11 = vadd.f32 %v11373_v30, %v10381_v47  ;;  %v15162_v47 = vld [vmem:[#allocation41_spill] sm:$0xff]  ;;  %v12139_v30 = vld [vmem:[#allocation3 + $0x4f0] sm:$0xff]  }
 0x272   : > { %v10386_v36 = vpop.f32.mrf.mxu0  ;;  %v2821_v33 = vpop.f32.mrf.mxu1 }
 0x273   : > { %v13676_v35 = vadd.f32 %v2830_v11, %v13497_v15  ;;  %v10387_v63 = vadd.f32 %v10386_v36, %v10385_v31  ;;  %v2822_v38 = vadd.f32 %v10375_v3, %v2821_v33  ;;  %v12146_v33 = vld [vmem:[#allocation3 + $0x4e8] sm:$0xff]  }
 0x274   : > { %v10388_v60 = vpop.f32.mrf.mxu0  ;;  %v11376_v23 = vpop.f32.mrf.mxu1  ;;  %4548 = vmatmul.mubr.bf16.gmra.mxu0 %v12119_v2  ;;  %11471 = vmatmul.mubr.bf16.gmra.mxu1 %v12123_v24 }
 0x275   : > { %v13679_v25 = vadd.f32 %v2822_v38, %v13475_v37  ;;  %5361 = vmatprep.mubr.bf16.mxu1 %v12128_v27  ;;  %11490 = vmatprep.mubr.bf16.mxu0 %v12129_v46  ;;  %v12140_v46 = vld [vmem:[#allocation3 + $0x4b0] sm:$0xff]  }
 0x276   : > { %v10389_v14 = vpop.f32.mrf.mxu0  ;;  %v2834_v59 = vpop.f32.mrf.mxu1 }
 0x277   : > { %v10390_v16 = vadd.f32 %v10389_v14, %v10388_v60  ;;  %v2835_v15 = vadd.f32 %v10384_v51, %v2834_v59  ;;  %v12148_v51 = vld [vmem:[#allocation3 + $0x530] sm:$0xff]   ;;  %v12134_v14 = vld [vmem:[%s12819_s18 + $0x138] ss:$12 sps:$4 sm:$0xff]  }
 0x278   : > { %v10391_v1 = vpop.f32.mrf.mxu0  ;;  %v11377_v13 = vpop.f32.mrf.mxu1  ;;  %v12138_v59 = vld [vmem:[%s12819_s18 + $0x170] ss:$12 sps:$4 sm:$0xff]  }
 0x279   : > { %v2843_v3 = vadd.f32 %v11376_v23, %v10390_v16  ;;  %v13684_v53 = vadd.f32 %v2835_v15, %v15162_v47  ;;  %v12143_v16 = vld [vmem:[%s12819_s18 + $0x154] ss:$12 sps:$4 sm:$0xff]  }
 0x27a   : > { %v10392_v26 = vpop.f32.mrf.mxu0  ;;  %v2837_v37 = vpop.f32.mrf.mxu1  ;;  %v12144_v15 = vld [vmem:[%s12819_s18 + $0x188] ss:$12 sps:$4 sm:$0xff]   ;;  %v12178_v47 = vld [vmem:[#allocation3 + $0x520] sm:$0xff]  }
 0x27b   : > { %v13689_v48 = vadd.f32 %v2843_v3, %v13522_v45  ;;  %v10393_v28 = vadd.f32 %v10392_v26, %v10391_v1  ;;  %v2838_v31 = vadd.f32 %v10387_v63, %v2837_v37  ;;  %v12163_v63 = vld [vmem:[#allocation3 + $0x528] sm:$0xff]   ;;  %v12154_v3 = vld [vmem:[#allocation3 + $0x4e0] sm:$0xff]  }
 0x27c   : > { %v10434_v2 = vpop.f32.mrf.mxu1  ;;  %v11396_v24 = vpop.f32.mrf.mxu0  ;;  %5362 = vmatmul.mubr.bf16.vlgmr.msra.gmra.mxu1 %v12126_v8  ;;  %11491 = vmatmul.mubr.bf16.vlgmr.msra.gmra.mxu0 %v12130_v21  ;;  %v12147_v8 = vld [vmem:[#allocation3 + $0x4a8] sm:$0xff]  }
 0x27d   : > { %v2846_v11 = vadd.f32 %v11377_v13, %v10393_v28  ;;  %v13692_v27 = vadd.f32 %v2838_v31, %v13516_v32  ;;  %10827 = vmatpush3.bf16.msra.mxu0 %v12132_v20  ;;  %11523 = vmatpush3.bf16.msra.mxu1 %v13609_v4 }
 0x27e   : > { %v10435_v45 = vpop.f32.mrf.mxu1  ;;  %v3656_v36 = vpop.f32.mrf.mxu0  ;;  %5369 = vmatprep.mubr.bf16.mxu1 %v12136_v34  ;;  %11494 = vmatprep.mubr.bf16.mxu0 %v12137_v40 }
 0x27f   : > { %v13696_v38 = vadd.f32 %v2846_v11, %v13531_v0  ;;  %v10436_v60 = vadd.f32 %v10435_v45, %v10434_v2  ;;  %10828 = vmatprep.subr.bf16.mxu0 %v12139_v30  ;;  %11524 = vmatprep.subr.bf16.mxu1 %v12148_v51  ;;  %v12161_v30 = vld [vmem:[#allocation3 + $0x4d8] sm:$0xff]   ;;  %v12145_v45 = vld [vmem:[%s12819_s18 + $0x1a0] ss:$12 sps:$4 sm:$0xff]  }
 0x280   : > { %v10437_v32 = vpop.f32.mrf.mxu1  ;;  %v11397_v23 = vpop.f32.mrf.mxu0 }
 0x281   : > { %v3657_v4 = vadd.f32 %v10436_v60, %v3656_v36  ;;  %10829 = vmatpush3.bf16.msra.mxu0 %v12140_v46  ;;  %11525 = vmatpush3.bf16.msra.mxu1 %v12148_v51  ;;  %v12193_v51 = vld [vmem:[#allocation3 + $0x518] sm:$0xff]  }
 0x282   : > { %v10438_v1 = vpop.f32.mrf.mxu1  ;;  %v3659_v13 = vpop.f32.mrf.mxu0  ;;  %10830 = vmatprep.subr.bf16.mxu0 %v12146_v33  ;;  %11526 = vmatprep.subr.bf16.mxu1 %v12163_v63  ;;  %v12141_v46 = vld [vmem:[%s12819_s18 + $0x150] ss:$12 sps:$4 sm:$0xff]   ;;  %v12151_v33 = vld [vmem:[%s12819_s18 + $0x16c] ss:$12 sps:$4 sm:$0xff]  }
 0x283   : > { %v13703_v0 = vadd.f32 %v3657_v4, %v13541_v9  ;;  %v10439_v21 = vadd.f32 %v10438_v1, %v10437_v32  ;;  %v12155_v9 = vld [vmem:[#allocation3 + $0x4a0] sm:$0xff]   ;;  %v12204_v4 = vld [vmem:[#allocation3 + $0x510] sm:$0xff]  }
 0x284   : > { %v10440_v20 = vpop.f32.mrf.mxu1  ;;  %v13705_v26 = vpop.f32.mrf.mxu0  ;;  %5370 = vmatmul.mubr.bf16.gmra.mxu1 %v12134_v14  ;;  %11495 = vmatmul.mubr.bf16.gmra.mxu0 %v12138_v59  ;;  %v12152_v60 = vld [vmem:[%s12819_s18 + $0x1b8] ss:$12 sps:$4 sm:$0xff]   ;;  %v12169_v59 = vld [vmem:[#allocation3 + $0x4d0] sm:$0xff]  }
 0x285   : > { %v3660_v37 = vadd.f32 %v10439_v21, %v3659_v13  ;;  %5377 = vmatprep.mubr.bf16.mxu1 %v12143_v16  ;;  %11498 = vmatprep.mubr.bf16.mxu0 %v12144_v15  ;;  %v12170_v21 = vld [vmem:[#allocation3 + $0x490] sm:$0xff]  }
 0x286   : > { %v10441_v34 = vpop.f32.mrf.mxu1  ;;  %v3672_v40 = vpop.f32.mrf.mxu0  ;;  %10831 = vmatpush3.bf16.msra.mxu0 %v12147_v8  ;;  %11527 = vmatpush3.bf16.msra.mxu1 %v12163_v63  ;;  %v12162_v63 = vld [vmem:[#allocation3 + $0x498] sm:$0xff]  }
 0x287   : > { %v13708_v28 = vadd.f32 %v3660_v37, %v13553_v10  ;;  %v10442_v31 = vadd.f32 %v10441_v34, %v10440_v20  ;;  %10832 = vmatprep.subr.bf16.mxu0 %v12154_v3  ;;  %11528 = vmatprep.subr.bf16.mxu1 %v12178_v47  ;;  %v12176_v3 = vld [vmem:[#allocation3 + $0x4c8] sm:$0xff]  }
 0x288   : > { %v10443_v2 = vpop.f32.mrf.mxu1  ;;  %v13710_v11 = vpop.f32.mrf.mxu0  ;;  %v12149_v34 = vld [vmem:[%s12819_s18 + $0x168] ss:$12 sps:$4 sm:$0xff]  }
 0x289   : > { %v3665_v36 = vadd.f32 %v11396_v24, %v10442_v31 }
 0x28a   : > { %v10444_v32 = vpop.f32.mrf.mxu1  ;;  %v3675_v14 = vpop.f32.mrf.mxu0  ;;  %10833 = vmatpush3.bf16.msra.mxu0 %v12155_v9  ;;  %11529 = vmatpush3.bf16.msra.mxu1 %v12178_v47  ;;  %v12212_v47 = vld [vmem:[#allocation3 + $0x508] sm:$0xff]   ;;  %v12153_v9 = vld [vmem:[%s12819_s18 + $0x1d0] ss:$12 sps:$4 sm:$0xff]  }
 0x28b   : > { %v10445_v10 = vadd.f32 %v10444_v32, %v10443_v2  ;;  %10834 = vmatprep.subr.bf16.mxu0 %v12161_v30  ;;  %11530 = vmatprep.subr.bf16.mxu1 %v12193_v51  ;;  %v13717_v16 = vadd.f32 %v3665_v36, %v13534_v55  ;;  %v12158_v30 = vld [vmem:[%s12819_s18 + $0x184] ss:$12 sps:$4 sm:$0xff]  }
 0x28c   : > { %v10446_v15 = vpop.f32.mrf.mxu1  ;;  %v13719_v1 = vpop.f32.mrf.mxu0  ;;  %5378 = vmatmul.mubr.bf16.gmra.mxu1 %v12141_v46  ;;  %11499 = vmatmul.mubr.bf16.gmra.mxu0 %v12145_v45  ;;  %v12159_v2 = vld [vmem:[%s12819_s18 + $0x218] ss:$12 sps:$4 sm:$0xff]  }
 0x28d   : > { %v3668_v24 = vadd.f32 %v11397_v23, %v10445_v10  ;;  %5385 = vmatprep.mubr.bf16.mxu1 %v12151_v33  ;;  %11502 = vmatprep.mubr.bf16.mxu0 %v12152_v60  ;;  %v12184_v33 = vld [vmem:[#allocation3 + $0x4c0] sm:$0xff]  }
 0x28e   : > { %v10447_v13 = vpop.f32.mrf.mxu1  ;;  %v13721_v8 = vpop.f32.mrf.mxu0  ;;  %10835 = vmatpush3.bf16.msra.mxu0 %v12162_v63  ;;  %11531 = vmatpush3.bf16.msra.mxu1 %v12193_v51  ;;  %v12177_v51 = vld [vmem:[#allocation3 + $0x488] sm:$0xff]  }
 0x28f   : > { %v10448_v55 = vadd.f32 %v10447_v13, %v10446_v15  ;;  %10836 = vmatprep.subr.bf16.mxu0 %v12169_v59  ;;  %11532 = vmatprep.subr.bf16.mxu1 %v12204_v4  ;;  %v13724_v20 = vadd.f32 %v3668_v24, %v13546_v56  ;;  %v12220_v56 = vld [vmem:[#allocation3 + $0x500] sm:$0xff]   ;;  %v13741_v15 = vld [vmem:[#allocation3 + $0x5f8] sm:$0xff]  }
 0x290   : > { %v10449_v23 = vpop.f32.mrf.mxu1  ;;  %v13726_v37 = vpop.f32.mrf.mxu0  ;;  %v12230_v24 = vld [vmem:[#allocation3 + $0x5b8] sm:$0xff]  }
 0x291   : > { %v3673_v31 = vadd.f32 %v10448_v55, %v3672_v40  ;;  %v12156_v55 = vld [vmem:[%s12819_s18 + $0x180] ss:$12 sps:$4 sm:$0xff]  }
 0x292   : > { %v10450_v46 = vpop.f32.mrf.mxu1  ;;  %v13732_v45 = vpop.f32.mrf.mxu0  ;;  %10837 = vmatpush3.bf16.msra.mxu0 %v12170_v21  ;;  %11533 = vmatpush3.bf16.msra.mxu1 %v12204_v4  ;;  %v12185_v4 = vld [vmem:[#allocation3 + $0x480] sm:$0xff]  }
 0x293   : > { %v10451_v36 = vadd.f32 %v10450_v46, %v10449_v23  ;;  %10838 = vmatprep.subr.bf16.mxu0 %v12176_v3  ;;  %11534 = vmatprep.subr.bf16.mxu1 %v12212_v47  ;;  %v13735_v60 = vadd.f32 %v3673_v31, %v13565_v29  ;;  %v12160_v3 = vld [vmem:[%s12819_s18 + $0x230] ss:$12 sps:$4 sm:$0xff]  }
 0x294   : > { %v10452_v32 = vpop.f32.mrf.mxu1  ;;  %v13737_v63 = vpop.f32.mrf.mxu0  ;;  %5386 = vmatmul.mubr.bf16.gmra.mxu1 %v12149_v34  ;;  %11503 = vmatmul.mubr.bf16.gmra.mxu0 %v12153_v9  ;;  %v12166_v34 = vld [vmem:[%s12819_s18 + $0x19c] ss:$12 sps:$4 sm:$0xff]  }
 0x295   : > { %v3676_v40 = vadd.f32 %v10451_v36, %v3675_v14  ;;  %5393 = vmatprep.mubr.bf16.mxu1 %v12158_v30  ;;  %11506 = vmatprep.mubr.bf16.mxu0 %v12159_v2  ;;  %v12167_v9 = vld [vmem:[%s12819_s18 + $0x248] ss:$12 sps:$4 sm:$0xff]  }
 0x296   : > { %v10453_v10 = vpop.f32.mrf.mxu1  ;;  %v13739_v59 = vpop.f32.mrf.mxu0  ;;  %10839 = vmatpush3.bf16.msra.mxu0 %v12177_v51  ;;  %11535 = vmatpush3.bf16.msra.mxu1 %v12212_v47 }
 0x297   : > { %v10454_v29 = vadd.f32 %v10453_v10, %v10452_v32  ;;  %10840 = vmatprep.subr.bf16.mxu0 %v12184_v33  ;;  %11536 = vmatprep.subr.bf16.mxu1 %v12220_v56  ;;  %v13744_v14 = vadd.f32 %v3676_v40, %v13577_v49  ;;  %v12164_v40 = vld [vmem:[%s12819_s18 + $0x198] ss:$12 sps:$4 sm:$0xff]   ;;  %v12168_v10 = vld [vmem:[%s12819_s18 + $0x260] ss:$12 sps:$4 sm:$0xff]  }
 0x298   : > { %v10455_v13 = vpop.f32.mrf.mxu1  ;;  %v13746_v21 = vpop.f32.mrf.mxu0 }
 0x299   : > { %v3681_v23 = vadd.f32 %v13705_v26, %v10454_v29  ;;  %v12173_v29 = vld [vmem:[%s12819_s18 + $0x1b4] ss:$12 sps:$4 sm:$0xff]  }
 0x29a   : > { %v10456_v31 = vpop.f32.mrf.mxu1  ;;  %v13753_v47 = vpop.f32.mrf.mxu0  ;;  %10841 = vmatpush3.bf16.msra.mxu0 %v12185_v4  ;;  %11537 = vmatpush3.bf16.msra.mxu1 %v12220_v56 }
 0x29b   : > { %v10457_v30 = vadd.f32 %v10456_v31, %v10455_v13  ;;  %11570 = vmatprep.subr.bf16.mxu0 %v13741_v15  ;;  %10962 = vmatprep.subr.bf16.mxu1 %v12230_v24  ;;  %v13757_v49 = vadd.f32 %v3681_v23, %v13558_v22  ;;  %v12174_v24 = vld [vmem:[%s12819_s18 + $0x278] ss:$12 sps:$4 sm:$0xff]  }
 0x29c   : > { %v10458_v2 = vpop.f32.mrf.mxu1  ;;  %v13759_v46 = vpop.f32.mrf.mxu0  ;;  %5394 = vmatmul.mubr.bf16.gmra.mxu1 %v12156_v55  ;;  %11507 = vmatmul.mubr.bf16.gmra.mxu0 %v12160_v3 }
 0x29d   : > { %v3684_v26 = vadd.f32 %v13710_v11, %v10457_v30  ;;  %5401 = vmatprep.mubr.bf16.mxu1 %v12166_v34  ;;  %11510 = vmatprep.mubr.bf16.mxu0 %v12167_v9 }
 0x29e   : > { %v10459_v51 = vpop.f32.mrf.mxu1  ;;  %v13762_v36 = vpop.f32.mrf.mxu0 }
 0x29f   : > { %v10460_v33 = vadd.f32 %v10459_v51, %v10458_v2  ;;  %v13765_v56 = vadd.f32 %v3684_v26, %v13570_v7  ;;  %v12171_v26 = vld [vmem:[%s12819_s18 + $0x1b0] ss:$12 sps:$4 sm:$0xff]  }
 0x2a0   : > { %v10461_v22 = vpop.f32.mrf.mxu1  ;;  %v13767_v32 = vpop.f32.mrf.mxu0  ;;  %v12175_v51 = vld [vmem:[%s12819_s18 + $0x290] ss:$12 sps:$4 sm:$0xff]  }
 0x2a1   : > { %v3689_v4 = vadd.f32 %v10460_v33, %v13721_v8 }
 0x2a2   : > { %v10462_v13 = vpop.f32.mrf.mxu1  ;;  %v13774_v11 = vpop.f32.mrf.mxu0 }
 0x2a3   : > { %v10463_v55 = vadd.f32 %v10462_v13, %v10461_v22  ;;  %v13777_v3 = vadd.f32 %v3689_v4, %v13589_v39  ;;  %v12181_v22 = vld [vmem:[%s12819_s18 + $0x1cc] ss:$12 sps:$4 sm:$0xff]  }
 0x2a4   : > { %v10464_v7 = vpop.f32.mrf.mxu1  ;;  %v13779_v23 = vpop.f32.mrf.mxu0  ;;  %5402 = vmatmul.mubr.bf16.gmra.mxu1 %v12164_v40  ;;  %11511 = vmatmul.mubr.bf16.gmra.mxu0 %v12168_v10  ;;  %v12182_v40 = vld [vmem:[%s12819_s18 + $0x2a8] ss:$12 sps:$4 sm:$0xff]  }
 0x2a5   : > { %15163 = vst [vmem:[#allocation28_spill] sm:$0xff] %v13777_v3  ;;  %v3692_v8 = vadd.f32 %v10463_v55, %v13732_v45  ;;  %5409 = vmatprep.mubr.bf16.mxu1 %v12173_v29  ;;  %11514 = vmatprep.mubr.bf16.mxu0 %v12174_v24 }
 0x2a6   : > { %v10465_v34 = vpop.f32.mrf.mxu1  ;;  %v13782_v9 = vpop.f32.mrf.mxu0 }
 0x2a7   : > { %v10466_v31 = vadd.f32 %v10465_v34, %v10464_v7  ;;  %v13785_v30 = vadd.f32 %v3692_v8, %v13601_v18 }
 0x2a8   : > { %v10467_v39 = vpop.f32.mrf.mxu1  ;;  %v13787_v2 = vpop.f32.mrf.mxu0 }
 0x2a9   : > { %15164 = vst [vmem:[#allocation26_spill] sm:$0xff] %v13785_v30  ;;  %v3697_v33 = vadd.f32 %v13719_v1, %v10466_v31  ;;  %v12179_v31 = vld [vmem:[%s12819_s18 + $0x1c8] ss:$12 sps:$4 sm:$0xff]  }
 0x2aa   : > { %v10468_v10 = vpop.f32.mrf.mxu1  ;;  %v13794_v45 = vpop.f32.mrf.mxu0 }
 0x2ab   : > { %v10469_v4 = vadd.f32 %v10468_v10, %v10467_v39  ;;  %v13797_v29 = vadd.f32 %v3697_v33, %v13582_v61  ;;  %v12183_v39 = vld [vmem:[%s12819_s18 + $0x2c0] ss:$12 sps:$4 sm:$0xff]  }
 0x2ac   : > { %v10470_v18 = vpop.f32.mrf.mxu1  ;;  %v13799_v24 = vpop.f32.mrf.mxu0  ;;  %5410 = vmatmul.mubr.bf16.gmra.mxu1 %v12171_v26  ;;  %11515 = vmatmul.mubr.bf16.gmra.mxu0 %v12175_v51  ;;  %v13813_v26 = vld [vmem:[%s12819_s18 + $0x214] ss:$12 sps:$4 sm:$0xff]   ;;  %v12191_v51 = vld [vmem:[%s12819_s18 + $0x1e4] ss:$12 sps:$4 sm:$0xff]  }
 0x2ad   : > { %v3700_v1 = vadd.f32 %v13726_v37, %v10469_v4  ;;  %5417 = vmatprep.mubr.bf16.mxu1 %v12181_v22  ;;  %11518 = vmatprep.mubr.bf16.mxu0 %v12182_v40 }
 0x2ae   : > { %v10471_v13 = vpop.f32.mrf.mxu1  ;;  %v13802_v55 = vpop.f32.mrf.mxu0 }
 0x2af   : > { %v10472_v7 = vadd.f32 %v10471_v13, %v10470_v18  ;;  %v13805_v8 = vadd.f32 %v3700_v1, %v13594_v58 }
 0x2b0   : > { %v10473_v61 = vpop.f32.mrf.mxu1  ;;  %v13807_v34 = vpop.f32.mrf.mxu0 }
 0x2b1   : > { %15165 = vst [vmem:[#allocation29_spill] sm:$0xff] %v13805_v8  ;;  %v3705_v33 = vadd.f32 %v10472_v7, %v13739_v59 }
 0x2b2   : > { %v10474_v37 = vpop.f32.mrf.mxu1  ;;  %v13816_v22 = vpop.f32.mrf.mxu0 }
 0x2b3   : > { %v10475_v40 = vadd.f32 %v10474_v37, %v10473_v61  ;;  %v13819_v10 = vadd.f32 %v3705_v33, %v13613_v43  ;;  %v13833_v33 = vld [vmem:[%s12819_s18 + $0x210] ss:$12 sps:$4 sm:$0xff]   ;;  %v13838_v37 = vld [vmem:[%s12819_s18 + $0x22c] ss:$12 sps:$4 sm:$0xff]  }
 0x2b4   : > { %v10476_v58 = vpop.f32.mrf.mxu1  ;;  %v13821_v4 = vpop.f32.mrf.mxu0  ;;  %5418 = vmatmul.mubr.bf16.gmra.mxu1 %v12179_v31  ;;  %11519 = vmatmul.mubr.bf16.gmra.mxu0 %v12183_v39  ;;  %v12189_v31 = vld [vmem:[%s12819_s18 + $0x1e0] ss:$12 sps:$4 sm:$0xff]  }
 0x2b5   : > { %15166 = vst [vmem:[#allocation27_spill] sm:$0xff] %v13819_v10  ;;  %v3708_v59 = vadd.f32 %v10475_v40, %v13753_v47  ;;  %5425 = vmatprep.mubr.bf16.mxu1 %v13813_v26  ;;  %6295 = vmatprep.mubr.bf16.mxu0 %v12191_v51  ;;  %v12199_v51 = vld [vmem:[%s12819_s18 + $0x1fc] ss:$12 sps:$4 sm:$0xff]   ;;  %v12203_v10 = vld [vmem:[#allocation3 + $0x5f0] sm:$0xff]  }
 0x2b6   : > { %v10477_v18 = vpop.f32.mrf.mxu1  ;;  %v13825_v1 = vpop.f32.mrf.mxu0 }
 0x2b7   : > { %v10478_v13 = vadd.f32 %v10477_v18, %v10476_v58  ;;  %v13828_v7 = vadd.f32 %v3708_v59, %v13624_v17 }
 0x2b8   : > { %v10479_v43 = vpop.f32.mrf.mxu1  ;;  %v13830_v61 = vpop.f32.mrf.mxu0 }
 0x2b9   : > { %15167 = vst [vmem:[#allocation32_spill] sm:$0xff] %v13828_v7  ;;  %v3713_v39 = vadd.f32 %v13737_v63, %v10478_v13 }
 0x2ba   : > { %v10480_v47 = vpop.f32.mrf.mxu1  ;;  %v13840_v40 = vpop.f32.mrf.mxu0 }
 0x2bb   : > { %v10481_v30 = vadd.f32 %v10480_v47, %v10479_v43  ;;  %v13844_v58 = vadd.f32 %v3713_v39, %v13606_v54  ;;  %v12211_v54 = vld [vmem:[#allocation3 + $0x5e8] sm:$0xff]  }
 0x2bc   : > { %v10482_v17 = vpop.f32.mrf.mxu1  ;;  %v10570_v59 = vpop.f32.mrf.mxu0  ;;  %5426 = vmatmul.mubr.bf16.gmra.mxu1 %v13833_v33  ;;  %6296 = vmatmul.mubr.bf16.vlgmr.msra.gmra.mxu0 %v12189_v31 }
 0x2bd   : > { %15168 = vst [vmem:[#allocation30_spill] sm:$0xff] %v13844_v58  ;;  %v3716_v63 = vadd.f32 %v13746_v21, %v10481_v30  ;;  %11571 = vmatpush3.bf16.msra.mxu0 %v13741_v15  ;;  %5433 = vmatprep.mubr.bf16.mxu1 %v13838_v37  ;;  %v13856_v58 = vld [vmem:[%s12819_s18 + $0x228] ss:$12 sps:$4 sm:$0xff]   ;;  %v12197_v21 = vld [vmem:[%s12819_s18 + $0x1f8] ss:$12 sps:$4 sm:$0xff]  }
 0x2be   : > { %v10483_v18 = vpop.f32.mrf.mxu1  ;;  %v10571_v13 = vpop.f32.mrf.mxu0  ;;  %6303 = vmatprep.mubr.bf16.mxu0 %v12199_v51  ;;  %11572 = vmatprep.subr.bf16.mxu0 %v12203_v10  ;;  %v13861_v30 = vld [vmem:[%s12819_s18 + $0x244] ss:$12 sps:$4 sm:$0xff]  }
 0x2bf   : > { %v10484_v43 = vadd.f32 %v10483_v18, %v10482_v17  ;;  %v13850_v39 = vadd.f32 %v10571_v13, %v10570_v59  ;;  %v13853_v47 = vadd.f32 %v3716_v63, %v13618_v42  ;;  %v12219_v59 = vld [vmem:[#allocation3 + $0x5e0] sm:$0xff]  }
 0x2c0   : > { %v10485_v7 = vpop.f32.mrf.mxu1  ;;  %v10573_v31 = vpop.f32.mrf.mxu0 }
 0x2c1   : > { %v3721_v15 = vadd.f32 %v10484_v43, %v13762_v36  ;;  %11573 = vmatpush3.bf16.msra.mxu0 %v12203_v10 }
 0x2c2   : > { %v10486_v8 = vpop.f32.mrf.mxu1  ;;  %v10574_v51 = vpop.f32.mrf.mxu0  ;;  %11574 = vmatprep.subr.bf16.mxu0 %v12211_v54 }
 0x2c3   : > { %v10487_v3 = vadd.f32 %v10486_v8, %v10485_v7  ;;  %v13863_v17 = vadd.f32 %v10574_v51, %v10573_v31  ;;  %v13866_v42 = vadd.f32 %v3721_v15, %v13634_v50  ;;  %v12229_v50 = vld [vmem:[#allocation3 + $0x5d8] sm:$0xff]   ;;  %v13878_v15 = vld [vmem:[%s12819_s18 + $0x240] ss:$12 sps:$4 sm:$0xff]  }
 0x2c4   : > { %v10488_v63 = vpop.f32.mrf.mxu1  ;;  %v10576_v18 = vpop.f32.mrf.mxu0  ;;  %5434 = vmatmul.mubr.bf16.gmra.mxu1 %v13856_v58  ;;  %6304 = vmatmul.mubr.bf16.gmra.mxu0 %v12197_v21 }
 0x2c5   : > { %v3724_v36 = vadd.f32 %v10487_v3, %v13774_v11  ;;  %5441 = vmatprep.mubr.bf16.mxu1 %v13861_v30  ;;  %6311 = vmatprep.mubr.bf16.mxu0 %v13813_v26  ;;  %v13882_v3 = vld [vmem:[%s12819_s18 + $0x25c] ss:$12 sps:$4 sm:$0xff]  }
 0x2c6   : > { %v10489_v8 = vpop.f32.mrf.mxu1  ;;  %v10577_v10 = vpop.f32.mrf.mxu0  ;;  %11575 = vmatpush3.bf16.msra.mxu0 %v12211_v54 }
 0x2c7   : > { %v10490_v7 = vadd.f32 %v10489_v8, %v10488_v63  ;;  %v13872_v13 = vadd.f32 %v10577_v10, %v10576_v18  ;;  %11576 = vmatprep.subr.bf16.mxu0 %v12219_v59  ;;  %v13875_v43 = vadd.f32 %v3724_v36, %v13644_v19  ;;  %v12244_v18 = vld [vmem:[#allocation3 + $0x5d0] sm:$0xff]  }
 0x2c8   : > { %v10491_v31 = vpop.f32.mrf.mxu1  ;;  %v10579_v21 = vpop.f32.mrf.mxu0 }
 0x2c9   : > { %15169 = vst [vmem:[#allocation33_spill] sm:$0xff] %v13875_v43  ;;  %v3729_v11 = vadd.f32 %v13759_v46, %v10490_v7 }
 0x2ca   : > { %v10492_v26 = vpop.f32.mrf.mxu1  ;;  %v10580_v51 = vpop.f32.mrf.mxu0  ;;  %11577 = vmatpush3.bf16.msra.mxu0 %v12219_v59 }
 0x2cb   : > { %v10493_v54 = vadd.f32 %v10492_v26, %v10491_v31  ;;  %v13884_v63 = vadd.f32 %v10580_v51, %v10579_v21  ;;  %11578 = vmatprep.subr.bf16.mxu0 %v12229_v50  ;;  %v13887_v8 = vadd.f32 %v3729_v11, %v13629_v41  ;;  %v12259_v31 = vld [vmem:[#allocation3 + $0x5c8] sm:$0xff]   ;;  %v12205_v26 = vld [vmem:[%s12819_s18 + $0x258] ss:$12 sps:$4 sm:$0xff]   ;;  %v13902_v51 = vld [vmem:[%s12819_s18 + $0x274] ss:$12 sps:$4 sm:$0xff]  }
 0x2cc   : > { %v10494_v19 = vpop.f32.mrf.mxu1  ;;  %v10582_v36 = vpop.f32.mrf.mxu0  ;;  %5442 = vmatmul.mubr.bf16.gmra.mxu1 %v13878_v15  ;;  %6312 = vmatmul.mubr.bf16.gmra.mxu0 %v13833_v33 }
 0x2cd   : > { %v3732_v46 = vadd.f32 %v13767_v32, %v10493_v54  ;;  %5449 = vmatprep.mubr.bf16.mxu1 %v13882_v3  ;;  %6319 = vmatprep.mubr.bf16.mxu0 %v13838_v37 }
 0x2ce   : > { %v10495_v59 = vpop.f32.mrf.mxu1  ;;  %v10583_v10 = vpop.f32.mrf.mxu0  ;;  %11579 = vmatpush3.bf16.msra.mxu0 %v12229_v50 }
 0x2cf   : > { %v10496_v7 = vadd.f32 %v10495_v59, %v10494_v19  ;;  %v13894_v41 = vadd.f32 %v10583_v10, %v10582_v36  ;;  %11580 = vmatprep.subr.bf16.mxu0 %v12244_v18  ;;  %v13897_v21 = vadd.f32 %v3732_v46, %v13639_v44  ;;  %v12274_v36 = vld [vmem:[#allocation3 + $0x5c0] sm:$0xff]  }
 0x2d0   : > { %v10497_v11 = vpop.f32.mrf.mxu1  ;;  %v10585_v33 = vpop.f32.mrf.mxu0 }
 0x2d1   : > { %v3737_v32 = vadd.f32 %v10496_v7, %v13782_v9 }
 0x2d2   : > { %v10498_v54 = vpop.f32.mrf.mxu1  ;;  %v10586_v37 = vpop.f32.mrf.mxu0  ;;  %11581 = vmatpush3.bf16.msra.mxu0 %v12244_v18 }
 0x2d3   : > { %v10499_v43 = vadd.f32 %v10498_v54, %v10497_v11  ;;  %v13904_v50 = vadd.f32 %v10586_v37, %v10585_v33  ;;  %11582 = vmatprep.subr.bf16.mxu0 %v12259_v31  ;;  %v13907_v19 = vadd.f32 %v3737_v32, %v13653_v57  ;;  %v12289_v11 = vld [vmem:[#allocation3 + $0x678] sm:$0xff]  }
 0x2d4   : > { %v10500_v44 = vpop.f32.mrf.mxu1  ;;  %v10588_v46 = vpop.f32.mrf.mxu0  ;;  %5450 = vmatmul.mubr.bf16.gmra.mxu1 %v12205_v26  ;;  %6320 = vmatmul.mubr.bf16.gmra.mxu0 %v13856_v58  ;;  %v12208_v32 = vld [vmem:[%s12819_s18 + $0x270] ss:$12 sps:$4 sm:$0xff]  }
 0x2d5   : > { %15170 = vst [vmem:[#allocation31_spill] sm:$0xff] %v13907_v19  ;;  %v3740_v9 = vadd.f32 %v10499_v43, %v13794_v45  ;;  %5457 = vmatprep.mubr.bf16.mxu1 %v13902_v51  ;;  %6327 = vmatprep.mubr.bf16.mxu0 %v13861_v30  ;;  %v12215_v43 = vld [vmem:[%s12819_s18 + $0x28c] ss:$12 sps:$4 sm:$0xff]  }
 0x2d6   : > { %v10501_v18 = vpop.f32.mrf.mxu1  ;;  %v10589_v59 = vpop.f32.mrf.mxu0  ;;  %11583 = vmatpush3.bf16.msra.mxu0 %v12259_v31 }
 0x2d7   : > { %v10502_v10 = vadd.f32 %v10501_v18, %v10500_v44  ;;  %v13913_v57 = vadd.f32 %v10589_v59, %v10588_v46  ;;  %v13916_v7 = vadd.f32 %v3740_v9, %v13663_v12  ;;  %11584 = vmatprep.subr.bf16.mxu0 %v12274_v36 }
 0x2d8   : > { %v10503_v33 = vpop.f32.mrf.mxu1  ;;  %v10591_v58 = vpop.f32.mrf.mxu0 }
 0x2d9   : > { %v3745_v45 = vadd.f32 %v13779_v23, %v10502_v10 }
 0x2da   : > { %v10504_v54 = vpop.f32.mrf.mxu1  ;;  %v10592_v37 = vpop.f32.mrf.mxu0  ;;  %11585 = vmatpush3.bf16.msra.mxu0 %v12274_v36 }
 0x2db   : > { %v10505_v30 = vadd.f32 %v10504_v54, %v10503_v33  ;;  %v13921_v19 = vadd.f32 %v10592_v37, %v10591_v58  ;;  %v13924_v31 = vadd.f32 %v3745_v45, %v13648_v6  ;;  %11098 = vmatprep.subr.bf16.mxu0 %v12289_v11  ;;  %v12213_v11 = vld [vmem:[%s12819_s18 + $0x288] ss:$12 sps:$4 sm:$0xff]   ;;  %v12218_v58 = vld [vmem:[%s12819_s18 + $0x2a4] ss:$12 sps:$4 sm:$0xff]  }
 0x2dc   : > { %v10506_v12 = vpop.f32.mrf.mxu1  ;;  %v10594_v44 = vpop.f32.mrf.mxu0  ;;  %5458 = vmatmul.mubr.bf16.gmra.mxu1 %v12208_v32  ;;  %6328 = vmatmul.mubr.bf16.gmra.mxu0 %v13878_v15 }
 0x2dd   : > { %v3748_v23 = vadd.f32 %v13787_v2, %v10505_v30  ;;  %5465 = vmatprep.mubr.bf16.mxu1 %v12215_v43  ;;  %6335 = vmatprep.mubr.bf16.mxu0 %v13882_v3 }
 0x2de   : > { %v10507_v36 = vpop.f32.mrf.mxu1  ;;  %v10595_v46 = vpop.f32.mrf.mxu0 }
 0x2df   : > { %v10508_v9 = vadd.f32 %v10507_v36, %v10506_v12  ;;  %v13929_v18 = vadd.f32 %v10595_v46, %v10594_v44  ;;  %v13932_v6 = vadd.f32 %v3748_v23, %v13658_v52 }
 0x2e0   : > { %v10509_v59 = vpop.f32.mrf.mxu1  ;;  %v10597_v10 = vpop.f32.mrf.mxu0 }
 0x2e1   : > { %v3753_v33 = vadd.f32 %v10508_v9, %v13802_v55  ;;  %v12216_v9 = vld [vmem:[%s12819_s18 + $0x2a0] ss:$12 sps:$4 sm:$0xff]  }
 0x2e2   : > { %v10510_v15 = vpop.f32.mrf.mxu1  ;;  %v10598_v45 = vpop.f32.mrf.mxu0 }
 0x2e3   : > { %v10511_v2 = vadd.f32 %v10510_v15, %v10509_v59  ;;  %v13937_v54 = vadd.f32 %v10598_v45, %v10597_v10  ;;  %v13940_v3 = vadd.f32 %v3753_v33, %v13671_v62  ;;  %v12223_v10 = vld [vmem:[%s12819_s18 + $0x2bc] ss:$12 sps:$4 sm:$0xff]  }
 0x2e4   : > { %v10512_v37 = vpop.f32.mrf.mxu1  ;;  %v10600_v30 = vpop.f32.mrf.mxu0  ;;  %5466 = vmatmul.mubr.bf16.gmra.mxu1 %v12213_v11  ;;  %6336 = vmatmul.mubr.bf16.gmra.mxu0 %v12205_v26 }
 0x2e5   : > { %v3756_v52 = vadd.f32 %v10511_v2, %v13816_v22  ;;  %5473 = vmatprep.mubr.bf16.mxu1 %v12218_v58  ;;  %6343 = vmatprep.mubr.bf16.mxu0 %v13902_v51 }
 0x2e6   : > { %v10513_v55 = vpop.f32.mrf.mxu1  ;;  %v10601_v12 = vpop.f32.mrf.mxu0 }
 0x2e7   : > { %v10514_v44 = vadd.f32 %v10513_v55, %v10512_v37  ;;  %v13944_v23 = vadd.f32 %v10601_v12, %v10600_v30  ;;  %v13947_v36 = vadd.f32 %v3756_v52, %v13679_v25  ;;  %v12221_v12 = vld [vmem:[%s12819_s18 + $0x2b8] ss:$12 sps:$4 sm:$0xff]  }
 0x2e8   : > { %v10515_v62 = vpop.f32.mrf.mxu1  ;;  %v10603_v46 = vpop.f32.mrf.mxu0 }
 0x2e9   : > { %v3761_v59 = vadd.f32 %v13799_v24, %v10514_v44 }
 0x2ea   : > { %v10516_v26 = vpop.f32.mrf.mxu1  ;;  %v10604_v33 = vpop.f32.mrf.mxu0 }
 0x2eb   : > { %v10517_v22 = vadd.f32 %v10516_v26, %v10515_v62  ;;  %v13952_v58 = vadd.f32 %v10604_v33, %v10603_v46  ;;  %v13955_v51 = vadd.f32 %v3761_v59, %v13666_v5  ;;  %v12226_v62 = vld [vmem:[%s12819_s18 + $0x2d4] ss:$12 sps:$4 sm:$0xff]  }
 0x2ec   : > { %v10518_v15 = vpop.f32.mrf.mxu1  ;;  %v10606_v45 = vpop.f32.mrf.mxu0  ;;  %5474 = vmatmul.mubr.bf16.gmra.mxu1 %v12216_v9  ;;  %6344 = vmatmul.mubr.bf16.gmra.mxu0 %v12208_v32  ;;  %v12227_v46 = vld [vmem:[%s12819_s18 + $0x1e8] ss:$12 sps:$4 sm:$0xff]  }
 0x2ed   : > { %v3764_v25 = vadd.f32 %v13807_v34, %v10517_v22  ;;  %5481 = vmatprep.mubr.bf16.mxu1 %v12223_v10  ;;  %6351 = vmatprep.mubr.bf16.mxu0 %v12215_v43 }
 0x2ee   : > { %v10519_v24 = vpop.f32.mrf.mxu1  ;;  %v10607_v2 = vpop.f32.mrf.mxu0 }
 0x2ef   : > { %v10520_v37 = vadd.f32 %v10519_v24, %v10518_v15  ;;  %v13958_v30 = vadd.f32 %v10607_v2, %v10606_v45  ;;  %v13961_v52 = vadd.f32 %v3764_v25, %v13676_v35  ;;  %v12224_v24 = vld [vmem:[%s12819_s18 + $0x2d0] ss:$12 sps:$4 sm:$0xff]   ;;  %v12228_v2 = vld [vmem:[%s12819_s18 + $0x200] ss:$12 sps:$4 sm:$0xff]  }
 0x2f0   : > { %v10521_v5 = vpop.f32.mrf.mxu1  ;;  %v10609_v55 = vpop.f32.mrf.mxu0 }
 0x2f1   : > { %v3769_v44 = vadd.f32 %v10520_v37, %v13825_v1 }
 0x2f2   : > { %v10522_v32 = vpop.f32.mrf.mxu1  ;;  %v10610_v9 = vpop.f32.mrf.mxu0 }
 0x2f3   : > { %v10523_v34 = vadd.f32 %v10522_v32, %v10521_v5  ;;  %v13967_v59 = vadd.f32 %v10610_v9, %v10609_v55  ;;  %v13970_v43 = vadd.f32 %v3769_v44, %v13684_v53  ;;  %v12234_v5 = vld [vmem:[%s12819_s18 + $0x2ec] ss:$12 sps:$4 sm:$0xff]   ;;  %v12237_v44 = vld [vmem:[#allocation3 + $0x5b0] sm:$0xff]  }
 0x2f4   : > { %v10524_v10 = vpop.f32.mrf.mxu1  ;;  %v10612_v35 = vpop.f32.mrf.mxu0  ;;  %5482 = vmatmul.mubr.bf16.gmra.mxu1 %v12221_v12  ;;  %6352 = vmatmul.mubr.bf16.gmra.mxu0 %v12213_v11  ;;  %v12231_v11 = vld [vmem:[#allocation3 + $0x578] sm:$0xff]  }
 0x2f5   : > { %v3772_v26 = vadd.f32 %v10523_v34, %v13840_v40  ;;  %6359 = vmatprep.mubr.bf16.mxu0 %v12226_v62  ;;  %11538 = vmatprep.mubr.bf16.mxu1 %v12227_v46  ;;  %v12235_v12 = vld [vmem:[%s12819_s18 + $0x218] ss:$12 sps:$4 sm:$0xff]  }
 0x2f6   : > { %v10525_v1 = vpop.f32.mrf.mxu1  ;;  %v10613_v33 = vpop.f32.mrf.mxu0 }
 0x2f7   : > { %v10526_v22 = vadd.f32 %v10525_v1, %v10524_v10  ;;  %v13973_v15 = vadd.f32 %v10613_v33, %v10612_v35  ;;  %v13976_v45 = vadd.f32 %v3772_v26, %v13692_v27  ;;  %v12238_v10 = vld [vmem:[#allocation3 + $0x570] sm:$0xff]   ;;  %v12245_v26 = vld [vmem:[#allocation3 + $0x5a8] sm:$0xff]  }
 0x2f8   : > { %v10527_v53 = vpop.f32.mrf.mxu1  ;;  %v10615_v25 = vpop.f32.mrf.mxu0 }
 0x2f9   : > { %v3777_v37 = vadd.f32 %v13821_v4, %v10526_v22 }
 0x2fa   : > { %v10528_v40 = vpop.f32.mrf.mxu1  ;;  %v10616_v55 = vpop.f32.mrf.mxu0 }
 0x2fb   : > { %v13984_v62 = vadd.f32 %v3777_v37, %v13689_v48  ;;  %v10529_v46 = vadd.f32 %v10528_v40, %v10527_v53  ;;  %v13986_v32 = vadd.f32 %v10616_v55, %v10615_v25  ;;  %v12232_v25 = vld [vmem:[%s12819_s18 + $0x2e8] ss:$12 sps:$4 sm:$0xff]  }
 0x2fc   : > { %v10618_v27 = vpop.f32.mrf.mxu0  ;;  %v11444_v9 = vpop.f32.mrf.mxu1  ;;  %6360 = vmatmul.mubr.bf16.gmra.mxu0 %v12224_v24  ;;  %11539 = vmatmul.mubr.bf16.vlgmr.msra.gmra.mxu1 %v12228_v2  ;;  %v12236_v24 = vld [vmem:[%s12819_s18 + $0x230] ss:$12 sps:$4 sm:$0xff]  }
 0x2fd   : > { %v3780_v34 = vadd.f32 %v13830_v61, %v10529_v46  ;;  %v4599_v4 = vadd.f32 %v11444_v9, %v13872_v13  ;;  %10963 = vmatpush3.bf16.msra.mxu1 %v12231_v11  ;;  %6367 = vmatprep.mubr.bf16.mxu0 %v12234_v5  ;;  %v12241_v11 = vld [vmem:[%s12819_s18 + $0x304] ss:$12 sps:$4 sm:$0xff]  }
 0x2fe   : > { %v10619_v35 = vpop.f32.mrf.mxu0  ;;  %v4590_v48 = vpop.f32.mrf.mxu1  ;;  %11542 = vmatprep.mubr.bf16.mxu1 %v12235_v12  ;;  %10964 = vmatprep.subr.bf16.mxu1 %v12237_v44  ;;  %v12252_v44 = vld [vmem:[#allocation3 + $0x5a0] sm:$0xff]  }
 0x2ff   : > { %v13991_v1 = vadd.f32 %v3780_v34, %v13696_v38  ;;  %v13994_v33 = vadd.f32 %v4599_v4, %v13717_v16  ;;  %v13996_v61 = vadd.f32 %v10619_v35, %v10618_v27  ;;  %v4591_v13 = vadd.f32 %v13850_v39, %v4590_v48  ;;  %v12242_v38 = vld [vmem:[%s12819_s18 + $0x248] ss:$12 sps:$4 sm:$0xff]  }
 0x300   : > { %v10621_v22 = vpop.f32.mrf.mxu0  ;;  %v11445_v53 = vpop.f32.mrf.mxu1  ;;  %v12246_v16 = vld [vmem:[#allocation3 + $0x568] sm:$0xff]  }
 0x301   : > { %v14002_v2 = vadd.f32 %v4591_v13, %v13703_v0  ;;  %v4602_v37 = vadd.f32 %v11445_v53, %v13884_v63  ;;  %10965 = vmatpush3.bf16.msra.mxu1 %v12238_v10  ;;  %v12249_v53 = vld [vmem:[%s12819_s18 + $0x31c] ss:$12 sps:$4 sm:$0xff]  }
 0x302   : > { %v10622_v5 = vpop.f32.mrf.mxu0  ;;  %v4593_v40 = vpop.f32.mrf.mxu1  ;;  %10966 = vmatprep.subr.bf16.mxu1 %v12245_v26  ;;  %v12243_v26 = vld [vmem:[%s12819_s18 + $0x260] ss:$12 sps:$4 sm:$0xff]  }
 0x303   : > { %v14008_v55 = vadd.f32 %v4602_v37, %v13724_v20  ;;  %v14010_v39 = vadd.f32 %v10622_v5, %v10621_v22  ;;  %v4594_v12 = vadd.f32 %v13863_v17, %v4593_v40  ;;  %v12253_v17 = vld [vmem:[#allocation3 + $0x560] sm:$0xff]   ;;  %v12261_v37 = vld [vmem:[#allocation3 + $0x558] sm:$0xff]   ;;  %v12267_v5 = vld [vmem:[#allocation3 + $0x590] sm:$0xff]  }
 0x304   : > { %v10624_v46 = vpop.f32.mrf.mxu0  ;;  %v11448_v0 = vpop.f32.mrf.mxu1  ;;  %6368 = vmatmul.mubr.bf16.gmra.mxu0 %v12232_v25  ;;  %11543 = vmatmul.mubr.bf16.gmra.mxu1 %v12236_v24  ;;  %v12250_v25 = vld [vmem:[%s12819_s18 + $0x278] ss:$12 sps:$4 sm:$0xff]  }
 0x305   : > { %v14014_v63 = vadd.f32 %v4594_v12, %v13708_v28  ;;  %v4615_v27 = vadd.f32 %v11448_v0, %v13913_v57  ;;  %6375 = vmatprep.mubr.bf16.mxu0 %v12241_v11  ;;  %11546 = vmatprep.mubr.bf16.mxu1 %v12242_v38  ;;  %v12260_v28 = vld [vmem:[#allocation3 + $0x598] sm:$0xff]   ;;  %v12239_v57 = vld [vmem:[%s12819_s18 + $0x300] ss:$12 sps:$4 sm:$0xff]  }
 0x306   : > { %v10625_v20 = vpop.f32.mrf.mxu0  ;;  %v4606_v9 = vpop.f32.mrf.mxu1  ;;  %10967 = vmatpush3.bf16.msra.mxu1 %v12246_v16 }
 0x307   : > { %v14018_v34 = vadd.f32 %v4615_v27, %v13757_v49  ;;  %v14020_v4 = vadd.f32 %v10625_v20, %v10624_v46  ;;  %v4607_v10 = vadd.f32 %v13894_v41, %v4606_v9  ;;  %10968 = vmatprep.subr.bf16.mxu1 %v12252_v44  ;;  %v12251_v9 = vld [vmem:[%s12819_s18 + $0x290] ss:$12 sps:$4 sm:$0xff]  }
 0x308   : > { %v10627_v35 = vpop.f32.mrf.mxu0  ;;  %v11449_v48 = vpop.f32.mrf.mxu1 }
 0x309   : > { %v14026_v13 = vadd.f32 %v4607_v10, %v13735_v60  ;;  %v4618_v22 = vadd.f32 %v11449_v48, %v13921_v19  ;;  %v12257_v48 = vld [vmem:[%s12819_s18 + $0x2d8] ss:$12 sps:$4 sm:$0xff]  }
 0x30a   : > { %v10628_v24 = vpop.f32.mrf.mxu0  ;;  %v4609_v49 = vpop.f32.mrf.mxu1  ;;  %10969 = vmatpush3.bf16.msra.mxu1 %v12253_v17  ;;  %v15171_v17 = vld [vmem:[#allocation28_spill] sm:$0xff] }
 0x30b   : > { %v14032_v11 = vadd.f32 %v4618_v22, %v13765_v56  ;;  %v14034_v41 = vadd.f32 %v10628_v24, %v10627_v35  ;;  %v4610_v38 = vadd.f32 %v13904_v50, %v4609_v49  ;;  %10970 = vmatprep.subr.bf16.mxu1 %v12260_v28  ;;  %v12268_v50 = vld [vmem:[#allocation3 + $0x550] sm:$0xff]   ;;  %v15172_v22 = vld [vmem:[#allocation29_spill] sm:$0xff] }
 0x30c   : > { %v10630_v40 = vpop.f32.mrf.mxu0  ;;  %v11452_v60 = vpop.f32.mrf.mxu1  ;;  %6376 = vmatmul.mubr.bf16.gmra.mxu0 %v12239_v57  ;;  %11547 = vmatmul.mubr.bf16.gmra.mxu1 %v12243_v26  ;;  %v12256_v35 = vld [vmem:[%s12819_s18 + $0x334] ss:$12 sps:$4 sm:$0xff]   ;;  %v12276_v26 = vld [vmem:[#allocation3 + $0x548] sm:$0xff]  }
 0x30d   : > { %v14038_v19 = vadd.f32 %v4610_v38, %v13744_v14  ;;  %v4631_v16 = vadd.f32 %v11452_v60, %v13944_v23  ;;  %6383 = vmatprep.mubr.bf16.mxu0 %v12249_v53  ;;  %11550 = vmatprep.mubr.bf16.mxu1 %v12250_v25  ;;  %v12275_v14 = vld [vmem:[#allocation3 + $0x588] sm:$0xff]   ;;  %v12247_v23 = vld [vmem:[%s12819_s18 + $0x318] ss:$12 sps:$4 sm:$0xff]  }
 0x30e   : > { %v10631_v56 = vpop.f32.mrf.mxu0  ;;  %v4622_v12 = vpop.f32.mrf.mxu1  ;;  %10971 = vmatpush3.bf16.msra.mxu1 %v12261_v37  ;;  %v12282_v24 = vld [vmem:[#allocation3 + $0x580] sm:$0xff]  }
 0x30f   : > { %v14042_v44 = vadd.f32 %v4631_v16, %v13797_v29  ;;  %v14044_v46 = vadd.f32 %v10631_v56, %v10630_v40  ;;  %v4623_v0 = vadd.f32 %v13929_v18, %v4622_v12  ;;  %10972 = vmatprep.subr.bf16.mxu1 %v12267_v5  ;;  %v15174_v16 = vld [vmem:[#allocation30_spill] sm:$0xff] }
 0x310   : > { %v10633_v27 = vpop.f32.mrf.mxu0  ;;  %v11453_v20 = vpop.f32.mrf.mxu1 }
 0x311   : > { %v14050_v10 = vadd.f32 %v4623_v0, %v15171_v17  ;;  %v4634_v28 = vadd.f32 %v11453_v20, %v13952_v58  ;;  %v15173_v58 = vld [vmem:[#allocation26_spill] sm:$0xff]  ;;  %v14069_v0 = vld [vmem:[#allocation3 + $0x6b8] sm:$0xff]  }
 0x312   : > { %v10634_v57 = vpop.f32.mrf.mxu0  ;;  %v4625_v29 = vpop.f32.mrf.mxu1  ;;  %10973 = vmatpush3.bf16.msra.mxu1 %v12268_v50  ;;  %v12258_v20 = vld [vmem:[%s12819_s18 + $0x2f0] ss:$12 sps:$4 sm:$0xff]  }
 0x313   : > { %v14056_v53 = vadd.f32 %v4634_v28, %v15172_v22  ;;  %v14058_v18 = vadd.f32 %v10634_v57, %v10633_v27  ;;  %v4626_v25 = vadd.f32 %v13937_v54, %v4625_v29  ;;  %10974 = vmatprep.subr.bf16.mxu1 %v12275_v14  ;;  %v12283_v54 = vld [vmem:[#allocation3 + $0x540] sm:$0xff]   ;;  %v12264_v28 = vld [vmem:[%s12819_s18 + $0x34c] ss:$12 sps:$4 sm:$0xff]  }
 0x314   : > { %v10636_v49 = vpop.f32.mrf.mxu0  ;;  %v11456_v37 = vpop.f32.mrf.mxu1  ;;  %6384 = vmatmul.mubr.bf16.gmra.mxu0 %v12247_v23  ;;  %11551 = vmatmul.mubr.bf16.gmra.mxu1 %v12251_v9  ;;  %v15175_v23 = vld [vmem:[#allocation27_spill] sm:$0xff] }
 0x315   : > { %v14062_v38 = vadd.f32 %v4626_v25, %v15173_v58  ;;  %v4647_v5 = vadd.f32 %v11456_v37, %v13973_v15  ;;  %6391 = vmatprep.mubr.bf16.mxu0 %v12256_v35  ;;  %11554 = vmatprep.mubr.bf16.mxu1 %v12257_v48  ;;  %v12254_v15 = vld [vmem:[%s12819_s18 + $0x330] ss:$12 sps:$4 sm:$0xff]   ;;  %v12265_v35 = vld [vmem:[%s12819_s18 + $0x308] ss:$12 sps:$4 sm:$0xff]  }
 0x316   : > { %v10637_v40 = vpop.f32.mrf.mxu0  ;;  %v4638_v60 = vpop.f32.mrf.mxu1  ;;  %10975 = vmatpush3.bf16.msra.mxu1 %v12276_v26 }
 0x317   : > { %v14066_v56 = vadd.f32 %v4647_v5, %v15174_v16  ;;  %v10638_v12 = vadd.f32 %v10637_v40, %v10636_v49  ;;  %v4639_v50 = vadd.f32 %v13958_v30, %v4638_v60  ;;  %10976 = vmatprep.subr.bf16.mxu1 %v12282_v24  ;;  %v12266_v16 = vld [vmem:[%s12819_s18 + $0x320] ss:$12 sps:$4 sm:$0xff]  }
 0x318   : > { %v10639_v14 = vpop.f32.mrf.mxu0  ;;  %v11457_v27 = vpop.f32.mrf.mxu1 }
 0x319   : > { %v14074_v9 = vadd.f32 %v4639_v50, %v15175_v23  ;;  %v4650_v17 = vadd.f32 %v11457_v27, %v13986_v32  ;;  %v15176_v32 = vld [vmem:[#allocation32_spill] sm:$0xff] }
 0x31a   : > { %v10640_v48 = vpop.f32.mrf.mxu0  ;;  %v4641_v57 = vpop.f32.mrf.mxu1  ;;  %10977 = vmatpush3.bf16.msra.mxu1 %v12283_v54  ;;  %v12262_v54 = vld [vmem:[%s12819_s18 + $0x348] ss:$12 sps:$4 sm:$0xff]   ;;  %v12272_v27 = vld [vmem:[%s12819_s18 + $0x338] ss:$12 sps:$4 sm:$0xff]  }
 0x31b   : > { %v14080_v29 = vadd.f32 %v4650_v17, %v13853_v47  ;;  %v10641_v30 = vadd.f32 %v10640_v48, %v10639_v14  ;;  %v4642_v26 = vadd.f32 %v13967_v59, %v4641_v57  ;;  %11618 = vmatprep.subr.bf16.mxu1 %v14069_v0 }
 0x31c   : > { %v10642_v22 = vpop.f32.mrf.mxu0  ;;  %v11460_v25 = vpop.f32.mrf.mxu1  ;;  %6392 = vmatmul.mubr.bf16.gmra.mxu0 %v12254_v15  ;;  %11555 = vmatmul.mubr.bf16.gmra.mxu1 %v12258_v20 }
 0x31d   : > { %v14085_v24 = vadd.f32 %v4642_v26, %v15176_v32  ;;  %v4663_v49 = vadd.f32 %v11460_v25, %v14020_v4  ;;  %6399 = vmatprep.mubr.bf16.mxu0 %v12264_v28  ;;  %11558 = vmatprep.mubr.bf16.mxu1 %v12265_v35  ;;  %v12271_v4 = vld [vmem:[%s12819_s18 + $0x364] ss:$12 sps:$4 sm:$0xff]   ;;  %v12269_v32 = vld [vmem:[%s12819_s18 + $0x360] ss:$12 sps:$4 sm:$0xff]  }
 0x31e   : > { %v10643_v47 = vpop.f32.mrf.mxu0  ;;  %v4654_v37 = vpop.f32.mrf.mxu1 }
 0x31f   : > { %v14089_v59 = vadd.f32 %v4663_v49, %v13887_v8  ;;  %v10644_v58 = vadd.f32 %v10643_v47, %v10642_v22  ;;  %v4655_v5 = vadd.f32 %v13996_v61, %v4654_v37  ;;  %v12273_v49 = vld [vmem:[%s12819_s18 + $0x350] ss:$12 sps:$4 sm:$0xff]  }
 0x320   : > { %v10645_v40 = vpop.f32.mrf.mxu0  ;;  %v11461_v60 = vpop.f32.mrf.mxu1  ;;  %v15178_v47 = vld [vmem:[#allocation31_spill] sm:$0xff] }
 0x321   : > { %v14095_v50 = vadd.f32 %v4655_v5, %v13866_v42  ;;  %v4666_v14 = vadd.f32 %v11461_v60, %v14034_v41  ;;  %v15177_v42 = vld [vmem:[#allocation33_spill] sm:$0xff] }
 0x322   : > { %v10646_v15 = vpop.f32.mrf.mxu0  ;;  %v4657_v20 = vpop.f32.mrf.mxu1 }
 0x323   : > { %v14101_v23 = vadd.f32 %v4666_v14, %v13897_v21  ;;  %v10647_v8 = vadd.f32 %v10646_v15, %v10645_v40  ;;  %v4658_v17 = vadd.f32 %v14010_v39, %v4657_v20  ;;  %v14117_v40 = vld [vmem:[%s12819_s18 + $0x37c] ss:$12 sps:$4 sm:$0xff]  }
 0x324   : > { %v10648_v61 = vpop.f32.mrf.mxu0  ;;  %v11464_v28 = vpop.f32.mrf.mxu1  ;;  %6400 = vmatmul.mubr.bf16.gmra.mxu0 %v12262_v54  ;;  %11559 = vmatmul.mubr.bf16.gmra.mxu1 %v12266_v16 }
 0x325   : > { %v14105_v35 = vadd.f32 %v4658_v17, %v15177_v42  ;;  %v4679_v41 = vadd.f32 %v11464_v28, %v10638_v12  ;;  %6407 = vmatprep.mubr.bf16.mxu0 %v12271_v4  ;;  %11562 = vmatprep.mubr.bf16.mxu1 %v12272_v27  ;;  %v12280_v12 = vld [vmem:[%s12819_s18 + $0x368] ss:$12 sps:$4 sm:$0xff]   ;;  %v14132_v42 = vld [vmem:[%s12819_s18 + $0x378] ss:$12 sps:$4 sm:$0xff]  }
 0x326   : > { %v10649_v48 = vpop.f32.mrf.mxu0  ;;  %v4670_v21 = vpop.f32.mrf.mxu1 }
 0x327   : > { %v14108_v57 = vadd.f32 %v4679_v41, %v13924_v31  ;;  %v10650_v39 = vadd.f32 %v10649_v48, %v10648_v61  ;;  %v4671_v26 = vadd.f32 %v14044_v46, %v4670_v21  ;;  %v12281_v41 = vld [vmem:[%s12819_s18 + $0x380] ss:$12 sps:$4 sm:$0xff]   ;;  %v12286_v21 = vld [vmem:[%s12819_s18 + $0x1fc] ss:$12 sps:$4 sm:$0xff]  }
 0x328   : > { %v10651_v22 = vpop.f32.mrf.mxu0  ;;  %v11465_v25 = vpop.f32.mrf.mxu1 }
 0x329   : > { %v14114_v37 = vadd.f32 %v4671_v26, %v15178_v47  ;;  %v4682_v5 = vadd.f32 %v11465_v25, %v10641_v30 }
 0x32a   : > { %v10652_v60 = vpop.f32.mrf.mxu0  ;;  %v4673_v54 = vpop.f32.mrf.mxu1 }
 0x32b   : > { %v14121_v16 = vadd.f32 %v4682_v5, %v13932_v6  ;;  %v10653_v31 = vadd.f32 %v10652_v60, %v10651_v22  ;;  %v4674_v14 = vadd.f32 %v14058_v18, %v4673_v54 }
 0x32c   : > { %v10654_v46 = vpop.f32.mrf.mxu0  ;;  %v11468_v4 = vpop.f32.mrf.mxu1  ;;  %6408 = vmatmul.mubr.bf16.gmra.mxu0 %v12269_v32  ;;  %11563 = vmatmul.mubr.bf16.gmra.mxu1 %v12273_v49 }
 0x32d   : > { %v14125_v30 = vadd.f32 %v4674_v14, %v13916_v7  ;;  %v4695_v27 = vadd.f32 %v11468_v4, %v10650_v39  ;;  %6415 = vmatprep.mubr.bf16.mxu0 %v14117_v40  ;;  %11566 = vmatprep.mubr.bf16.mxu1 %v12280_v12  ;;  %v12287_v39 = vld [vmem:[%s12819_s18 + $0x200] ss:$12 sps:$4 sm:$0xff]   ;;  %v12290_v4 = vld [vmem:[#allocation3 + $0x638] sm:$0xff]  }
 0x32e   : > { %v10655_v6 = vpop.f32.mrf.mxu0  ;;  %v4686_v15 = vpop.f32.mrf.mxu1 }
 0x32f   : > { %v14129_v20 = vadd.f32 %v4695_v27, %v13955_v51  ;;  %v10656_v18 = vadd.f32 %v10655_v6, %v10654_v46  ;;  %v4687_v17 = vadd.f32 %v10644_v58, %v4686_v15  ;;  %v14153_v6 = vld [vmem:[%s12819_s18 + $0x214] ss:$12 sps:$4 sm:$0xff]   ;;  %v12295_v15 = vld [vmem:[%s12819_s18 + $0x230] ss:$12 sps:$4 sm:$0xff]  }
 0x330   : > { %v10657_v61 = vpop.f32.mrf.mxu0  ;;  %v11469_v28 = vpop.f32.mrf.mxu1 }
 0x331   : > { %v14136_v7 = vadd.f32 %v4687_v17, %v13940_v3  ;;  %v4698_v48 = vadd.f32 %v11469_v28, %v10653_v31  ;;  %v12284_v31 = vld [vmem:[%s12819_s18 + $0x1f8] ss:$12 sps:$4 sm:$0xff]  }
 0x332   : > { %v10658_v26 = vpop.f32.mrf.mxu0  ;;  %v4689_v22 = vpop.f32.mrf.mxu1 }
 0x333   : > { %v14141_v25 = vadd.f32 %v4698_v48, %v13961_v52  ;;  %v10659_v51 = vadd.f32 %v10658_v26, %v10657_v61  ;;  %v4690_v58 = vadd.f32 %v10647_v8, %v4689_v22  ;;  %v12288_v8 = vld [vmem:[%s12819_s18 + $0x218] ss:$12 sps:$4 sm:$0xff]   ;;  %v12298_v26 = vld [vmem:[#allocation3 + $0x630] sm:$0xff]  }
 0x334   : > { %v10660_v32 = vpop.f32.mrf.mxu0  ;;  %v11472_v49 = vpop.f32.mrf.mxu1  ;;  %6416 = vmatmul.mubr.bf16.gmra.mxu0 %v14132_v42  ;;  %11567 = vmatmul.mubr.bf16.gmra.mxu1 %v12281_v41  ;;  %v12306_v41 = vld [vmem:[#allocation3 + $0x6b0] sm:$0xff]  }
 0x335   : > { %v14145_v3 = vadd.f32 %v4690_v58, %v13947_v36  ;;  %7229 = vmatprep.mubr.bf16.mxu1 %v12286_v21  ;;  %11586 = vmatprep.mubr.bf16.mxu0 %v12287_v39  ;;  %v12321_v58 = vld [vmem:[#allocation3 + $0x6a8] sm:$0xff]  }
 0x336   : > { %v10661_v47 = vpop.f32.mrf.mxu0  ;;  %v4702_v5 = vpop.f32.mrf.mxu1 }
 0x337   : > { %v10662_v52 = vadd.f32 %v10661_v47, %v10660_v32  ;;  %v4703_v12 = vadd.f32 %v10656_v18, %v4702_v5  ;;  %v12297_v18 = vld [vmem:[#allocation3 + $0x670] sm:$0xff]  }
 0x338   : > { %v10663_v60 = vpop.f32.mrf.mxu0  ;;  %v11473_v54 = vpop.f32.mrf.mxu1  ;;  %v14168_v5 = vld [vmem:[%s12819_s18 + $0x210] ss:$12 sps:$4 sm:$0xff]  }
 0x339   : > { %v4711_v14 = vadd.f32 %v11472_v49, %v10662_v52  ;;  %v14150_v46 = vadd.f32 %v4703_v12, %v13970_v43  ;;  %v14172_v12 = vld [vmem:[%s12819_s18 + $0x22c] ss:$12 sps:$4 sm:$0xff]  }
 0x33a   : > { %v10664_v27 = vpop.f32.mrf.mxu0  ;;  %v4705_v36 = vpop.f32.mrf.mxu1 }
 0x33b   : > { %v14157_v17 = vadd.f32 %v4711_v14, %v13984_v62  ;;  %v10665_v61 = vadd.f32 %v10664_v27, %v10663_v60  ;;  %v4706_v28 = vadd.f32 %v10659_v51, %v4705_v36  ;;  %v12304_v51 = vld [vmem:[#allocation3 + $0x668] sm:$0xff]   ;;  %v12336_v27 = vld [vmem:[#allocation3 + $0x6a0] sm:$0xff]  }
 0x33c   : > { %v10706_v48 = vpop.f32.mrf.mxu1  ;;  %v11492_v21 = vpop.f32.mrf.mxu0  ;;  %7230 = vmatmul.mubr.bf16.vlgmr.msra.gmra.mxu1 %v12284_v31  ;;  %11587 = vmatmul.mubr.bf16.vlgmr.msra.gmra.mxu0 %v12288_v8  ;;  %v12302_v60 = vld [vmem:[%s12819_s18 + $0x260] ss:$12 sps:$4 sm:$0xff]  }
 0x33d   : > { %v4714_v39 = vadd.f32 %v11473_v54, %v10665_v61  ;;  %v14160_v43 = vadd.f32 %v4706_v28, %v13976_v45  ;;  %11099 = vmatpush3.bf16.msra.mxu0 %v12290_v4  ;;  %11619 = vmatpush3.bf16.msra.mxu1 %v14069_v0  ;;  %v12296_v0 = vld [vmem:[%s12819_s18 + $0x248] ss:$12 sps:$4 sm:$0xff]   ;;  %v12312_v4 = vld [vmem:[#allocation3 + $0x660] sm:$0xff]  }
 0x33e   : > { %v10707_v62 = vpop.f32.mrf.mxu1  ;;  %v5524_v22 = vpop.f32.mrf.mxu0  ;;  %7237 = vmatprep.mubr.bf16.mxu1 %v14153_v6  ;;  %11590 = vmatprep.mubr.bf16.mxu0 %v12295_v15  ;;  %v12305_v8 = vld [vmem:[#allocation3 + $0x628] sm:$0xff]  }
 0x33f   : > { %v14165_v32 = vadd.f32 %v4714_v39, %v13991_v1  ;;  %v10708_v45 = vadd.f32 %v10707_v62, %v10706_v48  ;;  %11100 = vmatprep.subr.bf16.mxu0 %v12297_v18  ;;  %11620 = vmatprep.subr.bf16.mxu1 %v12306_v41  ;;  %v12319_v39 = vld [vmem:[#allocation3 + $0x658] sm:$0xff]  }
 0x340   : > { %v10709_v49 = vpop.f32.mrf.mxu1  ;;  %v11493_v47 = vpop.f32.mrf.mxu0 }
 0x341   : > { %15179 = vst [vmem:[#allocation36_spill] sm:$0xff] %v14165_v32  ;;  %v5525_v52 = vadd.f32 %v10708_v45, %v5524_v22  ;;  %11101 = vmatpush3.bf16.msra.mxu0 %v12298_v26  ;;  %11621 = vmatpush3.bf16.msra.mxu1 %v12306_v41  ;;  %v12347_v26 = vld [vmem:[#allocation3 + $0x698] sm:$0xff]  }
 0x342   : > { %v10710_v54 = vpop.f32.mrf.mxu1  ;;  %v5527_v31 = vpop.f32.mrf.mxu0  ;;  %11102 = vmatprep.subr.bf16.mxu0 %v12304_v51  ;;  %11622 = vmatprep.subr.bf16.mxu1 %v12321_v58  ;;  %v14188_v51 = vld [vmem:[%s12819_s18 + $0x228] ss:$12 sps:$4 sm:$0xff]   ;;  %v12303_v45 = vld [vmem:[%s12819_s18 + $0x278] ss:$12 sps:$4 sm:$0xff]  }
 0x343   : > { %v14176_v1 = vadd.f32 %v5525_v52, %v14002_v2  ;;  %v10711_v14 = vadd.f32 %v10710_v54, %v10709_v49  ;;  %v12313_v2 = vld [vmem:[#allocation3 + $0x620] sm:$0xff]   ;;  %v12310_v52 = vld [vmem:[%s12819_s18 + $0x290] ss:$12 sps:$4 sm:$0xff]  }
 0x344   : > { %v10712_v36 = vpop.f32.mrf.mxu1  ;;  %v14178_v15 = vpop.f32.mrf.mxu0  ;;  %7238 = vmatmul.mubr.bf16.gmra.mxu1 %v14168_v5  ;;  %11591 = vmatmul.mubr.bf16.gmra.mxu0 %v12296_v0  ;;  %v14192_v0 = vld [vmem:[%s12819_s18 + $0x244] ss:$12 sps:$4 sm:$0xff]  }
 0x345   : > { %15180 = vst [vmem:[#allocation34_spill] sm:$0xff] %v14176_v1  ;;  %v5528_v61 = vadd.f32 %v10711_v14, %v5527_v31  ;;  %7245 = vmatprep.mubr.bf16.mxu1 %v14172_v12  ;;  %11594 = vmatprep.mubr.bf16.mxu0 %v12302_v60  ;;  %v12327_v31 = vld [vmem:[#allocation3 + $0x650] sm:$0xff]  }
 0x346   : > { %v10713_v28 = vpop.f32.mrf.mxu1  ;;  %v5540_v18 = vpop.f32.mrf.mxu0  ;;  %11103 = vmatpush3.bf16.msra.mxu0 %v12305_v8  ;;  %11623 = vmatpush3.bf16.msra.mxu1 %v12321_v58  ;;  %v12354_v8 = vld [vmem:[#allocation3 + $0x690] sm:$0xff]  }
 0x347   : > { %v14183_v41 = vadd.f32 %v5528_v61, %v14014_v63  ;;  %v10714_v48 = vadd.f32 %v10713_v28, %v10712_v36  ;;  %11104 = vmatprep.subr.bf16.mxu0 %v12312_v4  ;;  %11624 = vmatprep.subr.bf16.mxu1 %v12336_v27  ;;  %v12320_v63 = vld [vmem:[#allocation3 + $0x618] sm:$0xff]  }
 0x348   : > { %v10715_v62 = vpop.f32.mrf.mxu1  ;;  %v14185_v22 = vpop.f32.mrf.mxu0 }
 0x349   : > { %15181 = vst [vmem:[#allocation37_spill] sm:$0xff] %v14183_v41  ;;  %v5533_v49 = vadd.f32 %v11492_v21, %v10714_v48  ;;  %v12361_v48 = vld [vmem:[#allocation3 + $0x688] sm:$0xff]  }
 0x34a   : > { %v10716_v60 = vpop.f32.mrf.mxu1  ;;  %v5543_v58 = vpop.f32.mrf.mxu0  ;;  %11105 = vmatpush3.bf16.msra.mxu0 %v12313_v2  ;;  %11625 = vmatpush3.bf16.msra.mxu1 %v12336_v27  ;;  %v12334_v2 = vld [vmem:[#allocation3 + $0x648] sm:$0xff]  }
 0x34b   : > { %v10717_v54 = vadd.f32 %v10716_v60, %v10715_v62  ;;  %11106 = vmatprep.subr.bf16.mxu0 %v12319_v39  ;;  %11626 = vmatprep.subr.bf16.mxu1 %v12347_v26  ;;  %v14196_v14 = vadd.f32 %v5533_v49, %v13994_v33  ;;  %v12328_v33 = vld [vmem:[#allocation3 + $0x610] sm:$0xff]   ;;  %v14214_v60 = vld [vmem:[%s12819_s18 + $0x25c] ss:$12 sps:$4 sm:$0xff]  }
 0x34c   : > { %v10718_v4 = vpop.f32.mrf.mxu1  ;;  %v14198_v36 = vpop.f32.mrf.mxu0  ;;  %7246 = vmatmul.mubr.bf16.gmra.mxu1 %v14188_v51  ;;  %11595 = vmatmul.mubr.bf16.gmra.mxu0 %v12303_v45  ;;  %v14210_v45 = vld [vmem:[%s12819_s18 + $0x240] ss:$12 sps:$4 sm:$0xff]   ;;  %v12311_v49 = vld [vmem:[%s12819_s18 + $0x2a8] ss:$12 sps:$4 sm:$0xff]  }
 0x34d   : > { %15182 = vst [vmem:[#allocation35_spill] sm:$0xff] %v14196_v14  ;;  %v5536_v21 = vadd.f32 %v11493_v47, %v10717_v54  ;;  %7253 = vmatprep.mubr.bf16.mxu1 %v14192_v0  ;;  %11598 = vmatprep.mubr.bf16.mxu0 %v12310_v52  ;;  %v12346_v14 = vld [vmem:[%s12819_s18 + $0x2ec] ss:$12 sps:$4 sm:$0xff]  }
 0x34e   : > { %v10719_v27 = vpop.f32.mrf.mxu1  ;;  %v14202_v61 = vpop.f32.mrf.mxu0  ;;  %11107 = vmatpush3.bf16.msra.mxu0 %v12320_v63  ;;  %11627 = vmatpush3.bf16.msra.mxu1 %v12347_v26  ;;  %v12317_v63 = vld [vmem:[%s12819_s18 + $0x2f0] ss:$12 sps:$4 sm:$0xff]  }
 0x34f   : > { %v10720_v28 = vadd.f32 %v10719_v27, %v10718_v4  ;;  %11108 = vmatprep.subr.bf16.mxu0 %v12327_v31  ;;  %11628 = vmatprep.subr.bf16.mxu1 %v12354_v8  ;;  %v14205_v47 = vadd.f32 %v5536_v21, %v14008_v55  ;;  %v12335_v31 = vld [vmem:[#allocation3 + $0x608] sm:$0xff]   ;;  %v12342_v55 = vld [vmem:[#allocation3 + $0x640] sm:$0xff]  }
 0x350   : > { %v10721_v39 = vpop.f32.mrf.mxu1  ;;  %v14207_v62 = vpop.f32.mrf.mxu0  ;;  %v12365_v21 = vld [vmem:[#allocation3 + $0x680] sm:$0xff]  }
 0x351   : > { %15183 = vst [vmem:[#allocation38_spill] sm:$0xff] %v14205_v47  ;;  %v5541_v52 = vadd.f32 %v10720_v28, %v5540_v18 }
 0x352   : > { %v10722_v54 = vpop.f32.mrf.mxu1  ;;  %v14217_v26 = vpop.f32.mrf.mxu0  ;;  %11109 = vmatpush3.bf16.msra.mxu0 %v12328_v33  ;;  %11629 = vmatpush3.bf16.msra.mxu1 %v12354_v8 }
 0x353   : > { %v10723_v4 = vadd.f32 %v10722_v54, %v10721_v39  ;;  %11110 = vmatprep.subr.bf16.mxu0 %v12334_v2  ;;  %11630 = vmatprep.subr.bf16.mxu1 %v12361_v48  ;;  %v14220_v27 = vadd.f32 %v5541_v52, %v14026_v13  ;;  %v12343_v13 = vld [vmem:[#allocation3 + $0x600] sm:$0xff]   ;;  %v12318_v52 = vld [vmem:[%s12819_s18 + $0x308] ss:$12 sps:$4 sm:$0xff]  }
 0x354   : > { %v10724_v41 = vpop.f32.mrf.mxu1  ;;  %v14222_v47 = vpop.f32.mrf.mxu0  ;;  %7254 = vmatmul.mubr.bf16.gmra.mxu1 %v14210_v45  ;;  %11599 = vmatmul.mubr.bf16.gmra.mxu0 %v12311_v49  ;;  %v14239_v54 = vld [vmem:[%s12819_s18 + $0x274] ss:$12 sps:$4 sm:$0xff]  }
 0x355   : > { %15184 = vst [vmem:[#allocation39_spill] sm:$0xff] %v14220_v27  ;;  %v5544_v18 = vadd.f32 %v10723_v4, %v5543_v58  ;;  %7261 = vmatprep.mubr.bf16.mxu1 %v14214_v60  ;;  %11602 = vmatprep.mubr.bf16.mxu0 %v12317_v63  ;;  %v14234_v58 = vld [vmem:[%s12819_s18 + $0x258] ss:$12 sps:$4 sm:$0xff]   ;;  %v12325_v4 = vld [vmem:[%s12819_s18 + $0x320] ss:$12 sps:$4 sm:$0xff]  }
 0x356   : > { %v10725_v8 = vpop.f32.mrf.mxu1  ;;  %v14226_v33 = vpop.f32.mrf.mxu0  ;;  %11111 = vmatpush3.bf16.msra.mxu0 %v12335_v31  ;;  %11631 = vmatpush3.bf16.msra.mxu1 %v12361_v48 }
 0x357   : > { %v10726_v28 = vadd.f32 %v10725_v8, %v10724_v41  ;;  %11112 = vmatprep.subr.bf16.mxu0 %v12342_v55  ;;  %11632 = vmatprep.subr.bf16.mxu1 %v12365_v21  ;;  %v14229_v2 = vadd.f32 %v5544_v18, %v14038_v19 }
 0x358   : > { %v10727_v39 = vpop.f32.mrf.mxu1  ;;  %v14231_v49 = vpop.f32.mrf.mxu0 }
 0x359   : > { %15185 = vst [vmem:[#allocation40_spill] sm:$0xff] %v14229_v2  ;;  %v5549_v63 = vadd.f32 %v14178_v15, %v10726_v28 }
 0x35a   : > { %v10728_v31 = vpop.f32.mrf.mxu1  ;;  %v14242_v27 = vpop.f32.mrf.mxu0  ;;  %11113 = vmatpush3.bf16.msra.mxu0 %v12343_v13  ;;  %11633 = vmatpush3.bf16.msra.mxu1 %v12365_v21 }
 0x35b   : > { %v10729_v41 = vadd.f32 %v10728_v31, %v10727_v39  ;;  %v14245_v19 = vadd.f32 %v5549_v63, %v14018_v34  ;;  %v14260_v39 = vld [vmem:[%s12819_s18 + $0x270] ss:$12 sps:$4 sm:$0xff]   ;;  %v12326_v63 = vld [vmem:[%s12819_s18 + $0x338] ss:$12 sps:$4 sm:$0xff]  }
 0x35c   : > { %v10730_v48 = vpop.f32.mrf.mxu1  ;;  %v14247_v55 = vpop.f32.mrf.mxu0  ;;  %7262 = vmatmul.mubr.bf16.gmra.mxu1 %v14234_v58  ;;  %11603 = vmatmul.mubr.bf16.gmra.mxu0 %v12318_v52  ;;  %v14265_v31 = vld [vmem:[%s12819_s18 + $0x28c] ss:$12 sps:$4 sm:$0xff]  }
 0x35d   : > { %15186 = vst [vmem:[#allocation41_spill] sm:$0xff] %v14245_v19  ;;  %v5552_v15 = vadd.f32 %v14185_v22, %v10729_v41  ;;  %7269 = vmatprep.mubr.bf16.mxu1 %v14239_v54  ;;  %11606 = vmatprep.mubr.bf16.mxu0 %v12325_v4  ;;  %v12332_v22 = vld [vmem:[%s12819_s18 + $0x350] ss:$12 sps:$4 sm:$0xff]  }
 0x35e   : > { %v10731_v21 = vpop.f32.mrf.mxu1  ;;  %v14252_v18 = vpop.f32.mrf.mxu0  ;;  %v14291_v19 = vld [vmem:[%s12819_s18 + $0x2a4] ss:$12 sps:$4 sm:$0xff]  }
 0x35f   : > { %v10732_v8 = vadd.f32 %v10731_v21, %v10730_v48  ;;  %v14255_v34 = vadd.f32 %v5552_v15, %v14032_v11 }
 0x360   : > { %v10733_v13 = vpop.f32.mrf.mxu1  ;;  %v14257_v28 = vpop.f32.mrf.mxu0 }
 0x361   : > { %15187 = vst [vmem:[#allocation28_spill] sm:$0xff] %v14255_v34  ;;  %v5557_v52 = vadd.f32 %v10732_v8, %v14202_v61  ;;  %v12333_v34 = vld [vmem:[%s12819_s18 + $0x368] ss:$12 sps:$4 sm:$0xff]  }
 0x362   : > { %v10734_v41 = vpop.f32.mrf.mxu1  ;;  %v14268_v4 = vpop.f32.mrf.mxu0 }
 0x363   : > { %v10735_v2 = vadd.f32 %v10734_v41, %v10733_v13  ;;  %v14271_v11 = vadd.f32 %v5557_v52, %v14050_v10 }
 0x364   : > { %v10736_v48 = vpop.f32.mrf.mxu1  ;;  %v14273_v15 = vpop.f32.mrf.mxu0  ;;  %7270 = vmatmul.mubr.bf16.gmra.mxu1 %v14260_v39  ;;  %11607 = vmatmul.mubr.bf16.gmra.mxu0 %v12326_v63 }
 0x365   : > { %15188 = vst [vmem:[#allocation29_spill] sm:$0xff] %v14271_v11  ;;  %v5560_v61 = vadd.f32 %v10735_v2, %v14217_v26  ;;  %7277 = vmatprep.mubr.bf16.mxu1 %v14265_v31  ;;  %11610 = vmatprep.mubr.bf16.mxu0 %v12332_v22  ;;  %v14286_v11 = vld [vmem:[%s12819_s18 + $0x288] ss:$12 sps:$4 sm:$0xff]   ;;  %v12340_v26 = vld [vmem:[%s12819_s18 + $0x380] ss:$12 sps:$4 sm:$0xff]  }
 0x366   : > { %v10737_v21 = vpop.f32.mrf.mxu1  ;;  %v14278_v8 = vpop.f32.mrf.mxu0 }
 0x367   : > { %v10738_v13 = vadd.f32 %v10737_v21, %v10736_v48  ;;  %v14281_v10 = vadd.f32 %v5560_v61, %v14062_v38 }
 0x368   : > { %v10739_v52 = vpop.f32.mrf.mxu1  ;;  %v14283_v41 = vpop.f32.mrf.mxu0 }
 0x369   : > { %15189 = vst [vmem:[#allocation26_spill] sm:$0xff] %v14281_v10  ;;  %v5565_v63 = vadd.f32 %v14198_v36, %v10738_v13  ;;  %v14312_v10 = vld [vmem:[%s12819_s18 + $0x2a0] ss:$12 sps:$4 sm:$0xff]  }
 0x36a   : > { %v10740_v2 = vpop.f32.mrf.mxu1  ;;  %v14294_v22 = vpop.f32.mrf.mxu0 }
 0x36b   : > { %v10741_v1 = vadd.f32 %v10740_v2, %v10739_v52  ;;  %v14297_v38 = vadd.f32 %v5565_v63, %v14042_v44 }
 0x36c   : > { %v10742_v48 = vpop.f32.mrf.mxu1  ;;  %v14299_v61 = vpop.f32.mrf.mxu0  ;;  %7278 = vmatmul.mubr.bf16.gmra.mxu1 %v14286_v11  ;;  %11611 = vmatmul.mubr.bf16.gmra.mxu0 %v12333_v34 }
 0x36d   : > { %15190 = vst [vmem:[#allocation30_spill] sm:$0xff] %v14297_v38  ;;  %v5568_v36 = vadd.f32 %v14207_v62, %v10741_v1  ;;  %7285 = vmatprep.mubr.bf16.mxu1 %v14291_v19  ;;  %11614 = vmatprep.mubr.bf16.mxu0 %v12340_v26  ;;  %v12341_v38 = vld [vmem:[%s12819_s18 + $0x398] ss:$12 sps:$4 sm:$0xff]  }
 0x36e   : > { %v10743_v21 = vpop.f32.mrf.mxu1  ;;  %v14304_v13 = vpop.f32.mrf.mxu0 }
 0x36f   : > { %v10744_v52 = vadd.f32 %v10743_v21, %v10742_v48  ;;  %v14307_v2 = vadd.f32 %v5568_v36, %v14056_v53 }
 0x370   : > { %v10745_v44 = vpop.f32.mrf.mxu1  ;;  %v14309_v63 = vpop.f32.mrf.mxu0 }
 0x371   : > { %15191 = vst [vmem:[#allocation27_spill] sm:$0xff] %v14307_v2  ;;  %v5573_v34 = vadd.f32 %v10744_v52, %v14226_v33  ;;  %v14337_v2 = vld [vmem:[%s12819_s18 + $0x304] ss:$12 sps:$4 sm:$0xff]  }
 0x372   : > { %v10746_v1 = vpop.f32.mrf.mxu1  ;;  %v14317_v62 = vpop.f32.mrf.mxu0 }
 0x373   : > { %v10747_v26 = vadd.f32 %v10746_v1, %v10745_v44  ;;  %v14320_v32 = vadd.f32 %v5573_v34, %v14074_v9  ;;  %v12344_v1 = vld [vmem:[%s12819_s18 + $0x2e8] ss:$12 sps:$4 sm:$0xff]  }
 0x374   : > { %v10748_v53 = vpop.f32.mrf.mxu1  ;;  %v14322_v48 = vpop.f32.mrf.mxu0  ;;  %7286 = vmatmul.mubr.bf16.gmra.mxu1 %v14312_v10  ;;  %11615 = vmatmul.mubr.bf16.gmra.mxu0 %v12341_v38 }
 0x375   : > { %15192 = vst [vmem:[#allocation32_spill] sm:$0xff] %v14320_v32  ;;  %v5576_v36 = vadd.f32 %v10747_v26, %v14242_v27  ;;  %7293 = vmatprep.mubr.bf16.mxu1 %v12346_v14  ;;  %8163 = vmatprep.mubr.bf16.mxu0 %v14153_v6 }
 0x376   : > { %v10749_v33 = vpop.f32.mrf.mxu1  ;;  %v14327_v21 = vpop.f32.mrf.mxu0 }
 0x377   : > { %v10750_v52 = vadd.f32 %v10749_v33, %v10748_v53  ;;  %v14330_v44 = vadd.f32 %v5576_v36, %v14085_v24 }
 0x378   : > { %v10751_v9 = vpop.f32.mrf.mxu1  ;;  %v14332_v34 = vpop.f32.mrf.mxu0 }
 0x379   : > { %15193 = vst [vmem:[#allocation33_spill] sm:$0xff] %v14330_v44  ;;  %v5581_v32 = vadd.f32 %v14222_v47, %v10750_v52 }
 0x37a   : > { %v10752_v38 = vpop.f32.mrf.mxu1  ;;  %v14339_v27 = vpop.f32.mrf.mxu0 }
 0x37b   : > { %v10753_v14 = vadd.f32 %v10752_v38, %v10751_v9  ;;  %v14342_v6 = vadd.f32 %v5581_v32, %v14066_v56  ;;  %v14354_v38 = vld [vmem:[%s12819_s18 + $0x300] ss:$12 sps:$4 sm:$0xff]  }
 0x37c   : > { %v10754_v26 = vpop.f32.mrf.mxu1  ;;  %v10842_v24 = vpop.f32.mrf.mxu0  ;;  %7294 = vmatmul.mubr.bf16.gmra.mxu1 %v12344_v1  ;;  %8164 = vmatmul.mubr.bf16.vlgmr.msra.gmra.mxu0 %v14168_v5  ;;  %v14358_v1 = vld [vmem:[%s12819_s18 + $0x31c] ss:$12 sps:$4 sm:$0xff]  }
 0x37d   : > { %v5584_v53 = vadd.f32 %v14231_v49, %v10753_v14  ;;  %7301 = vmatprep.mubr.bf16.mxu1 %v14337_v2  ;;  %8171 = vmatprep.mubr.bf16.mxu0 %v14172_v12 }
 0x37e   : > { %v10755_v47 = vpop.f32.mrf.mxu1  ;;  %v10843_v36 = vpop.f32.mrf.mxu0 }
 0x37f   : > { %v10756_v33 = vadd.f32 %v10755_v47, %v10754_v26  ;;  %v14348_v52 = vadd.f32 %v10843_v36, %v10842_v24  ;;  %v14351_v56 = vadd.f32 %v5584_v53, %v14080_v29 }
 0x380   : > { %v10757_v32 = vpop.f32.mrf.mxu1  ;;  %v10845_v9 = vpop.f32.mrf.mxu0 }
 0x381   : > { %v5589_v5 = vadd.f32 %v10756_v33, %v14252_v18 }
 0x382   : > { %v10758_v49 = vpop.f32.mrf.mxu1  ;;  %v10846_v14 = vpop.f32.mrf.mxu0 }
 0x383   : > { %v10759_v44 = vadd.f32 %v10758_v49, %v10757_v32  ;;  %v14360_v12 = vadd.f32 %v10846_v14, %v10845_v9  ;;  %v14363_v26 = vadd.f32 %v5589_v5, %v14095_v50  ;;  %v14376_v5 = vld [vmem:[%s12819_s18 + $0x318] ss:$12 sps:$4 sm:$0xff]   ;;  %v14380_v49 = vld [vmem:[%s12819_s18 + $0x334] ss:$12 sps:$4 sm:$0xff]  }
 0x384   : > { %v10760_v24 = vpop.f32.mrf.mxu1  ;;  %v10848_v29 = vpop.f32.mrf.mxu0  ;;  %7302 = vmatmul.mubr.bf16.gmra.mxu1 %v14354_v38  ;;  %8172 = vmatmul.mubr.bf16.gmra.mxu0 %v14188_v51 }
 0x385   : > { %v5592_v18 = vadd.f32 %v10759_v44, %v14268_v4  ;;  %7309 = vmatprep.mubr.bf16.mxu1 %v14358_v1  ;;  %8179 = vmatprep.mubr.bf16.mxu0 %v14192_v0 }
 0x386   : > { %v10761_v53 = vpop.f32.mrf.mxu1  ;;  %v10849_v47 = vpop.f32.mrf.mxu0 }
 0x387   : > { %v10762_v36 = vadd.f32 %v10761_v53, %v10760_v24  ;;  %v14370_v33 = vadd.f32 %v10849_v47, %v10848_v29  ;;  %v14373_v50 = vadd.f32 %v5592_v18, %v14105_v35 }
 0x388   : > { %v10763_v32 = vpop.f32.mrf.mxu1  ;;  %v10851_v9 = vpop.f32.mrf.mxu0 }
 0x389   : > { %v5597_v51 = vadd.f32 %v14247_v55, %v10762_v36 }
 0x38a   : > { %v10764_v4 = vpop.f32.mrf.mxu1  ;;  %v10852_v44 = vpop.f32.mrf.mxu0 }
 0x38b   : > { %v10765_v14 = vadd.f32 %v10764_v4, %v10763_v32  ;;  %v14382_v0 = vadd.f32 %v10852_v44, %v10851_v9  ;;  %v14385_v24 = vadd.f32 %v5597_v51, %v14089_v59  ;;  %v14398_v51 = vld [vmem:[%s12819_s18 + $0x330] ss:$12 sps:$4 sm:$0xff]   ;;  %v14402_v4 = vld [vmem:[%s12819_s18 + $0x34c] ss:$12 sps:$4 sm:$0xff]  }
 0x38c   : > { %v10766_v29 = vpop.f32.mrf.mxu1  ;;  %v10854_v35 = vpop.f32.mrf.mxu0  ;;  %7310 = vmatmul.mubr.bf16.gmra.mxu1 %v14376_v5  ;;  %8180 = vmatmul.mubr.bf16.gmra.mxu0 %v14210_v45 }
 0x38d   : > { %v5600_v55 = vadd.f32 %v14257_v28, %v10765_v14  ;;  %7317 = vmatprep.mubr.bf16.mxu1 %v14380_v49  ;;  %8187 = vmatprep.mubr.bf16.mxu0 %v14214_v60 }
 0x38e   : > { %v10767_v18 = vpop.f32.mrf.mxu1  ;;  %v10855_v53 = vpop.f32.mrf.mxu0 }
 0x38f   : > { %v10768_v47 = vadd.f32 %v10767_v18, %v10766_v29  ;;  %v14392_v36 = vadd.f32 %v10855_v53, %v10854_v35  ;;  %v14395_v59 = vadd.f32 %v5600_v55, %v14101_v23 }
 0x390   : > { %v10769_v32 = vpop.f32.mrf.mxu1  ;;  %v10857_v9 = vpop.f32.mrf.mxu0 }
 0x391   : > { %v5605_v45 = vadd.f32 %v10768_v47, %v14278_v8 }
 0x392   : > { %v10770_v28 = vpop.f32.mrf.mxu1  ;;  %v10858_v44 = vpop.f32.mrf.mxu0 }
 0x393   : > { %v10771_v14 = vadd.f32 %v10770_v28, %v10769_v32  ;;  %v14404_v60 = vadd.f32 %v10858_v44, %v10857_v9  ;;  %v14407_v29 = vadd.f32 %v5605_v45, %v14114_v37  ;;  %v14420_v45 = vld [vmem:[%s12819_s18 + $0x348] ss:$12 sps:$4 sm:$0xff]   ;;  %v14424_v28 = vld [vmem:[%s12819_s18 + $0x364] ss:$12 sps:$4 sm:$0xff]  }
 0x394   : > { %v10772_v35 = vpop.f32.mrf.mxu1  ;;  %v10860_v23 = vpop.f32.mrf.mxu0  ;;  %7318 = vmatmul.mubr.bf16.gmra.mxu1 %v14398_v51  ;;  %8188 = vmatmul.mubr.bf16.gmra.mxu0 %v14234_v58 }
 0x395   : > { %v5608_v8 = vadd.f32 %v10771_v14, %v14294_v22  ;;  %7325 = vmatprep.mubr.bf16.mxu1 %v14402_v4  ;;  %8195 = vmatprep.mubr.bf16.mxu0 %v14239_v54 }
 0x396   : > { %v10773_v55 = vpop.f32.mrf.mxu1  ;;  %v10861_v18 = vpop.f32.mrf.mxu0 }
 0x397   : > { %v10774_v53 = vadd.f32 %v10773_v55, %v10772_v35  ;;  %v14414_v47 = vadd.f32 %v10861_v18, %v10860_v23  ;;  %v14417_v37 = vadd.f32 %v5608_v8, %v14125_v30 }
 0x398   : > { %v10775_v32 = vpop.f32.mrf.mxu1  ;;  %v10863_v9 = vpop.f32.mrf.mxu0 }
 0x399   : > { %v5613_v58 = vadd.f32 %v14273_v15, %v10774_v53 }
 0x39a   : > { %v10776_v22 = vpop.f32.mrf.mxu1  ;;  %v10864_v44 = vpop.f32.mrf.mxu0 }
 0x39b   : > { %v10777_v14 = vadd.f32 %v10776_v22, %v10775_v32  ;;  %v14426_v54 = vadd.f32 %v10864_v44, %v10863_v9  ;;  %v14429_v35 = vadd.f32 %v5613_v58, %v14108_v57  ;;  %v14442_v58 = vld [vmem:[%s12819_s18 + $0x360] ss:$12 sps:$4 sm:$0xff]  }
 0x39c   : > { %v10778_v23 = vpop.f32.mrf.mxu1  ;;  %v10866_v30 = vpop.f32.mrf.mxu0  ;;  %7326 = vmatmul.mubr.bf16.gmra.mxu1 %v14420_v45  ;;  %8196 = vmatmul.mubr.bf16.gmra.mxu0 %v14260_v39 }
 0x39d   : > { %v5616_v8 = vadd.f32 %v14283_v41, %v10777_v14  ;;  %7333 = vmatprep.mubr.bf16.mxu1 %v14424_v28  ;;  %8203 = vmatprep.mubr.bf16.mxu0 %v14265_v31 }
 0x39e   : > { %v10779_v15 = vpop.f32.mrf.mxu1  ;;  %v10867_v55 = vpop.f32.mrf.mxu0 }
 0x39f   : > { %v10780_v18 = vadd.f32 %v10779_v15, %v10778_v23  ;;  %v14436_v53 = vadd.f32 %v10867_v55, %v10866_v30  ;;  %v14439_v57 = vadd.f32 %v5616_v8, %v14121_v16 }
 0x3a0   : > { %v10781_v32 = vpop.f32.mrf.mxu1  ;;  %v10869_v9 = vpop.f32.mrf.mxu0 }
 0x3a1   : > { %v5621_v39 = vadd.f32 %v10780_v18, %v14304_v13 }
 0x3a2   : > { %v10782_v22 = vpop.f32.mrf.mxu1  ;;  %v10870_v41 = vpop.f32.mrf.mxu0 }
 0x3a3   : > { %v10783_v44 = vadd.f32 %v10782_v22, %v10781_v32  ;;  %v14445_v14 = vadd.f32 %v10870_v41, %v10869_v9  ;;  %v14448_v31 = vadd.f32 %v5621_v39, %v14136_v7  ;;  %v14462_v39 = vld [vmem:[%s12819_s18 + $0x394] ss:$12 sps:$4 sm:$0xff]  }
 0x3a4   : > { %v10784_v23 = vpop.f32.mrf.mxu1  ;;  %v10872_v30 = vpop.f32.mrf.mxu0  ;;  %7334 = vmatmul.mubr.bf16.gmra.mxu1 %v14442_v58  ;;  %8204 = vmatmul.mubr.bf16.gmra.mxu0 %v14286_v11  ;;  %v12371_v11 = vld [vmem:[%s12819_s18 + $0x2bc] ss:$12 sps:$4 sm:$0xff]  }
 0x3a5   : > { %v5624_v16 = vadd.f32 %v10783_v44, %v14317_v62  ;;  %7341 = vmatprep.mubr.bf16.mxu1 %v14117_v40  ;;  %8211 = vmatprep.mubr.bf16.mxu0 %v14291_v19 }
 0x3a6   : > { %v10785_v13 = vpop.f32.mrf.mxu1  ;;  %v10873_v8 = vpop.f32.mrf.mxu0 }
 0x3a7   : > { %v10786_v15 = vadd.f32 %v10785_v13, %v10784_v23  ;;  %v14455_v55 = vadd.f32 %v10873_v8, %v10872_v30  ;;  %v14458_v7 = vadd.f32 %v5624_v16, %v14145_v3 }
 0x3a8   : > { %v10787_v18 = vpop.f32.mrf.mxu1  ;;  %v10875_v32 = vpop.f32.mrf.mxu0 }
 0x3a9   : > { %v5629_v9 = vadd.f32 %v14299_v61, %v10786_v15 }
 0x3aa   : > { %v10788_v62 = vpop.f32.mrf.mxu1  ;;  %v10876_v22 = vpop.f32.mrf.mxu0 }
 0x3ab   : > { %v10789_v40 = vadd.f32 %v10788_v62, %v10787_v18  ;;  %v14465_v41 = vadd.f32 %v10876_v22, %v10875_v32  ;;  %v14468_v19 = vadd.f32 %v5629_v9, %v14129_v20  ;;  %v14480_v18 = vld [vmem:[%s12819_s18 + $0x390] ss:$12 sps:$4 sm:$0xff]   ;;  %v12372_v32 = vld [vmem:[%s12819_s18 + $0x218] ss:$12 sps:$4 sm:$0xff]  }
 0x3ac   : > { %v10790_v44 = vpop.f32.mrf.mxu1  ;;  %v10878_v3 = vpop.f32.mrf.mxu0  ;;  %7342 = vmatmul.mubr.bf16.gmra.mxu1 %v14132_v42  ;;  %8212 = vmatmul.mubr.bf16.gmra.mxu0 %v14312_v10  ;;  %v12369_v42 = vld [vmem:[%s12819_s18 + $0x2b8] ss:$12 sps:$4 sm:$0xff]  }
 0x3ad   : > { %v5632_v61 = vadd.f32 %v14309_v63, %v10789_v40  ;;  %7349 = vmatprep.mubr.bf16.mxu1 %v14462_v39  ;;  %8219 = vmatprep.mubr.bf16.mxu0 %v12371_v11 }
 0x3ae   : > { %v10791_v23 = vpop.f32.mrf.mxu1  ;;  %v10879_v30 = vpop.f32.mrf.mxu0 }
 0x3af   : > { %v10792_v16 = vadd.f32 %v10791_v23, %v10790_v44  ;;  %v14474_v13 = vadd.f32 %v10879_v30, %v10878_v3  ;;  %v14477_v20 = vadd.f32 %v5632_v61, %v14141_v25 }
 0x3b0   : > { %v10793_v8 = vpop.f32.mrf.mxu1  ;;  %v10881_v15 = vpop.f32.mrf.mxu0 }
 0x3b1   : > { %v5637_v10 = vadd.f32 %v10792_v16, %v14327_v21 }
 0x3b2   : > { %v10794_v63 = vpop.f32.mrf.mxu1  ;;  %v10882_v9 = vpop.f32.mrf.mxu0 }
 0x3b3   : > { %v10795_v62 = vadd.f32 %v10794_v63, %v10793_v8  ;;  %v14485_v11 = vadd.f32 %v10882_v9, %v10881_v15  ;;  %v14488_v22 = vadd.f32 %v5637_v10, %v14150_v46  ;;  %v12373_v8 = vld [vmem:[%s12819_s18 + $0x230] ss:$12 sps:$4 sm:$0xff]   ;;  %v12374_v10 = vld [vmem:[%s12819_s18 + $0x248] ss:$12 sps:$4 sm:$0xff]  }
 0x3b4   : > { %v10796_v40 = vpop.f32.mrf.mxu1  ;;  %v10884_v25 = vpop.f32.mrf.mxu0  ;;  %7350 = vmatmul.mubr.bf16.gmra.mxu1 %v14480_v18  ;;  %8220 = vmatmul.mubr.bf16.gmra.mxu0 %v12369_v42 }
 0x3b5   : > { %v5640_v44 = vadd.f32 %v10795_v62, %v14339_v27  ;;  %8227 = vmatprep.mubr.bf16.mxu0 %v14337_v2  ;;  %11634 = vmatprep.mubr.bf16.mxu1 %v12372_v32 }
 0x3b6   : > { %v10797_v21 = vpop.f32.mrf.mxu1  ;;  %v10885_v3 = vpop.f32.mrf.mxu0 }
 0x3b7   : > { %v10798_v61 = vadd.f32 %v10797_v21, %v10796_v40  ;;  %v14493_v23 = vadd.f32 %v10885_v3, %v10884_v25  ;;  %v14496_v30 = vadd.f32 %v5640_v44, %v14160_v43  ;;  %v15194_v25 = vld [vmem:[#allocation36_spill] sm:$0xff]  ;;  %v15195_v21 = vld [vmem:[#allocation35_spill] sm:$0xff] }
 0x3b8   : > { %v10799_v46 = vpop.f32.mrf.mxu1  ;;  %v10887_v16 = vpop.f32.mrf.mxu0 }
 0x3b9   : > { %v5645_v15 = vadd.f32 %v14322_v48, %v10798_v61 }
 0x3ba   : > { %v10800_v42 = vpop.f32.mrf.mxu1  ;;  %v10888_v63 = vpop.f32.mrf.mxu0 }
 0x3bb   : > { %v14502_v27 = vadd.f32 %v5645_v15, %v14157_v17  ;;  %v10801_v2 = vadd.f32 %v10800_v42, %v10799_v46  ;;  %v14504_v32 = vadd.f32 %v10888_v63, %v10887_v16  ;;  %v12376_v15 = vld [vmem:[%s12819_s18 + $0x278] ss:$12 sps:$4 sm:$0xff]  }
 0x3bc   : > { %v10890_v9 = vpop.f32.mrf.mxu0  ;;  %v11540_v62 = vpop.f32.mrf.mxu1  ;;  %8228 = vmatmul.mubr.bf16.gmra.mxu0 %v14354_v38  ;;  %11635 = vmatmul.mubr.bf16.vlgmr.msra.gmra.mxu1 %v12373_v8  ;;  %v15196_v8 = vld [vmem:[#allocation34_spill] sm:$0xff] }
 0x3bd   : > { %v5648_v43 = vadd.f32 %v14332_v34, %v10801_v2  ;;  %v6467_v48 = vadd.f32 %v11540_v62, %v14370_v33  ;;  %8235 = vmatprep.mubr.bf16.mxu0 %v14358_v1  ;;  %11638 = vmatprep.mubr.bf16.mxu1 %v12374_v10  ;;  %v12375_v34 = vld [vmem:[%s12819_s18 + $0x260] ss:$12 sps:$4 sm:$0xff]  }
 0x3be   : > { %v10891_v40 = vpop.f32.mrf.mxu0  ;;  %v6458_v17 = vpop.f32.mrf.mxu1  ;;  %v15197_v63 = vld [vmem:[#allocation38_spill] sm:$0xff] }
 0x3bf   : > { %v14511_v44 = vadd.f32 %v5648_v43, %v15194_v25  ;;  %v14514_v3 = vadd.f32 %v6467_v48, %v15195_v21  ;;  %v14516_v61 = vadd.f32 %v10891_v40, %v10890_v9  ;;  %v6459_v38 = vadd.f32 %v14348_v52, %v6458_v17  ;;  %v15198_v48 = vld [vmem:[#allocation37_spill] sm:$0xff] }
 0x3c0   : > { %v10893_v46 = vpop.f32.mrf.mxu0  ;;  %v11541_v16 = vpop.f32.mrf.mxu1  ;;  %v15199_v21 = vld [vmem:[#allocation41_spill] sm:$0xff] }
 0x3c1   : > { %v14521_v33 = vadd.f32 %v6459_v38, %v15196_v8  ;;  %v6470_v1 = vadd.f32 %v11541_v16, %v14382_v0  ;;  %v15200_v8 = vld [vmem:[#allocation39_spill] sm:$0xff] }
 0x3c2   : > { %v10894_v10 = vpop.f32.mrf.mxu0  ;;  %v6461_v42 = vpop.f32.mrf.mxu1 }
 0x3c3   : > { %v14526_v2 = vadd.f32 %v6470_v1, %v15197_v63  ;;  %v14528_v62 = vadd.f32 %v10894_v10, %v10893_v46  ;;  %v6462_v9 = vadd.f32 %v14360_v12, %v6461_v42  ;;  %v12378_v10 = vld [vmem:[%s12819_s18 + $0x2a8] ss:$12 sps:$4 sm:$0xff]  }
 0x3c4   : > { %v10896_v52 = vpop.f32.mrf.mxu0  ;;  %v11544_v43 = vpop.f32.mrf.mxu1  ;;  %8236 = vmatmul.mubr.bf16.gmra.mxu0 %v14376_v5  ;;  %11639 = vmatmul.mubr.bf16.gmra.mxu1 %v12375_v34  ;;  %v12377_v34 = vld [vmem:[%s12819_s18 + $0x290] ss:$12 sps:$4 sm:$0xff]  }
 0x3c5   : > { %v14533_v40 = vadd.f32 %v6462_v9, %v15198_v48  ;;  %v6483_v0 = vadd.f32 %v11544_v43, %v14414_v47  ;;  %8243 = vmatprep.mubr.bf16.mxu0 %v14380_v49  ;;  %11642 = vmatprep.mubr.bf16.mxu1 %v12376_v15  ;;  %v15201_v42 = vld [vmem:[#allocation28_spill] sm:$0xff] }
 0x3c6   : > { %v10897_v17 = vpop.f32.mrf.mxu0  ;;  %v6474_v25 = vpop.f32.mrf.mxu1  ;;  %v15202_v48 = vld [vmem:[#allocation40_spill] sm:$0xff] }
 0x3c7   : > { %v14538_v38 = vadd.f32 %v6483_v0, %v15199_v21  ;;  %v14540_v12 = vadd.f32 %v10897_v17, %v10896_v52  ;;  %v6475_v46 = vadd.f32 %v14392_v36, %v6474_v25  ;;  %v15203_v21 = vld [vmem:[#allocation30_spill] sm:$0xff] }
 0x3c8   : > { %v10899_v5 = vpop.f32.mrf.mxu0  ;;  %v11545_v16 = vpop.f32.mrf.mxu1 }
 0x3c9   : > { %v14545_v1 = vadd.f32 %v6475_v46, %v15200_v8  ;;  %v6486_v47 = vadd.f32 %v11545_v16, %v14426_v54  ;;  %v15204_v8 = vld [vmem:[#allocation29_spill] sm:$0xff] }
 0x3ca   : > { %v10900_v49 = vpop.f32.mrf.mxu0  ;;  %v6477_v15 = vpop.f32.mrf.mxu1 }
 0x3cb   : > { %v14550_v63 = vadd.f32 %v6486_v47, %v15201_v42  ;;  %v14552_v9 = vadd.f32 %v10900_v49, %v10899_v5  ;;  %v6478_v52 = vadd.f32 %v14404_v60, %v6477_v15  ;;  %v12380_v49 = vld [vmem:[%s12819_s18 + $0x308] ss:$12 sps:$4 sm:$0xff]  }
 0x3cc   : > { %v10902_v36 = vpop.f32.mrf.mxu0  ;;  %v11548_v43 = vpop.f32.mrf.mxu1  ;;  %8244 = vmatmul.mubr.bf16.gmra.mxu0 %v14398_v51  ;;  %11643 = vmatmul.mubr.bf16.gmra.mxu1 %v12377_v34  ;;  %v12379_v34 = vld [vmem:[%s12819_s18 + $0x2c0] ss:$12 sps:$4 sm:$0xff]  }
 0x3cd   : > { %v14557_v0 = vadd.f32 %v6478_v52, %v15202_v48  ;;  %v6499_v54 = vadd.f32 %v11548_v43, %v14455_v55  ;;  %8251 = vmatprep.mubr.bf16.mxu0 %v14402_v4  ;;  %11646 = vmatprep.mubr.bf16.mxu1 %v12378_v10  ;;  %v15205_v15 = vld [vmem:[#allocation27_spill] sm:$0xff]  ;;  %v15206_v48 = vld [vmem:[#allocation26_spill] sm:$0xff] }
 0x3ce   : > { %v10903_v17 = vpop.f32.mrf.mxu0  ;;  %v6490_v25 = vpop.f32.mrf.mxu1 }
 0x3cf   : > { %v14562_v46 = vadd.f32 %v6499_v54, %v15203_v21  ;;  %v14564_v60 = vadd.f32 %v10903_v17, %v10902_v36  ;;  %v6491_v5 = vadd.f32 %v14436_v53, %v6490_v25 }
 0x3d0   : > { %v10905_v51 = vpop.f32.mrf.mxu0  ;;  %v11549_v16 = vpop.f32.mrf.mxu1 }
 0x3d1   : > { %v14569_v47 = vadd.f32 %v6491_v5, %v15204_v8  ;;  %v6502_v55 = vadd.f32 %v11549_v16, %v14465_v41  ;;  %v12381_v16 = vld [vmem:[%s12819_s18 + $0x320] ss:$12 sps:$4 sm:$0xff]  }
 0x3d2   : > { %v10906_v4 = vpop.f32.mrf.mxu0  ;;  %v6493_v10 = vpop.f32.mrf.mxu1 }
 0x3d3   : > { %v14574_v42 = vadd.f32 %v6502_v55, %v15205_v15  ;;  %v14576_v52 = vadd.f32 %v10906_v4, %v10905_v51  ;;  %v6494_v36 = vadd.f32 %v14445_v14, %v6493_v10  ;;  %v12385_v4 = vld [vmem:[%s12819_s18 + $0x338] ss:$12 sps:$4 sm:$0xff]  }
 0x3d4   : > { %v10908_v53 = vpop.f32.mrf.mxu0  ;;  %v11552_v43 = vpop.f32.mrf.mxu1  ;;  %8252 = vmatmul.mubr.bf16.gmra.mxu0 %v14420_v45  ;;  %11647 = vmatmul.mubr.bf16.gmra.mxu1 %v12379_v34  ;;  %v15207_v34 = vld [vmem:[#allocation32_spill] sm:$0xff] }
 0x3d5   : > { %v14581_v41 = vadd.f32 %v6494_v36, %v15206_v48  ;;  %v6515_v54 = vadd.f32 %v11552_v43, %v14493_v23  ;;  %8259 = vmatprep.mubr.bf16.mxu0 %v14424_v28  ;;  %11650 = vmatprep.mubr.bf16.mxu1 %v12380_v49  ;;  %v12384_v23 = vld [vmem:[%s12819_s18 + $0x37c] ss:$12 sps:$4 sm:$0xff]  }
 0x3d6   : > { %v10909_v17 = vpop.f32.mrf.mxu0  ;;  %v6506_v25 = vpop.f32.mrf.mxu1 }
 0x3d7   : > { %v14586_v14 = vadd.f32 %v6515_v54, %v14342_v6  ;;  %v10910_v21 = vadd.f32 %v10909_v17, %v10908_v53  ;;  %v6507_v5 = vadd.f32 %v14474_v13, %v6506_v25  ;;  %v15208_v53 = vld [vmem:[#allocation33_spill] sm:$0xff] }
 0x3d8   : > { %v10911_v45 = vpop.f32.mrf.mxu0  ;;  %v11553_v51 = vpop.f32.mrf.mxu1 }
 0x3d9   : > { %v14591_v8 = vadd.f32 %v6507_v5, %v15207_v34  ;;  %v6518_v55 = vadd.f32 %v11553_v51, %v14504_v32 }
 0x3da   : > { %v10912_v28 = vpop.f32.mrf.mxu0  ;;  %v6509_v49 = vpop.f32.mrf.mxu1 }
 0x3db   : > { %v14597_v10 = vadd.f32 %v6518_v55, %v14351_v56  ;;  %v10913_v6 = vadd.f32 %v10912_v28, %v10911_v45  ;;  %v6510_v15 = vadd.f32 %v14485_v11, %v6509_v49  ;;  %v12386_v45 = vld [vmem:[%s12819_s18 + $0x350] ss:$12 sps:$4 sm:$0xff]  }
 0x3dc   : > { %v10914_v13 = vpop.f32.mrf.mxu0  ;;  %v11556_v36 = vpop.f32.mrf.mxu1  ;;  %8260 = vmatmul.mubr.bf16.gmra.mxu0 %v14442_v58  ;;  %11651 = vmatmul.mubr.bf16.gmra.mxu1 %v12381_v16  ;;  %v12382_v58 = vld [vmem:[%s12819_s18 + $0x378] ss:$12 sps:$4 sm:$0xff]  }
 0x3dd   : > { %v14602_v32 = vadd.f32 %v6510_v15, %v15208_v53  ;;  %v6531_v43 = vadd.f32 %v11556_v36, %v14540_v12  ;;  %8267 = vmatprep.mubr.bf16.mxu0 %v12384_v23  ;;  %11654 = vmatprep.mubr.bf16.mxu1 %v12385_v4  ;;  %v12387_v12 = vld [vmem:[%s12819_s18 + $0x368] ss:$12 sps:$4 sm:$0xff]  }
 0x3de   : > { %v10915_v56 = vpop.f32.mrf.mxu0  ;;  %v6522_v48 = vpop.f32.mrf.mxu1 }
 0x3df   : > { %v14606_v54 = vadd.f32 %v6531_v43, %v14385_v24  ;;  %v10916_v11 = vadd.f32 %v10915_v56, %v10914_v13  ;;  %v6523_v17 = vadd.f32 %v14516_v61, %v6522_v48  ;;  %v12388_v43 = vld [vmem:[%s12819_s18 + $0x380] ss:$12 sps:$4 sm:$0xff]  }
 0x3e0   : > { %v10917_v25 = vpop.f32.mrf.mxu0  ;;  %v11557_v5 = vpop.f32.mrf.mxu1  ;;  %v12391_v48 = vld [vmem:[%s12819_s18 + $0x3ac] ss:$12 sps:$4 sm:$0xff]  }
 0x3e1   : > { %v14612_v51 = vadd.f32 %v6523_v17, %v14363_v26  ;;  %v6534_v16 = vadd.f32 %v11557_v5, %v14552_v9 }
 0x3e2   : > { %v10918_v34 = vpop.f32.mrf.mxu0  ;;  %v6525_v55 = vpop.f32.mrf.mxu1 }
 0x3e3   : > { %v14617_v23 = vadd.f32 %v6534_v16, %v14395_v59  ;;  %v10919_v24 = vadd.f32 %v10918_v34, %v10917_v25  ;;  %v6526_v4 = vadd.f32 %v14528_v62, %v6525_v55 }
 0x3e4   : > { %v10920_v61 = vpop.f32.mrf.mxu0  ;;  %v11560_v28 = vpop.f32.mrf.mxu1  ;;  %8268 = vmatmul.mubr.bf16.gmra.mxu0 %v12382_v58  ;;  %11655 = vmatmul.mubr.bf16.gmra.mxu1 %v12386_v45 }
 0x3e5   : > { %v14621_v26 = vadd.f32 %v6526_v4, %v14373_v50  ;;  %v6547_v9 = vadd.f32 %v11560_v28, %v10910_v21  ;;  %8275 = vmatprep.mubr.bf16.mxu0 %v14462_v39  ;;  %11658 = vmatprep.mubr.bf16.mxu1 %v12387_v12  ;;  %v12392_v21 = vld [vmem:[%s12819_s18 + $0x398] ss:$12 sps:$4 sm:$0xff]   ;;  %v12389_v4 = vld [vmem:[%s12819_s18 + $0x3a8] ss:$12 sps:$4 sm:$0xff]  }
 0x3e6   : > { %v10921_v49 = vpop.f32.mrf.mxu0  ;;  %v6538_v59 = vpop.f32.mrf.mxu1 }
 0x3e7   : > { %v14625_v15 = vadd.f32 %v6547_v9, %v14429_v35  ;;  %v10922_v62 = vadd.f32 %v10921_v49, %v10920_v61  ;;  %v6539_v13 = vadd.f32 %v14564_v60, %v6538_v59  ;;  %v12393_v61 = vld [vmem:[%s12819_s18 + $0x3b0] ss:$12 sps:$4 sm:$0xff]  }
 0x3e8   : > { %v10923_v36 = vpop.f32.mrf.mxu0  ;;  %v11561_v53 = vpop.f32.mrf.mxu1 }
 0x3e9   : > { %v14630_v56 = vadd.f32 %v6539_v13, %v14407_v29  ;;  %v6550_v50 = vadd.f32 %v11561_v53, %v10913_v6 }
 0x3ea   : > { %v10924_v17 = vpop.f32.mrf.mxu0  ;;  %v6541_v39 = vpop.f32.mrf.mxu1 }
 0x3eb   : > { %v14635_v25 = vadd.f32 %v6550_v50, %v14439_v57  ;;  %v10925_v5 = vadd.f32 %v10924_v17, %v10923_v36  ;;  %v6542_v35 = vadd.f32 %v14576_v52, %v6541_v39 }
 0x3ec   : > { %v10926_v58 = vpop.f32.mrf.mxu0  ;;  %v11564_v60 = vpop.f32.mrf.mxu1  ;;  %8276 = vmatmul.mubr.bf16.gmra.mxu0 %v14480_v18  ;;  %11659 = vmatmul.mubr.bf16.gmra.mxu1 %v12388_v43 }
 0x3ed   : > { %v14640_v29 = vadd.f32 %v6542_v35, %v14417_v37  ;;  %v6563_v6 = vadd.f32 %v11564_v60, %v10922_v62  ;;  %8283 = vmatprep.mubr.bf16.mxu0 %v12391_v48  ;;  %11662 = vmatprep.mubr.bf16.mxu1 %v12392_v21 }
 0x3ee   : > { %v10927_v45 = vpop.f32.mrf.mxu0  ;;  %v6554_v16 = vpop.f32.mrf.mxu1 }
 0x3ef   : > { %v14643_v57 = vadd.f32 %v6563_v6, %v14468_v19  ;;  %v10928_v12 = vadd.f32 %v10927_v45, %v10926_v58  ;;  %v6555_v52 = vadd.f32 %v10916_v11, %v6554_v16 }
 0x3f0   : > { %v10929_v34 = vpop.f32.mrf.mxu0  ;;  %v11565_v55 = vpop.f32.mrf.mxu1 }
 0x3f1   : > { %v14648_v18 = vadd.f32 %v6555_v52, %v14448_v31  ;;  %v6566_v28 = vadd.f32 %v11565_v55, %v10925_v5 }
 0x3f2   : > { %v10930_v37 = vpop.f32.mrf.mxu0  ;;  %v6557_v9 = vpop.f32.mrf.mxu1 }
 0x3f3   : > { %v14651_v49 = vadd.f32 %v6566_v28, %v14477_v20  ;;  %v10931_v59 = vadd.f32 %v10930_v37, %v10929_v34  ;;  %v6558_v62 = vadd.f32 %v10919_v24, %v6557_v9 }
 0x3f4   : > { %v10932_v13 = vpop.f32.mrf.mxu0  ;;  %v11568_v19 = vpop.f32.mrf.mxu1  ;;  %8284 = vmatmul.mubr.bf16.gmra.mxu0 %v12389_v4  ;;  %11663 = vmatmul.mubr.bf16.gmra.mxu1 %v12393_v61 }
 0x3f5   : > { %v14654_v11 = vadd.f32 %v6558_v62, %v14458_v7 }
 0x3f6   : > { %v10933_v36 = vpop.f32.mrf.mxu0  ;;  %v6570_v53 = vpop.f32.mrf.mxu1 }
 0x3f7   : > { %v10934_v43 = vadd.f32 %v10933_v36, %v10932_v13  ;;  %v6571_v31 = vadd.f32 %v10928_v12, %v6570_v53 }
 0x3f8   : > { %v10935_v50 = vpop.f32.mrf.mxu0  ;;  %v11569_v48 = vpop.f32.mrf.mxu1 }
 0x3f9   : > { %v6579_v21 = vadd.f32 %v11568_v19, %v10934_v43  ;;  %v14657_v17 = vadd.f32 %v6571_v31, %v14488_v22 }
 0x3fa   : > { %v10936_v20 = vpop.f32.mrf.mxu0  ;;  %v6573_v39 = vpop.f32.mrf.mxu1 }
 0x3fb   : > { %v14660_v24 = vadd.f32 %v6579_v21, %v14502_v27  ;;  %v10937_v5 = vadd.f32 %v10936_v20, %v10935_v50  ;;  %v6574_v35 = vadd.f32 %v10931_v59, %v6573_v39 }
 0x3fc   : > { %v10978_v58 = vpop.f32.mrf.mxu1  ;;  %v11588_v7 = vpop.f32.mrf.mxu0 }
 0x3fd   : > { %v6582_v60 = vadd.f32 %v11569_v48, %v10937_v5  ;;  %v14663_v6 = vadd.f32 %v6574_v35, %v14496_v30 }
 0x3fe   : > { %v10979_v45 = vpop.f32.mrf.mxu1  ;;  %v7392_v16 = vpop.f32.mrf.mxu0 }
 0x3ff   : > { %v14666_v12 = vadd.f32 %v6582_v60, %v14511_v44  ;;  %v10980_v22 = vadd.f32 %v10979_v45, %v10978_v58 }
 0x400   : > { %v10981_v52 = vpop.f32.mrf.mxu1  ;;  %v11589_v34 = vpop.f32.mrf.mxu0 }
 0x401   : > { %v7393_v55 = vadd.f32 %v10980_v22, %v7392_v16 }
 0x402   : > { %v10982_v4 = vpop.f32.mrf.mxu1  ;;  %v7395_v27 = vpop.f32.mrf.mxu0 }
 0x403   : > { %v14669_v61 = vadd.f32 %v7393_v55, %v14521_v33  ;;  %v10983_v28 = vadd.f32 %v10982_v4, %v10981_v52 }
 0x404   : > { %v10984_v37 = vpop.f32.mrf.mxu1  ;;  %v11592_v9 = vpop.f32.mrf.mxu0 }
 0x405   : > { %v7396_v59 = vadd.f32 %v10983_v28, %v7395_v27 }
 0x406   : > { %v10985_v30 = vpop.f32.mrf.mxu1  ;;  %v7408_v62 = vpop.f32.mrf.mxu0 }
 0x407   : > { %v14672_v13 = vadd.f32 %v7396_v59, %v14533_v40  ;;  %v10986_v44 = vadd.f32 %v10985_v30, %v10984_v37 }
 0x408   : > { %v10987_v19 = vpop.f32.mrf.mxu1  ;;  %v11593_v36 = vpop.f32.mrf.mxu0 }
 0x409   : > { %v7401_v53 = vadd.f32 %v11588_v7, %v10986_v44 }
 0x40a   : > { %v10988_v43 = vpop.f32.mrf.mxu1  ;;  %v7411_v31 = vpop.f32.mrf.mxu0 }
 0x40b   : > { %v10989_v50 = vadd.f32 %v10988_v43, %v10987_v19  ;;  %v14675_v48 = vadd.f32 %v7401_v53, %v14514_v3 }
 0x40c   : > { %v10990_v33 = vpop.f32.mrf.mxu1  ;;  %v11596_v21 = vpop.f32.mrf.mxu0 }
 0x40d   : > { %v7404_v20 = vadd.f32 %v11589_v34, %v10989_v50 }
 0x40e   : > { %v10991_v39 = vpop.f32.mrf.mxu1  ;;  %v7424_v5 = vpop.f32.mrf.mxu0 }
 0x40f   : > { %v10992_v35 = vadd.f32 %v10991_v39, %v10990_v33  ;;  %v14678_v58 = vadd.f32 %v7404_v20, %v14526_v2 }
 0x410   : > { %v10993_v40 = vpop.f32.mrf.mxu1  ;;  %v11597_v60 = vpop.f32.mrf.mxu0 }
 0x411   : > { %v7409_v45 = vadd.f32 %v10992_v35, %v7408_v62 }
 0x412   : > { %v10994_v16 = vpop.f32.mrf.mxu1  ;;  %v7427_v7 = vpop.f32.mrf.mxu0 }
 0x413   : > { %v10995_v22 = vadd.f32 %v10994_v16, %v10993_v40  ;;  %v14681_v52 = vadd.f32 %v7409_v45, %v14545_v1 }
 0x414   : > { %v10996_v3 = vpop.f32.mrf.mxu1  ;;  %v14683_v55 = vpop.f32.mrf.mxu0 }
 0x415   : > { %v7412_v4 = vadd.f32 %v10995_v22, %v7411_v31 }
 0x416   : > { %v10997_v34 = vpop.f32.mrf.mxu1  ;;  %v7440_v27 = vpop.f32.mrf.mxu0 }
 0x417   : > { %v10998_v28 = vadd.f32 %v10997_v34, %v10996_v3  ;;  %v14686_v37 = vadd.f32 %v7412_v4, %v14557_v0 }
 0x418   : > { %v10999_v2 = vpop.f32.mrf.mxu1  ;;  %v14688_v59 = vpop.f32.mrf.mxu0 }
 0x419   : > { %v7417_v30 = vadd.f32 %v11592_v9, %v10998_v28 }
 0x41a   : > { %v11000_v62 = vpop.f32.mrf.mxu1  ;;  %v7443_v44 = vpop.f32.mrf.mxu0 }
 0x41b   : > { %v11001_v19 = vadd.f32 %v11000_v62, %v10999_v2  ;;  %v14691_v1 = vadd.f32 %v7417_v30, %v14538_v38 }
 0x41c   : > { %v11002_v53 = vpop.f32.mrf.mxu1  ;;  %v14693_v43 = vpop.f32.mrf.mxu0 }
 0x41d   : > { %v7420_v31 = vadd.f32 %v11593_v36, %v11001_v19 }
 0x41e   : > { %v11003_v50 = vpop.f32.mrf.mxu1  ;;  %v7456_v33 = vpop.f32.mrf.mxu0 }
 0x41f   : > { %v11004_v20 = vadd.f32 %v11003_v50, %v11002_v53  ;;  %v14696_v0 = vadd.f32 %v7420_v31, %v14550_v63 }
 0x420   : > { %v11005_v39 = vpop.f32.mrf.mxu1  ;;  %v14698_v35 = vpop.f32.mrf.mxu0 }
 0x421   : > { %v7425_v9 = vadd.f32 %v11004_v20, %v7424_v5 }
 0x422   : > { %v11006_v40 = vpop.f32.mrf.mxu1  ;;  %v7459_v45 = vpop.f32.mrf.mxu0 }
 0x423   : > { %v11007_v16 = vadd.f32 %v11006_v40, %v11005_v39  ;;  %v14701_v38 = vadd.f32 %v7425_v9, %v14569_v47 }
 0x424   : > { %v11008_v22 = vpop.f32.mrf.mxu1  ;;  %v14703_v3 = vpop.f32.mrf.mxu0 }
 0x425   : > { %v7428_v36 = vadd.f32 %v11007_v16, %v7427_v7 }
 0x426   : > { %v11009_v4 = vpop.f32.mrf.mxu1  ;;  %v14705_v34 = vpop.f32.mrf.mxu0 }
 0x427   : > { %v11010_v28 = vadd.f32 %v11009_v4, %v11008_v22  ;;  %v14708_v63 = vadd.f32 %v7428_v36, %v14581_v41 }
 0x428   : > { %v11011_v2 = vpop.f32.mrf.mxu1  ;;  %v14710_v30 = vpop.f32.mrf.mxu0 }
 0x429   : > { %v7433_v5 = vadd.f32 %v11596_v21, %v11010_v28 }
 0x42a   : > { %v11012_v62 = vpop.f32.mrf.mxu1  ;;  %v14712_v19 = vpop.f32.mrf.mxu0 }
 0x42b   : > { %v11013_v47 = vadd.f32 %v11012_v62, %v11011_v2  ;;  %v14715_v53 = vadd.f32 %v7433_v5, %v14562_v46 }
 0x42c   : > { %v11014_v31 = vpop.f32.mrf.mxu1  ;;  %v14717_v7 = vpop.f32.mrf.mxu0 }
 0x42d   : > { %v7436_v50 = vadd.f32 %v11597_v60, %v11013_v47 }
 0x42e   : > { %v11015_v20 = vpop.f32.mrf.mxu1  ;;  %v14719_v39 = vpop.f32.mrf.mxu0 }
 0x42f   : > { %v11016_v41 = vadd.f32 %v11015_v20, %v11014_v31  ;;  %v14722_v9 = vadd.f32 %v7436_v50, %v14574_v42 }
 0x430   : > { %v11017_v40 = vpop.f32.mrf.mxu1  ;;  %v14724_v21 = vpop.f32.mrf.mxu0 }
 0x431   : > { %v7441_v16 = vadd.f32 %v11016_v41, %v7440_v27 }
 0x432   : > { %v11018_v22 = vpop.f32.mrf.mxu1  ;;  %v14726_v36 = vpop.f32.mrf.mxu0 }
 0x433   : > { %v11019_v46 = vadd.f32 %v11018_v22, %v11017_v40  ;;  %v14729_v4 = vadd.f32 %v7441_v16, %v14591_v8 }
 0x434   : > { %v11020_v28 = vpop.f32.mrf.mxu1  ;;  %v14731_v60 = vpop.f32.mrf.mxu0 }
 0x435   : > { %15209 = vst [vmem:[#allocation31_spill] sm:$0xff] %v14729_v4  ;;  %v7444_v2 = vadd.f32 %v11019_v46, %v7443_v44 }
 0x436   : > { %v11021_v5 = vpop.f32.mrf.mxu1  ;;  %v14733_v62 = vpop.f32.mrf.mxu0 }
 0x437   : > { %v11022_v42 = vadd.f32 %v11021_v5, %v11020_v28  ;;  %v14736_v47 = vadd.f32 %v7444_v2, %v14602_v32 }
 0x438   : > { %v11023_v31 = vpop.f32.mrf.mxu1  ;;  %v14738_v27 = vpop.f32.mrf.mxu0 }
 0x439   : > { %15210 = vst [vmem:[#allocation36_spill] sm:$0xff] %v14736_v47  ;;  %v7449_v50 = vadd.f32 %v14683_v55, %v11022_v42 }
 0x43a   : > { %v11024_v20 = vpop.f32.mrf.mxu1  ;;  %v14741_v41 = vpop.f32.mrf.mxu0 }
 0x43b   : > { %v11025_v8 = vadd.f32 %v11024_v20, %v11023_v31  ;;  %v14744_v40 = vadd.f32 %v7449_v50, %v14586_v14 }
 0x43c   : > { %v11026_v44 = vpop.f32.mrf.mxu1  ;;  %v14746_v16 = vpop.f32.mrf.mxu0 }
 0x43d   : > { %v7452_v22 = vadd.f32 %v14688_v59, %v11025_v8 }
 0x43e   : > { %v11027_v46 = vpop.f32.mrf.mxu1  ;;  %v14749_v32 = vpop.f32.mrf.mxu0 }
 0x43f   : > { %v11028_v28 = vadd.f32 %v11027_v46, %v11026_v44  ;;  %v14752_v2 = vadd.f32 %v7452_v22, %v14597_v10 }
 0x440   : > { %v11029_v55 = vpop.f32.mrf.mxu1  ;;  %v14754_v5 = vpop.f32.mrf.mxu0 }
 0x441   : > { %v7457_v42 = vadd.f32 %v11028_v28, %v7456_v33 }
 0x442   : > { %v11030_v31 = vpop.f32.mrf.mxu1  ;;  %v14756_v20 = vpop.f32.mrf.mxu0 }
 0x443   : > { %v11031_v14 = vadd.f32 %v11030_v31, %v11029_v55  ;;  %v14759_v50 = vadd.f32 %v7457_v42, %v14612_v51 }
 0x444   : > { %v11032_v47 = vpop.f32.mrf.mxu1  ;;  %v14761_v59 = vpop.f32.mrf.mxu0 }
 0x445   : > { %15211 = vst [vmem:[#allocation35_spill] sm:$0xff] %v14759_v50  ;;  %v7460_v8 = vadd.f32 %v11031_v14, %v7459_v45 }
 0x446   : > { %v11033_v4 = vpop.f32.mrf.mxu1  ;;  %v14763_v44 = vpop.f32.mrf.mxu0 }
 0x447   : > { %v11034_v10 = vadd.f32 %v11033_v4, %v11032_v47  ;;  %v14766_v22 = vadd.f32 %v7460_v8, %v14621_v26 }
 0x448   : > { %v11035_v46 = vpop.f32.mrf.mxu1  ;;  %v14768_v33 = vpop.f32.mrf.mxu0 }
 0x449   : > { %15212 = vst [vmem:[#allocation34_spill] sm:$0xff] %v14766_v22  ;;  %v7465_v28 = vadd.f32 %v14693_v43, %v11034_v10 }
 0x44a   : > { %v11036_v55 = vpop.f32.mrf.mxu1  ;;  %v14771_v31 = vpop.f32.mrf.mxu0 }
 0x44b   : > { %v11037_v51 = vadd.f32 %v11036_v55, %v11035_v46  ;;  %v14774_v42 = vadd.f32 %v7465_v28, %v14606_v54 }
 0x44c   : > { %v11038_v45 = vpop.f32.mrf.mxu1  ;;  %v14776_v14 = vpop.f32.mrf.mxu0 }
 0x44d   : > { %v7468_v4 = vadd.f32 %v14698_v35, %v11037_v51 }
 0x44e   : > { %v11039_v47 = vpop.f32.mrf.mxu1  ;;  %v14779_v26 = vpop.f32.mrf.mxu0 }
 0x44f   : > { %v11040_v8 = vadd.f32 %v11039_v47, %v11038_v45  ;;  %v14782_v22 = vadd.f32 %v7468_v4, %v14617_v23 }
 0x450   : > { %v11041_v43 = vpop.f32.mrf.mxu1  ;;  %v14784_v10 = vpop.f32.mrf.mxu0 }
 0x451   : > { %15213 = vst [vmem:[#allocation38_spill] sm:$0xff] %v14782_v22  ;;  %v7473_v46 = vadd.f32 %v11040_v8, %v14705_v34 }
 0x452   : > { %v11042_v55 = vpop.f32.mrf.mxu1  ;;  %v14787_v54 = vpop.f32.mrf.mxu0 }
 0x453   : > { %v11043_v28 = vadd.f32 %v11042_v55, %v11041_v43  ;;  %v14790_v50 = vadd.f32 %v7473_v46, %v14630_v56 }
 0x454   : > { %v11044_v35 = vpop.f32.mrf.mxu1  ;;  %v14792_v51 = vpop.f32.mrf.mxu0 }
 0x455   : > { %15214 = vst [vmem:[#allocation37_spill] sm:$0xff] %v14790_v50  ;;  %v7476_v45 = vadd.f32 %v11043_v28, %v14712_v19 }
 0x456   : > { %v11045_v47 = vpop.f32.mrf.mxu1  ;;  %v14795_v23 = vpop.f32.mrf.mxu0 }
 0x457   : > { %v11046_v4 = vadd.f32 %v11045_v47, %v11044_v35  ;;  %v14798_v22 = vadd.f32 %v7476_v45, %v14640_v29 }
 0x458   : > { %v11047_v34 = vpop.f32.mrf.mxu1  ;;  %v14800_v8 = vpop.f32.mrf.mxu0 }
 0x459   : > { %15215 = vst [vmem:[#allocation41_spill] sm:$0xff] %v14798_v22  ;;  %v7481_v43 = vadd.f32 %v14703_v3, %v11046_v4 }
 0x45a   : > { %v11048_v55 = vpop.f32.mrf.mxu1  ;;  %v14803_v56 = vpop.f32.mrf.mxu0 }
 0x45b   : > { %v11049_v46 = vadd.f32 %v11048_v55, %v11047_v34  ;;  %v14806_v50 = vadd.f32 %v7481_v43, %v14625_v15 }
 0x45c   : > { %v11050_v19 = vpop.f32.mrf.mxu1  ;;  %v14808_v28 = vpop.f32.mrf.mxu0 }
 0x45d   : > { %15216 = vst [vmem:[#allocation39_spill] sm:$0xff] %v14806_v50  ;;  %v7484_v35 = vadd.f32 %v14710_v30, %v11049_v46 }
 0x45e   : > { %v11051_v47 = vpop.f32.mrf.mxu1  ;;  %v14811_v29 = vpop.f32.mrf.mxu0 }
 0x45f   : > { %v11052_v45 = vadd.f32 %v11051_v47, %v11050_v19  ;;  %v14814_v22 = vadd.f32 %v7484_v35, %v14635_v25 }
 0x460   : > { %v11053_v3 = vpop.f32.mrf.mxu1  ;;  %v14816_v4 = vpop.f32.mrf.mxu0 }
 0x461   : > { %15217 = vst [vmem:[#allocation28_spill] sm:$0xff] %v14814_v22  ;;  %v7489_v34 = vadd.f32 %v11052_v45, %v14719_v39 }
 0x462   : > { %v11054_v55 = vpop.f32.mrf.mxu1  ;;  %v14819_v15 = vpop.f32.mrf.mxu0 }
 0x463   : > { %v11055_v43 = vadd.f32 %v11054_v55, %v11053_v3  ;;  %v14822_v50 = vadd.f32 %v7489_v34, %v14648_v18 }
 0x464   : > { %v11056_v30 = vpop.f32.mrf.mxu1  ;;  %v14824_v46 = vpop.f32.mrf.mxu0 }
 0x465   : > { %15218 = vst [vmem:[#allocation40_spill] sm:$0xff] %v14822_v50  ;;  %v7492_v19 = vadd.f32 %v11055_v43, %v14726_v36 }
 0x466   : > { %v11057_v47 = vpop.f32.mrf.mxu1  ;;  %v14827_v25 = vpop.f32.mrf.mxu0 }
 0x467   : > { %v11058_v35 = vadd.f32 %v11057_v47, %v11056_v30  ;;  %v14830_v22 = vadd.f32 %v7492_v19, %v14654_v11 }
 0x468   : > { %v11059_v39 = vpop.f32.mrf.mxu1  ;;  %v14832_v45 = vpop.f32.mrf.mxu0 }
 0x469   : > { %15219 = vst [vmem:[#allocation30_spill] sm:$0xff] %v14830_v22  ;;  %v7497_v3 = vadd.f32 %v14717_v7, %v11058_v35 }
 0x46a   : > { %v11060_v55 = vpop.f32.mrf.mxu1  ;;  %v14835_v18 = vpop.f32.mrf.mxu0 }
 0x46b   : > { %v11061_v34 = vadd.f32 %v11060_v55, %v11059_v39  ;;  %v14838_v50 = vadd.f32 %v7497_v3, %v14643_v57 }
 0x46c   : > { %v11062_v36 = vpop.f32.mrf.mxu1  ;;  %v14840_v43 = vpop.f32.mrf.mxu0 }
 0x46d   : > { %15220 = vst [vmem:[#allocation29_spill] sm:$0xff] %v14838_v50  ;;  %v7500_v30 = vadd.f32 %v14724_v21, %v11061_v34 }
 0x46e   : > { %v11063_v47 = vpop.f32.mrf.mxu1  ;;  %v14843_v11 = vpop.f32.mrf.mxu0 }
 0x46f   : > { %v11064_v19 = vadd.f32 %v11063_v47, %v11062_v36  ;;  %v14846_v22 = vadd.f32 %v7500_v30, %v14651_v49 }
 0x470   : > { %v11065_v7 = vpop.f32.mrf.mxu1  ;;  %v14848_v35 = vpop.f32.mrf.mxu0 }
 0x471   : > { %15221 = vst [vmem:[#allocation27_spill] sm:$0xff] %v14846_v22  ;;  %v7505_v39 = vadd.f32 %v11064_v19, %v14733_v62 }
 0x472   : > { %v11066_v55 = vpop.f32.mrf.mxu1  ;;  %v14851_v57 = vpop.f32.mrf.mxu0 }
 0x473   : > { %v11067_v3 = vadd.f32 %v11066_v55, %v11065_v7  ;;  %v14854_v50 = vadd.f32 %v7505_v39, %v14657_v17  ;;  %v11122_v39 = vadd.f32 %v14763_v44, %v14761_v59 }
 0x474   : > { %v11068_v21 = vpop.f32.mrf.mxu1  ;;  %v14856_v34 = vpop.f32.mrf.mxu0 }
 0x475   : > { %15222 = vst [vmem:[#allocation26_spill] sm:$0xff] %v14854_v50  ;;  %v7508_v36 = vadd.f32 %v11067_v3, %v14741_v41 }
 0x476   : > { %v11069_v47 = vpop.f32.mrf.mxu1  ;;  %v14859_v49 = vpop.f32.mrf.mxu0 }
 0x477   : > { %v11070_v30 = vadd.f32 %v11069_v47, %v11068_v21  ;;  %v14862_v22 = vadd.f32 %v7508_v36, %v14663_v6  ;;  %v11116_v6 = vadd.f32 %v14749_v32, %v14746_v16  ;;  %v11119_v16 = vadd.f32 %v14756_v20, %v14754_v5 }
 0x478   : > { %v11071_v62 = vpop.f32.mrf.mxu1  ;;  %v14864_v19 = vpop.f32.mrf.mxu0 }
 0x479   : > { %15223 = vst [vmem:[#allocation32_spill] sm:$0xff] %v14862_v22  ;;  %v7513_v7 = vadd.f32 %v14731_v60, %v11070_v30  ;;  %v14879_v60 = vld [vmem:[#allocation6] ss:$0 sm:$0xff] }
 0x47a   : > { %v11072_v55 = vpop.f32.mrf.mxu1  ;;  %v14867_v17 = vpop.f32.mrf.mxu0 }
 0x47b   : > { %v14872_v41 = vadd.f32 %v7513_v7, %v14660_v24  ;;  %v11073_v3 = vadd.f32 %v11072_v55, %v11071_v62  ;;  %v11125_v24 = vadd.f32 %v14771_v31, %v14768_v33 }
 0x47c   : > { %v14874_v50 = vpop.f32.mrf.mxu0  ;;  %v11636_v21 = vpop.f32.mrf.mxu1 }
 0x47d   : > { %v7516_v36 = vadd.f32 %v14738_v27, %v11073_v3  ;;  %v8335_v47 = vadd.f32 %v11636_v21, %v11122_v39 }
 0x47e   : > { %v14881_v30 = vpop.f32.mrf.mxu0  ;;  %v8326_v22 = vpop.f32.mrf.mxu1 }
 0x47f   : > { %v14886_v59 = vadd.f32 %v7516_v36, %v14666_v12  ;;  %v8487_v44 = vadd.f32 %v8335_v47, %v14675_v48  ;;  %v8327_v62 = vadd.f32 %v11116_v6, %v8326_v22  ;;  %v11134_v12 = vadd.f32 %v14795_v23, %v14792_v51 }
 0x480   : > { %v14889_v7 = vpop.f32.mrf.mxu0  ;;  %v11637_v27 = vpop.f32.mrf.mxu1 }
 0x481   : > { %v8590_v32 = vadd.f32 %v14879_v60, %v8487_v44  ;;  %v8485_v55 = vadd.f32 %v8327_v62, %v14669_v61  ;;  %v8338_v39 = vadd.f32 %v11637_v27, %v11125_v24  ;;  %v11128_v61 = vadd.f32 %v14779_v26, %v14776_v14 }
 0x482   : > { %v14895_v3 = vpop.f32.mrf.mxu0  ;;  %v8329_v33 = vpop.f32.mrf.mxu1 }
 0x483   : > { %8622 = vst [vmem:[%s12784_s8 + $0x10] sm:$0xff] %v8590_v32  ;;  %v8588_v48 = vadd.f32 %v14879_v60, %v8485_v55  ;;  %v8488_v22 = vadd.f32 %v8338_v39, %v14678_v58  ;;  %v8330_v31 = vadd.f32 %v11119_v16, %v8329_v33  ;;  %v11137_v58 = vadd.f32 %v14803_v56, %v14800_v8 }
 0x484   : > { %v14902_v21 = vpop.f32.mrf.mxu0  ;;  %v11640_v5 = vpop.f32.mrf.mxu1 }
 0x485   : > { %8620 = vst [vmem:[%s12784_s8] sm:$0xff] %v8588_v48  ;;  %v8591_v20 = vadd.f32 %v14879_v60, %v8488_v22  ;;  %v8486_v6 = vadd.f32 %v8330_v31, %v14672_v13  ;;  %v8351_v36 = vadd.f32 %v11640_v5, %v11134_v12  ;;  %v11131_v13 = vadd.f32 %v14787_v54, %v14784_v10 }
 0x486   : > { %v14909_v51 = vpop.f32.mrf.mxu0  ;;  %v8342_v23 = vpop.f32.mrf.mxu1 }
 0x487   : > { %8623 = vst [vmem:[%s12784_s8 + $0x18] sm:$0xff] %v8591_v20  ;;  %v8589_v47 = vadd.f32 %v14879_v60, %v8486_v6  ;;  %v8491_v24 = vadd.f32 %v8351_v36, %v14691_v1  ;;  %v8343_v44 = vadd.f32 %v11128_v61, %v8342_v23  ;;  %v11146_v1 = vadd.f32 %v14827_v25, %v14824_v46 }
 0x488   : > { %v14916_v14 = vpop.f32.mrf.mxu0  ;;  %v11641_v26 = vpop.f32.mrf.mxu1 }
 0x489   : > { %8621 = vst [vmem:[%s12784_s8 + $0x8] sm:$0xff] %v8589_v47  ;;  %v8594_v62 = vadd.f32 %v14879_v60, %v8491_v24  ;;  %v8489_v27 = vadd.f32 %v8343_v44, %v14681_v52  ;;  %v8354_v16 = vadd.f32 %v11641_v26, %v11137_v58  ;;  %v11140_v52 = vadd.f32 %v14811_v29, %v14808_v28 }
 0x48a   : > { %v14923_v8 = vpop.f32.mrf.mxu0  ;;  %v8345_v56 = vpop.f32.mrf.mxu1 }
 0x48b   : > { %8626 = vst [vmem:[%s12784_s8 + $0x30] sm:$0xff] %v8594_v62  ;;  %v8592_v32 = vadd.f32 %v14879_v60, %v8489_v27  ;;  %v8492_v55 = vadd.f32 %v8354_v16, %v14696_v0  ;;  %v8346_v39 = vadd.f32 %v11131_v13, %v8345_v56  ;;  %v11149_v0 = vadd.f32 %v14835_v18, %v14832_v45  ;;  %v15224_v16 = vld [vmem:[#allocation31_spill] sm:$0xff] }
 0x48c   : > { %v14930_v10 = vpop.f32.mrf.mxu0  ;;  %v11644_v54 = vpop.f32.mrf.mxu1 }
 0x48d   : > { %8624 = vst [vmem:[%s12784_s8 + $0x20] sm:$0xff] %v8592_v32  ;;  %v8595_v33 = vadd.f32 %v14879_v60, %v8492_v55  ;;  %v8490_v12 = vadd.f32 %v8346_v39, %v14686_v37  ;;  %v8367_v48 = vadd.f32 %v11644_v54, %v11146_v1  ;;  %v11143_v37 = vadd.f32 %v14819_v15, %v14816_v4 }
 0x48e   : > { %v14937_v46 = vpop.f32.mrf.mxu0  ;;  %v8358_v25 = vpop.f32.mrf.mxu1 }
 0x48f   : > { %8627 = vst [vmem:[%s12784_s8 + $0x38] sm:$0xff] %v8595_v33  ;;  %v8593_v22 = vadd.f32 %v14879_v60, %v8490_v12  ;;  %v8495_v31 = vadd.f32 %v8367_v48, %v14715_v53  ;;  %v8359_v5 = vadd.f32 %v11140_v52, %v8358_v25  ;;  %v11158_v53 = vadd.f32 %v14859_v49, %v14856_v34  ;;  %v15225_v33 = vld [vmem:[#allocation36_spill] sm:$0xff] }
 0x490   : > { %v14944_v28 = vpop.f32.mrf.mxu0  ;;  %v11645_v29 = vpop.f32.mrf.mxu1  ;;  %v11161_v49 = vadd.f32 %v14867_v17, %v14864_v19  ;;  %v11170_v17 = vadd.f32 %v14909_v51, %v14902_v21  ;;  %v11173_v51 = vadd.f32 %v14923_v8, %v14916_v14 }
 0x491   : > { %8625 = vst [vmem:[%s12784_s8 + $0x28] sm:$0xff] %v8593_v22  ;;  %v8598_v61 = vadd.f32 %v14879_v60, %v8495_v31  ;;  %v8493_v20 = vadd.f32 %v8359_v5, %v14701_v38  ;;  %v8370_v6 = vadd.f32 %v11645_v29, %v11149_v0  ;;  %v11152_v38 = vadd.f32 %v14843_v11, %v14840_v43  ;;  %v15226_v29 = vld [vmem:[#allocation35_spill] sm:$0xff] }
 0x492   : > { %v14951_v45 = vpop.f32.mrf.mxu0  ;;  %v8361_v18 = vpop.f32.mrf.mxu1  ;;  %v11155_v11 = vadd.f32 %v14851_v57, %v14848_v35  ;;  %v11164_v57 = vadd.f32 %v14881_v30, %v14874_v50  ;;  %v11167_v30 = vadd.f32 %v14895_v3, %v14889_v7  ;;  %v11176_v7 = vadd.f32 %v14937_v46, %v14930_v10 }
 0x493   : > { %8630 = vst [vmem:[%s12784_s8 + $0x50] sm:$0xff] %v8598_v61  ;;  %v8596_v36 = vadd.f32 %v14879_v60, %v8493_v20  ;;  %v8496_v23 = vadd.f32 %v8370_v6, %v14722_v9  ;;  %v8362_v58 = vadd.f32 %v11143_v37, %v8361_v18  ;;  %v15227_v6 = vld [vmem:[#allocation38_spill] sm:$0xff]  ;;  %v11179_v10 = vadd.f32 %v14951_v45, %v14944_v28 }
 0x494   : > { %v11180_v4 = vpop.f32.mrf.mxu0  ;;  %v11648_v15 = vpop.f32.mrf.mxu1 }
 0x495   : > { %8628 = vst [vmem:[%s12784_s8 + $0x40] sm:$0xff] %v8596_v36  ;;  %v8599_v47 = vadd.f32 %v14879_v60, %v8496_v23  ;;  %v8494_v24 = vadd.f32 %v8362_v58, %v14708_v63  ;;  %v8383_v44 = vadd.f32 %v11648_v15, %v11158_v53  ;;  %v15228_v58 = vld [vmem:[#allocation34_spill] sm:$0xff] }
 0x496   : > { %v11181_v26 = vpop.f32.mrf.mxu0  ;;  %v8374_v34 = vpop.f32.mrf.mxu1 }
 0x497   : > { %8631 = vst [vmem:[%s12784_s8 + $0x58] sm:$0xff] %v8599_v47  ;;  %v8597_v9 = vadd.f32 %v14879_v60, %v8494_v24  ;;  %v8499_v13 = vadd.f32 %v8383_v44, %v14744_v40  ;;  %v8375_v62 = vadd.f32 %v11152_v38, %v8374_v34  ;;  %v11182_v8 = vadd.f32 %v11181_v26, %v11180_v4  ;;  %v15229_v26 = vld [vmem:[#allocation39_spill] sm:$0xff] }
 0x498   : > { %v11183_v27 = vpop.f32.mrf.mxu0  ;;  %v11649_v43 = vpop.f32.mrf.mxu1 }
 0x499   : > { %8629 = vst [vmem:[%s12784_s8 + $0x48] sm:$0xff] %v8597_v9  ;;  %v8602_v63 = vadd.f32 %v14879_v60, %v8499_v13  ;;  %v8497_v56 = vadd.f32 %v8375_v62, %v15224_v16  ;;  %v8386_v1 = vadd.f32 %v11649_v43, %v11161_v49  ;;  %v15230_v62 = vld [vmem:[#allocation37_spill] sm:$0xff] }
 0x49a   : > { %v11184_v32 = vpop.f32.mrf.mxu0  ;;  %v8377_v19 = vpop.f32.mrf.mxu1 }
 0x49b   : > { %8634 = vst [vmem:[%s12784_s8 + $0x70] sm:$0xff] %v8602_v63  ;;  %v8600_v40 = vadd.f32 %v14879_v60, %v8497_v56  ;;  %v8500_v55 = vadd.f32 %v8386_v1, %v14752_v2  ;;  %v8378_v39 = vadd.f32 %v11155_v11, %v8377_v19  ;;  %v11185_v24 = vadd.f32 %v11184_v32, %v11183_v27  ;;  %v15231_v1 = vld [vmem:[#allocation28_spill] sm:$0xff] }
 0x49c   : > { %v11186_v54 = vpop.f32.mrf.mxu0  ;;  %v11652_v35 = vpop.f32.mrf.mxu1 }
 0x49d   : > { %8632 = vst [vmem:[%s12784_s8 + $0x60] sm:$0xff] %v8600_v40  ;;  %v8603_v52 = vadd.f32 %v14879_v60, %v8500_v55  ;;  %v8498_v12 = vadd.f32 %v8378_v39, %v15225_v33  ;;  %v8399_v48 = vadd.f32 %v11652_v35, %v11170_v17  ;;  %v15232_v55 = vld [vmem:[#allocation41_spill] sm:$0xff] }
 0x49e   : > { %v11187_v25 = vpop.f32.mrf.mxu0  ;;  %v8390_v21 = vpop.f32.mrf.mxu1 }
 0x49f   : > { %8635 = vst [vmem:[%s12784_s8 + $0x78] sm:$0xff] %v8603_v52  ;;  %v8601_v2 = vadd.f32 %v14879_v60, %v8498_v12  ;;  %v8503_v0 = vadd.f32 %v8399_v48, %v14774_v42  ;;  %v8391_v22 = vadd.f32 %v11164_v57, %v8390_v21  ;;  %v11188_v28 = vadd.f32 %v11187_v25, %v11186_v54  ;;  %v15233_v48 = vld [vmem:[#allocation29_spill] sm:$0xff] }
 0x4a0   : > { %v11189_v31 = vpop.f32.mrf.mxu0  ;;  %v11653_v50 = vpop.f32.mrf.mxu1 }
 0x4a1   : > { %8633 = vst [vmem:[%s12784_s8 + $0x68] sm:$0xff] %v8601_v2  ;;  %v8606_v5 = vadd.f32 %v14879_v60, %v8503_v0  ;;  %v8501_v37 = vadd.f32 %v8391_v22, %v15226_v29  ;;  %v8402_v61 = vadd.f32 %v11653_v50, %v11173_v51  ;;  %v15234_v22 = vld [vmem:[#allocation40_spill] sm:$0xff] }
 0x4a2   : > { %v11190_v20 = vpop.f32.mrf.mxu0  ;;  %v8393_v14 = vpop.f32.mrf.mxu1 }
 0x4a3   : > { %8638 = vst [vmem:[%s12784_s8 + $0x90] sm:$0xff] %v8606_v5  ;;  %v8604_v42 = vadd.f32 %v14879_v60, %v8501_v37  ;;  %v8504_v18 = vadd.f32 %v8402_v61, %v15227_v6  ;;  %v8394_v53 = vadd.f32 %v11167_v30, %v8393_v14  ;;  %v11191_v54 = vadd.f32 %v11190_v20, %v11189_v31  ;;  %v15235_v61 = vld [vmem:[#allocation27_spill] sm:$0xff] }
 0x4a4   : > { %v11192_v36 = vpop.f32.mrf.mxu0  ;;  %v11656_v23 = vpop.f32.mrf.mxu1 }
 0x4a5   : > { %8636 = vst [vmem:[%s12784_s8 + $0x80] sm:$0xff] %v8604_v42  ;;  %v8607_v3 = vadd.f32 %v14879_v60, %v8504_v18  ;;  %v8502_v15 = vadd.f32 %v8394_v53, %v15228_v58  ;;  %v8415_v38 = vadd.f32 %v11656_v23, %v11182_v8  ;;  %v15236_v18 = vld [vmem:[#allocation30_spill] sm:$0xff] }
 0x4a6   : > { %v11193_v47 = vpop.f32.mrf.mxu0  ;;  %v8406_v4 = vpop.f32.mrf.mxu1 }
 0x4a7   : > { %8639 = vst [vmem:[%s12784_s8 + $0x98] sm:$0xff] %v8607_v3  ;;  %v8605_v44 = vadd.f32 %v14879_v60, %v8502_v15  ;;  %v8507_v34 = vadd.f32 %v8415_v38, %v15229_v26  ;;  %v8407_v49 = vadd.f32 %v11176_v7, %v8406_v4  ;;  %v11194_v16 = vadd.f32 %v11193_v47, %v11192_v36 }
 0x4a8   : > { %v11195_v9 = vpop.f32.mrf.mxu0  ;;  %v11657_v13 = vpop.f32.mrf.mxu1 }
 0x4a9   : > { %8637 = vst [vmem:[%s12784_s8 + $0x88] sm:$0xff] %v8605_v44  ;;  %v8610_v46 = vadd.f32 %v14879_v60, %v8507_v34  ;;  %v8505_v43 = vadd.f32 %v8407_v49, %v15230_v62  ;;  %v8418_v11 = vadd.f32 %v11657_v13, %v11185_v24  ;;  %v15237_v24 = vld [vmem:[#allocation26_spill] sm:$0xff] }
 0x4aa   : > { %v11196_v63 = vpop.f32.mrf.mxu0  ;;  %v8409_v27 = vpop.f32.mrf.mxu1 }
 0x4ab   : > { %8642 = vst [vmem:[%s12784_s8 + $0xb0] sm:$0xff] %v8610_v46  ;;  %v8608_v56 = vadd.f32 %v14879_v60, %v8505_v43  ;;  %v8508_v32 = vadd.f32 %v8418_v11, %v15231_v1  ;;  %v8410_v19 = vadd.f32 %v11179_v10, %v8409_v27  ;;  %v11197_v33 = vadd.f32 %v11196_v63, %v11195_v9  ;;  %v15238_v43 = vld [vmem:[#allocation32_spill] sm:$0xff] }
 0x4ac   : > { %v11198_v17 = vpop.f32.mrf.mxu0  ;;  %v11660_v40 = vpop.f32.mrf.mxu1 }
 0x4ad   : > { %8640 = vst [vmem:[%s12784_s8 + $0xa0] sm:$0xff] %v8608_v56  ;;  %v8611_v45 = vadd.f32 %v14879_v60, %v8508_v32  ;;  %v8506_v39 = vadd.f32 %v8410_v19, %v15232_v55  ;;  %v8431_v35 = vadd.f32 %v11660_v40, %v11194_v16 }
 0x4ae   : > { %v11199_v57 = vpop.f32.mrf.mxu0  ;;  %v8422_v52 = vpop.f32.mrf.mxu1 }
 0x4af   : > { %8643 = vst [vmem:[%s12784_s8 + $0xb8] sm:$0xff] %v8611_v45  ;;  %v8609_v12 = vadd.f32 %v14879_v60, %v8506_v39  ;;  %v8511_v21 = vadd.f32 %v8431_v35, %v15233_v48  ;;  %v8423_v51 = vadd.f32 %v11188_v28, %v8422_v52  ;;  %v11200_v31 = vadd.f32 %v11199_v57, %v11198_v17 }
 0x4b0   : > { %v11201_v2 = vpop.f32.mrf.mxu0  ;;  %v11661_v0 = vpop.f32.mrf.mxu1 }
 0x4b1   : > { %8641 = vst [vmem:[%s12784_s8 + $0xa8] sm:$0xff] %v8609_v12  ;;  %v8614_v25 = vadd.f32 %v14879_v60, %v8511_v21  ;;  %v8509_v50 = vadd.f32 %v8423_v51, %v15234_v22  ;;  %v8434_v30 = vadd.f32 %v11661_v0, %v11197_v33 }
 0x4b2   : > { %v11202_v5 = vpop.f32.mrf.mxu0  ;;  %v8425_v29 = vpop.f32.mrf.mxu1 }
 0x4b3   : > { %8646 = vst [vmem:[%s12784_s8 + $0xd0] sm:$0xff] %v8614_v25  ;;  %v8612_v37 = vadd.f32 %v14879_v60, %v8509_v50  ;;  %v8512_v14 = vadd.f32 %v8434_v30, %v15235_v61  ;;  %v8426_v8 = vadd.f32 %v11191_v54, %v8425_v29  ;;  %v11203_v47 = vadd.f32 %v11202_v5, %v11201_v2 }
 0x4b4   : > { %v11204_v42 = vpop.f32.mrf.mxu0  ;;  %v11664_v6 = vpop.f32.mrf.mxu1 }
 0x4b5   : > { %8644 = vst [vmem:[%s12784_s8 + $0xc0] sm:$0xff] %v8612_v37  ;;  %v8615_v20 = vadd.f32 %v14879_v60, %v8512_v14  ;;  %v8510_v53 = vadd.f32 %v8426_v8, %v15236_v18 }
 0x4b6   : > { %v11205_v36 = vpop.f32.mrf.mxu0  ;;  %v8438_v23 = vpop.f32.mrf.mxu1 }
 0x4b7   : > { %8647 = vst [vmem:[%s12784_s8 + $0xd8] sm:$0xff] %v8615_v20  ;;  %v8613_v7 = vadd.f32 %v14879_v60, %v8510_v53  ;;  %v11206_v3 = vadd.f32 %v11205_v36, %v11204_v42  ;;  %v8439_v58 = vadd.f32 %v11200_v31, %v8438_v23 }
 0x4b8   : > { %v11207_v15 = vpop.f32.mrf.mxu0  ;;  %v11665_v38 = vpop.f32.mrf.mxu1 }
 0x4b9   : > { %8645 = vst [vmem:[%s12784_s8 + $0xc8] sm:$0xff] %v8613_v7  ;;  %v8447_v4 = vadd.f32 %v11664_v6, %v11206_v3  ;;  %v8513_v44 = vadd.f32 %v8439_v58, %v15237_v24 }
 0x4ba   : > { %v11208_v26 = vpop.f32.mrf.mxu0  ;;  %v8441_v34 = vpop.f32.mrf.mxu1 }
 0x4bb   : > { %v8515_v49 = vadd.f32 %v8447_v4, %v14872_v41  ;;  %v8616_v9 = vadd.f32 %v14879_v60, %v8513_v44  ;;  %v11209_v13 = vadd.f32 %v11208_v26, %v11207_v15  ;;  %v8442_v10 = vadd.f32 %v11203_v47, %v8441_v34 }
 0x4bd   : > { %v8618_v46 = vadd.f32 %v14879_v60, %v8515_v49  ;;  %8648 = vst [vmem:[%s12784_s8 + $0xe0] sm:$0xff] %v8616_v9  ;;  %v8450_v62 = vadd.f32 %v11665_v38, %v11209_v13  ;;  %v8514_v11 = vadd.f32 %v8442_v10, %v15238_v43 }
 0x4bf   : > { %8650 = vst [vmem:[%s12784_s8 + $0xf0] sm:$0xff] %v8618_v46  ;;  %v8516_v63 = vadd.f32 %v8450_v62, %v14886_v59  ;;  %v8617_v41 = vadd.f32 %v14879_v60, %v8514_v11 }
 0x4c1   : > { %v8619_v27 = vadd.f32 %v14879_v60, %v8516_v63  ;;  %8649 = vst [vmem:[%s12784_s8 + $0xe8] sm:$0xff] %v8617_v41 }
 0x4c3   : > { %8651 = vst [vmem:[%s12784_s8 + $0xf8] sm:$0xff] %v8619_v27 }
 0x4c4   : > { %12526 = shalt.err (!%p12523_p2)
}
 0x4c5   : > { %s12527_s8 = scalar_lea.hbm %s15045_s20, 4096  ;;  %s12531_s28 = scalar_lea.hbm %s15108_s3, 32768 }
 0x4c6   : > { %p12528_p4 = scmp.ne.s32.totalorder %s15045_s20, %s12527_s8  ;;  %p12532_p7 = scmp.lt.s32.totalorder %s15045_s20, %s15108_s3 }
 0x4c7   : > { %p12533_p10 = scmp.lt.s32.totalorder %s12531_s28, %s12527_s8 }
 0x4c8   : > { %p12529_p5 = pnand %p12528_p4, %p12695_p3 }
 0x4c9   : > { %p12534_p8 = por %p12533_p10, %p12532_p7 }
 0x4ca   : > { %p12530_p6 = pneg %p12529_p5 }
 0x4cc   : > { %p12535_p9 = pnand %p12534_p8, %p12530_p6 }
 0x4ce   : > { %12538 = shalt.err (!%p12535_p9)
}
 0x4cf   : > { %s12621_s1 = smov 128   ;;  %s12622_s18 = smov 8  }
 0x4d0   : > { %11692 = dma.vmem_to_hbm [thread:$0]  (%p12695_p3), %s15047_s16, 4096, %s15045_s20, %s15054_s9, %s12621_s1, %s12621_s1, %s12622_s18  }
 0x4d1 PF: > { %p11706_p11 = scmp.ge.s32.totalorder %s12615_s19, 2  ;;  %s8684_s22 = sand.u32 1, %s12587_s12  }
 0x4d2   : > { %p15240_p12 = scmp.ne.s32.totalorder %s15123_s27, 0  ;;  %s8685_s23 = scalar_lea.sflag [#allocation8], %s8684_s22 }
 0x4d4   : > { %p11699_p13 = pnand %p11706_p11, %p15240_p12 }
 0x4d6   : > { %p11700_p0 = pneg %p11699_p13 }
 0x4d8   : > { %12582 = dma.done.wait (%p11700_p0), %s8685_s23, 4096  }
 0x4d9   : > { %12584 = vsyncadd (%p11700_p0), %s8685_s23, 4294963200  ;;  %s17_s19 = sadd.s32 1, %s12615_s19   ;;  %s15241_s15 = sld [smem:[#allocation22_spill]] }
 0x4da   : > { %p14_p1 = scmp.ge.s32.totalorder %s17_s19, 10   ;;  %s15242_s16 = sld [smem:[#allocation23_spill]] }
 0x4db   : > { %s15243_s17 = sld [smem:[#allocation24_spill]]  ;;  %s15245_s12 = smov %s12591_s13 }
 0x4dc   : > { %s15244_s18 = sld [smem:[#allocation25_spill]]  ;;  %s15246_s13 = smov %s12595_s14 }
 0x4dd   : > { %s15247_s14 = smov %s12722_s5  ;;  %16 = sbr.rel (!%p14_p1) target bundleno = 9 (0x9), region = 106 }
 0x4e2   :  { %8690 = vsyncpa [#allocation7], 1 }
 0x4e3   :  { %8692 = vsyncpa [#allocation7 + $0x1], 1 }
 0x4e4   :  { %8693 = vsyncpa [#allocation8], 1 }
 0x4e5   :  { %8695 = vsyncpa [#allocation8 + $0x1], 1 }
 0x4e6   :  { %8696 = vsyncmov [#allocation5] }
 0x4e9   :  { %s8697_s26 = vpop.sfrf %8696 }
 0x4ea   :  { %p10003_p3 = scmp.ne.s32.totalorder %s8697_s26, 0 }
 0x4ec   :  { %8701 = shalt.err (%p10003_p3)  }
 0x4ed   :  { %8703 = vsyncmov [#allocation5 + $0x1] }
 0x4f0   :  { %s8704_s27 = vpop.sfrf %8703 }
 0x4f1   :  { %p10004_p2 = scmp.ne.s32.totalorder %s8704_s27, 0 }
 0x4f3   :  { %8708 = shalt.err (%p10004_p2)  }
 0x4f4   :  { %8710 = vsyncmov [#allocation5 + $0x2] }
 0x4f7   :  { %s8711_s5 = vpop.sfrf %8710 }
 0x4f8   :  { %p10005_p4 = scmp.ne.s32.totalorder %s8711_s5, 0 }
 0x4fa   :  { %8715 = shalt.err (%p10005_p4)  }

</bundles_post_ra>
